<compile_context>
chip_gen: v6e
topology: v6e:2x2x1
jax: 0.10.0
libtpu: 0.0.40
codegen_flags: <defaults>
</compile_context>

<pallas_src>
import functools
import math

import jax
import jax.numpy as jnp
from jax.experimental import pallas as pl
from jax.experimental.pallas import tpu as pltpu


# ----------------------------- compiler params -----------------------------

@functools.lru_cache(maxsize=None)
def _vmem_limit_bytes():
    """~75% of physical VMEM, clamped to [32, 100] MiB (v5e/v6e: 96, v7x: 48)."""
    cap = 128 * 1024 * 1024
    try:
        info = pltpu.get_tpu_info()
        cap = int(getattr(info, "vmem_capacity_bytes", cap))
    except Exception:
        pass
    return max(32 * 1024 * 1024, min(100 * 1024 * 1024, (cap // 4) * 3))


def _compiler_params(n_grid_axes):
    return pltpu.CompilerParams(
        dimension_semantics=("parallel",) * n_grid_axes,
        vmem_limit_bytes=_vmem_limit_bytes(),
    )


def _tile(m, cap):
    """Largest tile (multiple of 8, <= cap) dividing m; else full m."""
    for t in (512, 256, 128, 64, 32, 16, 8):
        if t <= cap and m % t == 0:
            return t
    return m


# ----------------------------- Pallas kernels -----------------------------

def _mha_ln_kernel(xq_ref, xkv_ref, pad_ref, wq_ref, bq_ref, wkv_ref, bkv_ref,
                   wo_ref, bo_ref, g_ref, b_ref, y_ref, prob_ref, acc_ref,
                   *, n_head, scale, eps, causal):
    """One (batch, q-tile): fused QKV proj + MHA + out proj + residual + LN."""
    D = wq_ref.shape[0]
    dh = D // n_head
    tq = xq_ref.shape[0]
    Sk = xkv_ref.shape[0]

    xq = xq_ref[...]                                   # [tq, D] f32 (residual)
    xkv = xkv_ref[...]                                 # [Sk, D] f32

    # ---- mask built in-kernel (computed once, hoisted out of the head loop)
    pad_row = pad_ref[...] > 0.0                       # [1, Sk] bool (key pad)
    if causal:
        qi = pl.program_id(1)
        row = qi * tq + jax.lax.broadcasted_iota(jnp.int32, (tq, Sk), 0)
        col = jax.lax.broadcasted_iota(jnp.int32, (tq, Sk), 1)
        masked = jnp.logical_or(pad_row, col > row)    # [tq, Sk]
    else:
        masked = jnp.broadcast_to(pad_row, (tq, Sk))

    # ---- projections: bf16 MXU feeds, f32 accumulation. K/V share one matmul.
    q = jnp.dot(xq.astype(jnp.bfloat16), wq_ref[...],
                preferred_element_type=jnp.float32) + bq_ref[...]
    q = (q * scale).astype(jnp.bfloat16)               # fold 1/sqrt(dh) into q
    kv = jnp.dot(xkv.astype(jnp.bfloat16), wkv_ref[...],
                 preferred_element_type=jnp.float32) + bkv_ref[...]
    k = kv[:, :D].astype(jnp.bfloat16)
    v = kv[:, D:].astype(jnp.bfloat16)

    neg_inf = jnp.float32(-1e9)
    # accumulate the output projection per head; only acc_ref survives a head
    acc_ref[...] = jnp.broadcast_to(bo_ref[...], (tq, D))
    for h in range(n_head):                            # static unroll over heads
        lo, hi = h * dh, (h + 1) * dh
        # scores = q_h @ k_h^T  -> [tq, Sk]
        s = jax.lax.dot_general(q[:, lo:hi], k[:, lo:hi],
                                (((1,), (1,)), ((), ())),
                                preferred_element_type=jnp.float32)
        s = jnp.where(masked, neg_inf, s)              # masked_fill(mask, -1e9)

        m = jnp.max(s, axis=-1, keepdims=True)
        e = jnp.exp(s - m)
        denom = jnp.sum(e, axis=-1, keepdims=True)
        p_h = e / denom                                # exact softmax (PyTorch parity)
        prob_ref[h] = p_h                              # [tq, Sk] f32

        ctx_h = jnp.dot(p_h.astype(jnp.bfloat16), v[:, lo:hi],
                        preferred_element_type=jnp.float32)          # [tq, dh]
        acc_ref[...] += jnp.dot(ctx_h.astype(jnp.bfloat16), wo_ref[lo:hi, :],
                                preferred_element_type=jnp.float32)  # [tq, D]

    # ---- residual + LayerNorm (f32)
    z = xq + acc_ref[...]
    mean = jnp.mean(z, axis=-1, keepdims=True)
    var = jnp.mean((z - mean) ** 2, axis=-1, keepdims=True)
    y_ref[...] = (z - mean) * jax.lax.rsqrt(var + eps) * g_ref[...] + b_ref[...]


def _ffn_ln_kernel(x_ref, w1_ref, b1_ref, w2_ref, b2_ref, g_ref, bb_ref, o_ref,
                   *, eps):
    """Fused position-wise FFN (W1+ReLU -> W2) + residual + LayerNorm."""
    x = x_ref[...]                                     # [tm, D] f32
    h = jnp.dot(x.astype(jnp.bfloat16), w1_ref[...],
                preferred_element_type=jnp.float32) + b1_ref[...]
    h = jnp.maximum(h, 0.0)
    y = jnp.dot(h.astype(jnp.bfloat16), w2_ref[...],
                preferred_element_type=jnp.float32) + b2_ref[...]
    z = x + y
    mean = jnp.mean(z, axis=-1, keepdims=True)
    var = jnp.mean((z - mean) ** 2, axis=-1, keepdims=True)
    o_ref[...] = (z - mean) * jax.lax.rsqrt(var + eps) * g_ref[...] + bb_ref[...]


# ----------------------------- kernel wrappers -----------------------------

def mha_block(x_q, x_kv, pad_k, ap, ln_g, ln_b, n_head, eps, causal):
    """Fused multi-head attention + residual + LayerNorm.

    x_q:   [B, Sq, D]   (also the residual)
    x_kv:  [B, Sk, D]
    pad_k: [B, 1, Sk]   float32, 1.0 where the KEY position is padding
    Returns (y [B, Sq, D], prob [B, H, Sq, Sk]).
    """
    B, Sq, D = x_q.shape
    Sk = x_kv.shape[1]
    dh = D // n_head
    scale = 1.0 / math.sqrt(dh)
    tq = _tile(Sq, 256)                                # query-row tile

    kernel = functools.partial(_mha_ln_kernel, n_head=n_head, scale=scale,
                               eps=eps, causal=causal)
    y, prob = pl.pallas_call(
        kernel,
        out_shape=(jax.ShapeDtypeStruct((B, Sq, D), jnp.float32),
                   jax.ShapeDtypeStruct((B, n_head, Sq, Sk), jnp.float32)),
        grid=(B, Sq // tq),
        in_specs=[
            pl.BlockSpec((None, tq, D), lambda b, q: (b, q, 0)),     # x_q tile
            pl.BlockSpec((None, Sk, D), lambda b, q: (b, 0, 0)),     # x_kv
            pl.BlockSpec((None, 1, Sk), lambda b, q: (b, 0, 0)),     # key pad
            pl.BlockSpec((D, D), lambda b, q: (0, 0)),               # wq (bf16)
            pl.BlockSpec((1, D), lambda b, q: (0, 0)),               # bq
            pl.BlockSpec((D, 2 * D), lambda b, q: (0, 0)),           # wkv (bf16)
            pl.BlockSpec((1, 2 * D), lambda b, q: (0, 0)),           # bkv
            pl.BlockSpec((D, D), lambda b, q: (0, 0)),               # wo (bf16)
            pl.BlockSpec((1, D), lambda b, q: (0, 0)),               # bo
            pl.BlockSpec((1, D), lambda b, q: (0, 0)),               # ln gamma
            pl.BlockSpec((1, D), lambda b, q: (0, 0)),               # ln beta
        ],
        out_specs=(
            pl.BlockSpec((None, tq, D), lambda b, q: (b, q, 0)),
            pl.BlockSpec((None, n_head, tq, Sk), lambda b, q: (b, 0, q, 0)),
        ),
        scratch_shapes=[pltpu.VMEM((tq, D), jnp.float32)],           # attn acc
        compiler_params=_compiler_params(2),
    )(x_q, x_kv, pad_k, ap["wq"], ap["bq"], ap["wkv"], ap["bkv"],
      ap["wo"], ap["bo"], ln_g, ln_b)
    return y, prob


def ffn_block(x2d, lp, eps):
    """Fused FFN + residual + LayerNorm over row tiles. x2d: [M, D]."""
    M, D = x2d.shape
    d_ff = lp["ff_w1"].shape[1]
    tm = _tile(M, 512)
    return pl.pallas_call(
        functools.partial(_ffn_ln_kernel, eps=eps),
        out_shape=jax.ShapeDtypeStruct((M, D), jnp.float32),
        grid=(M // tm,),
        in_specs=[
            pl.BlockSpec((tm, D), lambda i: (i, 0)),                 # x
            pl.BlockSpec((D, d_ff), lambda i: (0, 0)),               # w1 (bf16)
            pl.BlockSpec((1, d_ff), lambda i: (0, 0)),               # b1
            pl.BlockSpec((d_ff, D), lambda i: (0, 0)),               # w2 (bf16)
            pl.BlockSpec((1, D), lambda i: (0, 0)),                  # b2
            pl.BlockSpec((1, D), lambda i: (0, 0)),                  # ln gamma
            pl.BlockSpec((1, D), lambda i: (0, 0)),                  # ln beta
        ],
        out_specs=pl.BlockSpec((tm, D), lambda i: (i, 0)),
        compiler_params=_compiler_params(1),
    )(x2d, lp["ff_w1"], lp["ff_b1"], lp["ff_w2"], lp["ff_b2"],
      lp["ln3_g"], lp["ln3_b"])


# ----------------------------- model (glue + kernels) -----------------------------

def decoder_layer(dec_in, enc_out, dec_pad, enc_pad, p, n_head, eps):
    B, S, D = dec_in.shape

    # masked self-attention + residual + LayerNorm1 (one kernel, causal in-kernel)
    masked_output, attn_prob = mha_block(
        dec_in, dec_in, dec_pad, p["masked_attn"], p["ln1_g"], p["ln1_b"],
        n_head, eps, causal=True)

    # encoder-decoder attention + residual + LayerNorm2 (one kernel)
    enc_dec_output, enc_dec_prob = mha_block(
        masked_output, enc_out, enc_pad, p["multi_head_attn"],
        p["ln2_g"], p["ln2_b"], n_head, eps, causal=False)

    # position-wise feed-forward + residual + LayerNorm3 (one kernel)
    dec_output = ffn_block(enc_dec_output.reshape(-1, D), p, eps).reshape(B, S, D)
    return dec_output, attn_prob, enc_dec_prob


def decoder_forward(enc_input, dec_input, enc_output, params, *, n_head, pad_idx, eps):
    B, Ld = dec_input.shape

    emb_dec = params["embedding"][dec_input]                       # gather (glue)
    pe = params["pos_encoding"][:Ld]                               # (Ld, D)
    dec_output = emb_dec + pe[None, :, :]

    # Only key-padding vectors go through HBM (O(B*S)); causal mask is built
    # in-kernel. 1.0 == key position NOT allowed to be attended.
    dec_pad = (dec_input == pad_idx).astype(jnp.float32)[:, None, :]   # [B,1,Ld]
    enc_pad = (enc_input == pad_idx).astype(jnp.float32)[:, None, :]   # [B,1,Le]

    dec_self_attn_prob = []
    enc_dec_attn_prob = []
    for lp in params["layers"]:
        dec_output, sp, cp = decoder_layer(dec_output, enc_output, dec_pad,
                                           enc_pad, lp, n_head, eps)
        dec_self_attn_prob.append(sp)
        enc_dec_attn_prob.append(cp)
    return dec_output, dec_self_attn_prob, enc_dec_attn_prob


# ----------------------------- parameter init -----------------------------

def sinusoid_pe(max_len, d):
    pos = jnp.arange(max_len, dtype=jnp.float32)[:, None]
    i = jnp.arange(d)[None, :]
    angle = pos / jnp.power(10000.0, (2 * (i // 2)).astype(jnp.float32) / d)
    return jnp.where(i % 2 == 0, jnp.sin(angle), jnp.cos(angle)).astype(jnp.float32)


def init_params(key, voca_size, emb_dim, max_seq_len, d_ff, n_layers):
    def dense(k, fan_in, fan_out):
        w = (jax.random.normal(k, (fan_in, fan_out), jnp.float32)
             * (1.0 / math.sqrt(fan_in)))
        return w.astype(jnp.bfloat16)          # MXU-native weight storage

    D = emb_dim
    keys = jax.random.split(key, 1 + n_layers)
    params = {
        "embedding": jax.random.normal(keys[0], (voca_size, D), jnp.float32) * 0.02,
        "pos_encoding": sinusoid_pe(max_seq_len, D),
        "layers": [],
    }
    for li in range(n_layers):
        lk = jax.random.split(keys[1 + li], 10)

        def attn_params(ks):
            # K and V projections stored fused as one [D, 2D] bf16 weight.
            return {
                "wq": dense(ks[0], D, D),
                "bq": jnp.zeros((1, D), jnp.float32),
                "wkv": jnp.concatenate([dense(ks[1], D, D), dense(ks[2], D, D)],
                                       axis=1),
                "bkv": jnp.zeros((1, 2 * D), jnp.float32),
                "wo": dense(ks[3], D, D),
                "bo": jnp.zeros((1, D), jnp.float32),
            }

        params["layers"].append({
            "masked_attn": attn_params(lk[0:4]),
            "multi_head_attn": attn_params(lk[4:8]),
            "ln1_g": jnp.ones((1, D), jnp.float32), "ln1_b": jnp.zeros((1, D), jnp.float32),
            "ln2_g": jnp.ones((1, D), jnp.float32), "ln2_b": jnp.zeros((1, D), jnp.float32),
            "ln3_g": jnp.ones((1, D), jnp.float32), "ln3_b": jnp.zeros((1, D), jnp.float32),
            "ff_w1": dense(lk[8], D, d_ff), "ff_b1": jnp.zeros((1, d_ff), jnp.float32),
            "ff_w2": dense(lk[9], d_ff, D), "ff_b2": jnp.zeros((1, D), jnp.float32),
        })
    return params


# ----------------------------- main -----------------------------

if __name__ == "__main__":
    # module hyperparameters (small, consistent with Decoder.__init__)
    voca_size, emb_dim, max_seq_len = 50, 32, 16
    n_head, d_ff, n_layers = 4, 64, 2
    pad_idx, layernorm_eps = 0, 1e-6

    B, Ld, Le = 2, 8, 8

    key = jax.random.PRNGKey(0)
    kp, ke, kd, ko = jax.random.split(key, 4)

    params = init_params(kp, voca_size, emb_dim, max_seq_len, d_ff, n_layers)

    enc_input = jax.random.randint(ke, (B, Le), 1, voca_size)
    dec_input = jax.random.randint(kd, (B, Ld), 1, voca_size)
    # add some padding tokens so masks are exercised
    enc_input = enc_input.at[:, -2:].set(pad_idx)
    dec_input = dec_input.at[:, -1:].set(pad_idx)
    enc_output = jax.random.normal(ko, (B, Le, emb_dim), jnp.float32)

    fwd = jax.jit(functools.partial(decoder_forward, n_head=n_head,
                                    pad_idx=pad_idx, eps=layernorm_eps))

    dec_out, self_probs, cross_probs = fwd(enc_input, dec_input, enc_output, params)
    jax.block_until_ready((dec_out, self_probs, cross_probs))

    assert dec_out.shape == (B, Ld, emb_dim)
    assert len(self_probs) == n_layers and self_probs[0].shape == (B, n_head, Ld, Ld)
    assert len(cross_probs) == n_layers and cross_probs[0].shape == (B, n_head, Ld, Le)
    assert bool(jnp.all(jnp.isfinite(dec_out)))
    # softmax rows of a probability map should sum to ~1 (exact divide path)
    assert bool(jnp.all(jnp.abs(jnp.sum(self_probs[0], axis=-1) - 1.0) < 1e-3))
    # causal check: first query row of self-attention can only attend position 0
    assert bool(jnp.all(self_probs[0][:, :, 0, 1:] < 1e-6))

    print("KERNEL_OK")
</pallas_src>

<mosaic_0001>
module attributes {stable_mosaic.version = 11 : i64} {
  func.func @_ffn_ln_kernel(%arg0: i32, %arg1: memref<16x32xf32, #tpu.memory_space<vmem>>, %arg2: memref<32x64xbf16, #tpu.memory_space<vmem>>, %arg3: memref<1x64xf32, #tpu.memory_space<vmem>>, %arg4: memref<64x32xbf16, #tpu.memory_space<vmem>>, %arg5: memref<1x32xf32, #tpu.memory_space<vmem>>, %arg6: memref<1x32xf32, #tpu.memory_space<vmem>>, %arg7: memref<1x32xf32, #tpu.memory_space<vmem>>, %arg8: memref<16x32xf32, #tpu.memory_space<vmem>>) attributes {dimension_semantics = [#tpu.dimension_semantics<parallel>], iteration_bounds = array<i64: 1>, scalar_prefetch = 0 : i64, scratch_operands = 0 : i64, tpu.core_type = #tpu.core_type<tc>, window_params = [{transform_indices = @transform_0, window_bounds = array<i64: 16, 32>}, {pipeline_mode = #tpu.pipeline_mode<synchronous>, transform_indices = @transform_1, window_bounds = array<i64: 32, 64>}, {pipeline_mode = #tpu.pipeline_mode<synchronous>, transform_indices = @transform_2, window_bounds = array<i64: 1, 64>}, {pipeline_mode = #tpu.pipeline_mode<synchronous>, transform_indices = @transform_3, window_bounds = array<i64: 64, 32>}, {pipeline_mode = #tpu.pipeline_mode<synchronous>, transform_indices = @transform_4, window_bounds = array<i64: 1, 32>}, {pipeline_mode = #tpu.pipeline_mode<synchronous>, transform_indices = @transform_5, window_bounds = array<i64: 1, 32>}, {pipeline_mode = #tpu.pipeline_mode<synchronous>, transform_indices = @transform_6, window_bounds = array<i64: 1, 32>}, {transform_indices = @transform_7, window_bounds = array<i64: 16, 32>}]} {
    %c0 = arith.constant 0 : index
    %c0_0 = arith.constant 0 : index
    %0 = vector.load %arg1[%c0, %c0_0] : memref<16x32xf32, #tpu.memory_space<vmem>>, vector<16x32xf32>
    %1 = arith.truncf %0 : vector<16x32xf32> to vector<16x32xbf16>
    %c0_1 = arith.constant 0 : index
    %c0_2 = arith.constant 0 : index
    %2 = vector.load %arg2[%c0_1, %c0_2] : memref<32x64xbf16, #tpu.memory_space<vmem>>, vector<32x64xbf16>
    %cst = arith.constant dense<0.000000e+00> : vector<16x64xf32>
    %3 = tpu.matmul %1, %2, %cst {dimension_numbers = #tpu.dot_dimension_numbers<[1], [0], [0], [1], [0, 0, 1, 1], [], []>} : vector<16x32xbf16>, vector<32x64xbf16>, vector<16x64xf32> -> vector<16x64xf32>
    %c0_3 = arith.constant 0 : index
    %c0_4 = arith.constant 0 : index
    %4 = vector.load %arg3[%c0_3, %c0_4] : memref<1x64xf32, #tpu.memory_space<vmem>>, vector<1x64xf32>
    %5 = vector.broadcast %4 : vector<1x64xf32> to vector<16x64xf32>
    %6 = arith.addf %3, %5 : vector<16x64xf32>
    %cst_5 = arith.constant 0.000000e+00 : f32
    %7 = vector.broadcast %cst_5 : f32 to vector<16x64xf32>
    %8 = arith.maximumf %6, %7 : vector<16x64xf32>
    %9 = arith.truncf %8 : vector<16x64xf32> to vector<16x64xbf16>
    %c0_6 = arith.constant 0 : index
    %c0_7 = arith.constant 0 : index
    %10 = vector.load %arg4[%c0_6, %c0_7] : memref<64x32xbf16, #tpu.memory_space<vmem>>, vector<64x32xbf16>
    %cst_8 = arith.constant dense<0.000000e+00> : vector<16x32xf32>
    %11 = tpu.matmul %9, %10, %cst_8 {dimension_numbers = #tpu.dot_dimension_numbers<[1], [0], [0], [1], [0, 0, 1, 1], [], []>} : vector<16x64xbf16>, vector<64x32xbf16>, vector<16x32xf32> -> vector<16x32xf32>
    %c0_9 = arith.constant 0 : index
    %c0_10 = arith.constant 0 : index
    %12 = vector.load %arg5[%c0_9, %c0_10] : memref<1x32xf32, #tpu.memory_space<vmem>>, vector<1x32xf32>
    %13 = vector.broadcast %12 : vector<1x32xf32> to vector<16x32xf32>
    %14 = arith.addf %11, %13 : vector<16x32xf32>
    %15 = arith.addf %0, %14 : vector<16x32xf32>
    %cst_11 = arith.constant dense<0.000000e+00> : vector<16xf32>
    %16 = vector.multi_reduction <add>, %15, %cst_11 [1] : vector<16x32xf32> to vector<16xf32>
    %17 = vector.shape_cast %16 : vector<16xf32> to vector<16x1xf32>
    %cst_12 = arith.constant 3.200000e+01 : f32
    %18 = vector.broadcast %cst_12 : f32 to vector<16x1xf32>
    %19 = arith.divf %17, %18 : vector<16x1xf32>
    %20 = vector.broadcast %19 : vector<16x1xf32> to vector<16x32xf32>
    %21 = arith.subf %15, %20 : vector<16x32xf32>
    %22 = arith.mulf %21, %21 : vector<16x32xf32>
    %cst_13 = arith.constant dense<0.000000e+00> : vector<16xf32>
    %23 = vector.multi_reduction <add>, %22, %cst_13 [1] : vector<16x32xf32> to vector<16xf32>
    %24 = vector.shape_cast %23 : vector<16xf32> to vector<16x1xf32>
    %cst_14 = arith.constant 3.200000e+01 : f32
    %25 = vector.broadcast %cst_14 : f32 to vector<16x1xf32>
    %26 = arith.divf %24, %25 : vector<16x1xf32>
    %27 = vector.broadcast %19 : vector<16x1xf32> to vector<16x32xf32>
    %28 = arith.subf %15, %27 : vector<16x32xf32>
    %cst_15 = arith.constant 9.99999997E-7 : f32
    %29 = vector.broadcast %cst_15 : f32 to vector<16x1xf32>
    %30 = arith.addf %26, %29 : vector<16x1xf32>
    %31 = math.rsqrt %30 : vector<16x1xf32>
    %32 = vector.broadcast %31 : vector<16x1xf32> to vector<16x32xf32>
    %33 = arith.mulf %28, %32 : vector<16x32xf32>
    %c0_16 = arith.constant 0 : index
    %c0_17 = arith.constant 0 : index
    %34 = vector.load %arg6[%c0_16, %c0_17] : memref<1x32xf32, #tpu.memory_space<vmem>>, vector<1x32xf32>
    %35 = vector.broadcast %34 : vector<1x32xf32> to vector<16x32xf32>
    %36 = arith.mulf %33, %35 : vector<16x32xf32>
    %c0_18 = arith.constant 0 : index
    %c0_19 = arith.constant 0 : index
    %37 = vector.load %arg7[%c0_18, %c0_19] : memref<1x32xf32, #tpu.memory_space<vmem>>, vector<1x32xf32>
    %38 = vector.broadcast %37 : vector<1x32xf32> to vector<16x32xf32>
    %39 = arith.addf %36, %38 : vector<16x32xf32>
    %c0_20 = arith.constant 0 : index
    %c0_21 = arith.constant 0 : index
    %40 = vector.load %arg8[%c0_20, %c0_21] : memref<16x32xf32, #tpu.memory_space<vmem>>, vector<16x32xf32>
    tpu.vector_store %arg8[%c0_20, %c0_21], %39 {strides = array<i32>} : memref<16x32xf32, #tpu.memory_space<vmem>>, vector<16x32xf32>,
    return
  }
  func.func @transform_0(%arg0: i32) -> (i32, i32) {
    %c0_i32 = arith.constant 0 : i32
    %c0_i32_0 = arith.constant 0 : i32
    return %arg0, %c0_i32 : i32, i32
  }
  func.func @transform_1(%arg0: i32) -> (i32, i32) {
    %c0_i32 = arith.constant 0 : i32
    %c0_i32_0 = arith.constant 0 : i32
    %c0_i32_1 = arith.constant 0 : i32
    return %c0_i32, %c0_i32_0 : i32, i32
  }
  func.func @transform_2(%arg0: i32) -> (i32, i32) {
    %c0_i32 = arith.constant 0 : i32
    %c0_i32_0 = arith.constant 0 : i32
    %c0_i32_1 = arith.constant 0 : i32
    return %c0_i32, %c0_i32_0 : i32, i32
  }
  func.func @transform_3(%arg0: i32) -> (i32, i32) {
    %c0_i32 = arith.constant 0 : i32
    %c0_i32_0 = arith.constant 0 : i32
    %c0_i32_1 = arith.constant 0 : i32
    return %c0_i32, %c0_i32_0 : i32, i32
  }
  func.func @transform_4(%arg0: i32) -> (i32, i32) {
    %c0_i32 = arith.constant 0 : i32
    %c0_i32_0 = arith.constant 0 : i32
    %c0_i32_1 = arith.constant 0 : i32
    return %c0_i32, %c0_i32_0 : i32, i32
  }
  func.func @transform_5(%arg0: i32) -> (i32, i32) {
    %c0_i32 = arith.constant 0 : i32
    %c0_i32_0 = arith.constant 0 : i32
    %c0_i32_1 = arith.constant 0 : i32
    return %c0_i32, %c0_i32_0 : i32, i32
  }
  func.func @transform_6(%arg0: i32) -> (i32, i32) {
    %c0_i32 = arith.constant 0 : i32
    %c0_i32_0 = arith.constant 0 : i32
    %c0_i32_1 = arith.constant 0 : i32
    return %c0_i32, %c0_i32_0 : i32, i32
  }
  func.func @transform_7(%arg0: i32) -> (i32, i32) {
    %c0_i32 = arith.constant 0 : i32
    %c0_i32_0 = arith.constant 0 : i32
    return %arg0, %c0_i32 : i32, i32
  }
}

module attributes {stable_mosaic.version = 11 : i64} {
  func.func @_ffn_ln_kernel(%arg0: i32, %arg1: memref<16x32xf32, #tpu.memory_space<vmem>>, %arg2: memref<32x64xbf16, #tpu.memory_space<vmem>>, %arg3: memref<1x64xf32, #tpu.memory_space<vmem>>, %arg4: memref<64x32xbf16, #tpu.memory_space<vmem>>, %arg5: memref<1x32xf32, #tpu.memory_space<vmem>>, %arg6: memref<1x32xf32, #tpu.memory_space<vmem>>, %arg7: memref<1x32xf32, #tpu.memory_space<vmem>>, %arg8: memref<16x32xf32, #tpu.memory_space<vmem>>) attributes {dimension_semantics = [#tpu.dimension_semantics<parallel>], iteration_bounds = array<i64: 1>, scalar_prefetch = 0 : i64, scratch_operands = 0 : i64, tpu.core_type = #tpu.core_type<tc>, window_params = [{transform_indices = @transform_0, window_bounds = array<i64: 16, 32>}, {pipeline_mode = #tpu.pipeline_mode<synchronous>, transform_indices = @transform_1, window_bounds = array<i64: 32, 64>}, {pipeline_mode = #tpu.pipeline_mode<synchronous>, transform_indices = @transform_2, window_bounds = array<i64: 1, 64>}, {pipeline_mode = #tpu.pipeline_mode<synchronous>, transform_indices = @transform_3, window_bounds = array<i64: 64, 32>}, {pipeline_mode = #tpu.pipeline_mode<synchronous>, transform_indices = @transform_4, window_bounds = array<i64: 1, 32>}, {pipeline_mode = #tpu.pipeline_mode<synchronous>, transform_indices = @transform_5, window_bounds = array<i64: 1, 32>}, {pipeline_mode = #tpu.pipeline_mode<synchronous>, transform_indices = @transform_6, window_bounds = array<i64: 1, 32>}, {transform_indices = @transform_7, window_bounds = array<i64: 16, 32>}]} {
    %c0 = arith.constant 0 : index
    %c0_0 = arith.constant 0 : index
    %0 = vector.load %arg1[%c0, %c0_0] : memref<16x32xf32, #tpu.memory_space<vmem>>, vector<16x32xf32>
    %1 = arith.truncf %0 : vector<16x32xf32> to vector<16x32xbf16>
    %c0_1 = arith.constant 0 : index
    %c0_2 = arith.constant 0 : index
    %2 = vector.load %arg2[%c0_1, %c0_2] : memref<32x64xbf16, #tpu.memory_space<vmem>>, vector<32x64xbf16>
    %cst = arith.constant dense<0.000000e+00> : vector<16x64xf32>
    %3 = tpu.matmul %1, %2, %cst {dimension_numbers = #tpu.dot_dimension_numbers<[1], [0], [0], [1], [0, 0, 1, 1], [], []>} : vector<16x32xbf16>, vector<32x64xbf16>, vector<16x64xf32> -> vector<16x64xf32>
    %c0_3 = arith.constant 0 : index
    %c0_4 = arith.constant 0 : index
    %4 = vector.load %arg3[%c0_3, %c0_4] : memref<1x64xf32, #tpu.memory_space<vmem>>, vector<1x64xf32>
    %5 = vector.broadcast %4 : vector<1x64xf32> to vector<16x64xf32>
    %6 = arith.addf %3, %5 : vector<16x64xf32>
    %cst_5 = arith.constant 0.000000e+00 : f32
    %7 = vector.broadcast %cst_5 : f32 to vector<16x64xf32>
    %8 = arith.maximumf %6, %7 : vector<16x64xf32>
    %9 = arith.truncf %8 : vector<16x64xf32> to vector<16x64xbf16>
    %c0_6 = arith.constant 0 : index
    %c0_7 = arith.constant 0 : index
    %10 = vector.load %arg4[%c0_6, %c0_7] : memref<64x32xbf16, #tpu.memory_space<vmem>>, vector<64x32xbf16>
    %cst_8 = arith.constant dense<0.000000e+00> : vector<16x32xf32>
    %11 = tpu.matmul %9, %10, %cst_8 {dimension_numbers = #tpu.dot_dimension_numbers<[1], [0], [0], [1], [0, 0, 1, 1], [], []>} : vector<16x64xbf16>, vector<64x32xbf16>, vector<16x32xf32> -> vector<16x32xf32>
    %c0_9 = arith.constant 0 : index
    %c0_10 = arith.constant 0 : index
    %12 = vector.load %arg5[%c0_9, %c0_10] : memref<1x32xf32, #tpu.memory_space<vmem>>, vector<1x32xf32>
    %13 = vector.broadcast %12 : vector<1x32xf32> to vector<16x32xf32>
    %14 = arith.addf %11, %13 : vector<16x32xf32>
    %15 = arith.addf %0, %14 : vector<16x32xf32>
    %cst_11 = arith.constant dense<0.000000e+00> : vector<16xf32>
    %16 = vector.multi_reduction <add>, %15, %cst_11 [1] : vector<16x32xf32> to vector<16xf32>
    %17 = vector.shape_cast %16 : vector<16xf32> to vector<16x1xf32>
    %cst_12 = arith.constant 3.200000e+01 : f32
    %18 = vector.broadcast %cst_12 : f32 to vector<16x1xf32>
    %19 = arith.divf %17, %18 : vector<16x1xf32>
    %20 = vector.broadcast %19 : vector<16x1xf32> to vector<16x32xf32>
    %21 = arith.subf %15, %20 : vector<16x32xf32>
    %22 = arith.mulf %21, %21 : vector<16x32xf32>
    %cst_13 = arith.constant dense<0.000000e+00> : vector<16xf32>
    %23 = vector.multi_reduction <add>, %22, %cst_13 [1] : vector<16x32xf32> to vector<16xf32>
    %24 = vector.shape_cast %23 : vector<16xf32> to vector<16x1xf32>
    %cst_14 = arith.constant 3.200000e+01 : f32
    %25 = vector.broadcast %cst_14 : f32 to vector<16x1xf32>
    %26 = arith.divf %24, %25 : vector<16x1xf32>
    %27 = vector.broadcast %19 : vector<16x1xf32> to vector<16x32xf32>
    %28 = arith.subf %15, %27 : vector<16x32xf32>
    %cst_15 = arith.constant 9.99999997E-7 : f32
    %29 = vector.broadcast %cst_15 : f32 to vector<16x1xf32>
    %30 = arith.addf %26, %29 : vector<16x1xf32>
    %31 = math.rsqrt %30 : vector<16x1xf32>
    %32 = vector.broadcast %31 : vector<16x1xf32> to vector<16x32xf32>
    %33 = arith.mulf %28, %32 : vector<16x32xf32>
    %c0_16 = arith.constant 0 : index
    %c0_17 = arith.constant 0 : index
    %34 = vector.load %arg6[%c0_16, %c0_17] : memref<1x32xf32, #tpu.memory_space<vmem>>, vector<1x32xf32>
    %35 = vector.broadcast %34 : vector<1x32xf32> to vector<16x32xf32>
    %36 = arith.mulf %33, %35 : vector<16x32xf32>
    %c0_18 = arith.constant 0 : index
    %c0_19 = arith.constant 0 : index
    %37 = vector.load %arg7[%c0_18, %c0_19] : memref<1x32xf32, #tpu.memory_space<vmem>>, vector<1x32xf32>
    %38 = vector.broadcast %37 : vector<1x32xf32> to vector<16x32xf32>
    %39 = arith.addf %36, %38 : vector<16x32xf32>
    %c0_20 = arith.constant 0 : index
    %c0_21 = arith.constant 0 : index
    %40 = vector.load %arg8[%c0_20, %c0_21] : memref<16x32xf32, #tpu.memory_space<vmem>>, vector<16x32xf32>
    tpu.vector_store %arg8[%c0_20, %c0_21], %39 {strides = array<i32>} : memref<16x32xf32, #tpu.memory_space<vmem>>, vector<16x32xf32>,
    return
  }
  func.func @transform_0(%arg0: i32) -> (i32, i32) {
    %c0_i32 = arith.constant 0 : i32
    %c0_i32_0 = arith.constant 0 : i32
    return %arg0, %c0_i32 : i32, i32
  }
  func.func @transform_1(%arg0: i32) -> (i32, i32) {
    %c0_i32 = arith.constant 0 : i32
    %c0_i32_0 = arith.constant 0 : i32
    %c0_i32_1 = arith.constant 0 : i32
    return %c0_i32, %c0_i32_0 : i32, i32
  }
  func.func @transform_2(%arg0: i32) -> (i32, i32) {
    %c0_i32 = arith.constant 0 : i32
    %c0_i32_0 = arith.constant 0 : i32
    %c0_i32_1 = arith.constant 0 : i32
    return %c0_i32, %c0_i32_0 : i32, i32
  }
  func.func @transform_3(%arg0: i32) -> (i32, i32) {
    %c0_i32 = arith.constant 0 : i32
    %c0_i32_0 = arith.constant 0 : i32
    %c0_i32_1 = arith.constant 0 : i32
    return %c0_i32, %c0_i32_0 : i32, i32
  }
  func.func @transform_4(%arg0: i32) -> (i32, i32) {
    %c0_i32 = arith.constant 0 : i32
    %c0_i32_0 = arith.constant 0 : i32
    %c0_i32_1 = arith.constant 0 : i32
    return %c0_i32, %c0_i32_0 : i32, i32
  }
  func.func @transform_5(%arg0: i32) -> (i32, i32) {
    %c0_i32 = arith.constant 0 : i32
    %c0_i32_0 = arith.constant 0 : i32
    %c0_i32_1 = arith.constant 0 : i32
    return %c0_i32, %c0_i32_0 : i32, i32
  }
  func.func @transform_6(%arg0: i32) -> (i32, i32) {
    %c0_i32 = arith.constant 0 : i32
    %c0_i32_0 = arith.constant 0 : i32
    %c0_i32_1 = arith.constant 0 : i32
    return %c0_i32, %c0_i32_0 : i32, i32
  }
  func.func @transform_7(%arg0: i32) -> (i32, i32) {
    %c0_i32 = arith.constant 0 : i32
    %c0_i32_0 = arith.constant 0 : i32
    return %arg0, %c0_i32 : i32, i32
  }
}

module attributes {stable_mosaic.version = 11 : i64} {
  func.func @_mha_ln_kernel(%arg0: i32, %arg1: i32, %arg2: memref<1x8x32xf32, #tpu.memory_space<vmem>>, %arg3: memref<1x8x32xf32, #tpu.memory_space<vmem>>, %arg4: memref<1x1x8xf32, #tpu.memory_space<vmem>>, %arg5: memref<32x32xbf16, #tpu.memory_space<vmem>>, %arg6: memref<1x32xf32, #tpu.memory_space<vmem>>, %arg7: memref<32x64xbf16, #tpu.memory_space<vmem>>, %arg8: memref<1x64xf32, #tpu.memory_space<vmem>>, %arg9: memref<32x32xbf16, #tpu.memory_space<vmem>>, %arg10: memref<1x32xf32, #tpu.memory_space<vmem>>, %arg11: memref<1x32xf32, #tpu.memory_space<vmem>>, %arg12: memref<1x32xf32, #tpu.memory_space<vmem>>, %arg13: memref<1x8x32xf32, #tpu.memory_space<vmem>>, %arg14: memref<1x4x8x8xf32, #tpu.memory_space<vmem>>, %arg15: memref<8x32xf32, #tpu.memory_space<vmem>>) attributes {dimension_semantics = [#tpu.dimension_semantics<parallel>, #tpu.dimension_semantics<parallel>], iteration_bounds = array<i64: 2, 1>, scalar_prefetch = 0 : i64, scratch_operands = 1 : i64, tpu.core_type = #tpu.core_type<tc>, window_params = [{transform_indices = @transform_0, window_bounds = array<i64: 1, 8, 32>}, {transform_indices = @transform_1, window_bounds = array<i64: 1, 8, 32>}, {transform_indices = @transform_2, window_bounds = array<i64: 1, 1, 8>}, {pipeline_mode = #tpu.pipeline_mode<synchronous>, transform_indices = @transform_3, window_bounds = array<i64: 32, 32>}, {pipeline_mode = #tpu.pipeline_mode<synchronous>, transform_indices = @transform_4, window_bounds = array<i64: 1, 32>}, {pipeline_mode = #tpu.pipeline_mode<synchronous>, transform_indices = @transform_5, window_bounds = array<i64: 32, 64>}, {pipeline_mode = #tpu.pipeline_mode<synchronous>, transform_indices = @transform_6, window_bounds = array<i64: 1, 64>}, {pipeline_mode = #tpu.pipeline_mode<synchronous>, transform_indices = @transform_7, window_bounds = array<i64: 32, 32>}, {pipeline_mode = #tpu.pipeline_mode<synchronous>, transform_indices = @transform_8, window_bounds = array<i64: 1, 32>}, {pipeline_mode = #tpu.pipeline_mode<synchronous>, transform_indices = @transform_9, window_bounds = array<i64: 1, 32>}, {pipeline_mode = #tpu.pipeline_mode<synchronous>, transform_indices = @transform_10, window_bounds = array<i64: 1, 32>}, {transform_indices = @transform_11, window_bounds = array<i64: 1, 8, 32>}, {transform_indices = @transform_12, window_bounds = array<i64: 1, 4, 8, 8>}]} {
    %c0 = arith.constant 0 : index
    %c0_0 = arith.constant 0 : index
    %c0_1 = arith.constant 0 : index
    %0 = vector.load %arg2[%c0, %c0_0, %c0_1] : memref<1x8x32xf32, #tpu.memory_space<vmem>>, vector<1x8x32xf32>
    %1 = vector.shape_cast %0 : vector<1x8x32xf32> to vector<8x32xf32>
    %c0_2 = arith.constant 0 : index
    %c0_3 = arith.constant 0 : index
    %c0_4 = arith.constant 0 : index
    %2 = vector.load %arg3[%c0_2, %c0_3, %c0_4] : memref<1x8x32xf32, #tpu.memory_space<vmem>>, vector<1x8x32xf32>
    %3 = vector.shape_cast %2 : vector<1x8x32xf32> to vector<8x32xf32>
    %c0_5 = arith.constant 0 : index
    %c0_6 = arith.constant 0 : index
    %c0_7 = arith.constant 0 : index
    %4 = vector.load %arg4[%c0_5, %c0_6, %c0_7] : memref<1x1x8xf32, #tpu.memory_space<vmem>>, vector<1x1x8xf32>
    %5 = vector.shape_cast %4 : vector<1x1x8xf32> to vector<1x8xf32>
    %cst = arith.constant 0.000000e+00 : f32
    %6 = vector.broadcast %cst : f32 to vector<1x8xf32>
    %7 = arith.cmpf ogt, %5, %6 : vector<1x8xf32>
    %8 = vector.shape_cast %7 : vector<1x8xi1> to vector<1x8xi1>
    %9 = vector.broadcast %8 : vector<1x8xi1> to vector<8x8xi1>
    %10 = arith.truncf %1 : vector<8x32xf32> to vector<8x32xbf16>
    %c0_8 = arith.constant 0 : index
    %c0_9 = arith.constant 0 : index
    %11 = vector.load %arg5[%c0_8, %c0_9] : memref<32x32xbf16, #tpu.memory_space<vmem>>, vector<32x32xbf16>
    %cst_10 = arith.constant dense<0.000000e+00> : vector<8x32xf32>
    %12 = tpu.matmul %10, %11, %cst_10 {dimension_numbers = #tpu.dot_dimension_numbers<[1], [0], [0], [1], [0, 0, 1, 1], [], []>} : vector<8x32xbf16>, vector<32x32xbf16>, vector<8x32xf32> -> vector<8x32xf32>
    %c0_11 = arith.constant 0 : index
    %c0_12 = arith.constant 0 : index
    %13 = vector.load %arg6[%c0_11, %c0_12] : memref<1x32xf32, #tpu.memory_space<vmem>>, vector<1x32xf32>
    %14 = vector.broadcast %13 : vector<1x32xf32> to vector<8x32xf32>
    %15 = arith.addf %12, %14 : vector<8x32xf32>
    %cst_13 = arith.constant 0.353553385 : f32
    %16 = vector.broadcast %cst_13 : f32 to vector<8x32xf32>
    %17 = arith.mulf %15, %16 : vector<8x32xf32>
    %18 = arith.truncf %17 : vector<8x32xf32> to vector<8x32xbf16>
    %19 = arith.truncf %3 : vector<8x32xf32> to vector<8x32xbf16>
    %c0_14 = arith.constant 0 : index
    %c0_15 = arith.constant 0 : index
    %20 = vector.load %arg7[%c0_14, %c0_15] : memref<32x64xbf16, #tpu.memory_space<vmem>>, vector<32x64xbf16>
    %cst_16 = arith.constant dense<0.000000e+00> : vector<8x64xf32>
    %21 = tpu.matmul %19, %20, %cst_16 {dimension_numbers = #tpu.dot_dimension_numbers<[1], [0], [0], [1], [0, 0, 1, 1], [], []>} : vector<8x32xbf16>, vector<32x64xbf16>, vector<8x64xf32> -> vector<8x64xf32>
    %c0_17 = arith.constant 0 : index
    %c0_18 = arith.constant 0 : index
    %22 = vector.load %arg8[%c0_17, %c0_18] : memref<1x64xf32, #tpu.memory_space<vmem>>, vector<1x64xf32>
    %23 = vector.broadcast %22 : vector<1x64xf32> to vector<8x64xf32>
    %24 = arith.addf %21, %23 : vector<8x64xf32>
    %25 = vector.extract_strided_slice %24 {offsets = [0, 0], sizes = [8, 32], strides = [1, 1]} : vector<8x64xf32> to vector<8x32xf32>
    %26 = arith.truncf %25 : vector<8x32xf32> to vector<8x32xbf16>
    %27 = vector.extract_strided_slice %24 {offsets = [0, 32], sizes = [8, 32], strides = [1, 1]} : vector<8x64xf32> to vector<8x32xf32>
    %28 = arith.truncf %27 : vector<8x32xf32> to vector<8x32xbf16>
    %c0_19 = arith.constant 0 : index
    %c0_20 = arith.constant 0 : index
    %29 = vector.load %arg10[%c0_19, %c0_20] : memref<1x32xf32, #tpu.memory_space<vmem>>, vector<1x32xf32>
    %30 = vector.shape_cast %29 : vector<1x32xf32> to vector<1x32xf32>
    %31 = vector.broadcast %30 : vector<1x32xf32> to vector<8x32xf32>
    %c0_21 = arith.constant 0 : index
    %c0_22 = arith.constant 0 : index
    %32 = vector.load %arg15[%c0_21, %c0_22] : memref<8x32xf32, #tpu.memory_space<vmem>>, vector<8x32xf32>
    tpu.vector_store %arg15[%c0_21, %c0_22], %31 {strides = array<i32>} : memref<8x32xf32, #tpu.memory_space<vmem>>, vector<8x32xf32>,
    %33 = vector.extract_strided_slice %18 {offsets = [0, 0], sizes = [8, 8], strides = [1, 1]} : vector<8x32xbf16> to vector<8x8xbf16>
    %34 = vector.extract_strided_slice %26 {offsets = [0, 0], sizes = [8, 8], strides = [1, 1]} : vector<8x32xbf16> to vector<8x8xbf16>
    %cst_23 = arith.constant dense<0.000000e+00> : vector<8x8xf32>
    %35 = tpu.matmul %33, %34, %cst_23 {dimension_numbers = #tpu.dot_dimension_numbers<[1], [1], [0], [0], [0, 0, 1, 0], [], []>} : vector<8x8xbf16>, vector<8x8xbf16>, vector<8x8xf32> -> vector<8x8xf32>
    %cst_24 = arith.constant -1.000000e+09 : f32
    %36 = vector.broadcast %cst_24 : f32 to vector<8x8xf32>
    %37 = arith.select %9, %36, %35 : vector<8x8xi1>, vector<8x8xf32>
    %cst_25 = arith.constant dense<0xFF800000> : vector<8xf32>
    %38 = vector.multi_reduction <maximumf>, %37, %cst_25 [1] : vector<8x8xf32> to vector<8xf32>
    %39 = vector.shape_cast %38 : vector<8xf32> to vector<8x1xf32>
    %40 = vector.broadcast %39 : vector<8x1xf32> to vector<8x8xf32>
    %41 = arith.subf %37, %40 : vector<8x8xf32>
    %42 = math.exp %41 : vector<8x8xf32>
    %cst_26 = arith.constant dense<0.000000e+00> : vector<8xf32>
    %43 = vector.multi_reduction <add>, %42, %cst_26 [1] : vector<8x8xf32> to vector<8xf32>
    %44 = vector.shape_cast %43 : vector<8xf32> to vector<8x1xf32>
    %45 = vector.broadcast %44 : vector<8x1xf32> to vector<8x8xf32>
    %46 = arith.divf %42, %45 : vector<8x8xf32>
    %c0_27 = arith.constant 0 : index
    %c0_28 = arith.constant 0 : index
    %c0_29 = arith.constant 0 : index
    %c0_30 = arith.constant 0 : index
    %47 = vector.load %arg14[%c0_27, %c0_28, %c0_29, %c0_30] : memref<1x4x8x8xf32, #tpu.memory_space<vmem>>, vector<1x1x8x8xf32>
    %48 = vector.shape_cast %47 : vector<1x1x8x8xf32> to vector<8x8xf32>
    %49 = vector.shape_cast %46 : vector<8x8xf32> to vector<1x1x8x8xf32>
    tpu.vector_store %arg14[%c0_27, %c0_28, %c0_29, %c0_30], %49 {strides = array<i32>} : memref<1x4x8x8xf32, #tpu.memory_space<vmem>>, vector<1x1x8x8xf32>,
    %50 = arith.truncf %46 : vector<8x8xf32> to vector<8x8xbf16>
    %51 = vector.extract_strided_slice %28 {offsets = [0, 0], sizes = [8, 8], strides = [1, 1]} : vector<8x32xbf16> to vector<8x8xbf16>
    %cst_31 = arith.constant dense<0.000000e+00> : vector<8x8xf32>
    %52 = tpu.matmul %50, %51, %cst_31 {dimension_numbers = #tpu.dot_dimension_numbers<[1], [0], [0], [1], [0, 0, 1, 1], [], []>} : vector<8x8xbf16>, vector<8x8xbf16>, vector<8x8xf32> -> vector<8x8xf32>
    %c0_32 = arith.constant 0 : index
    %c0_33 = arith.constant 0 : index
    %53 = vector.load %arg15[%c0_32, %c0_33] : memref<8x32xf32, #tpu.memory_space<vmem>>, vector<8x32xf32>
    %54 = arith.truncf %52 : vector<8x8xf32> to vector<8x8xbf16>
    %c0_34 = arith.constant 0 : index
    %c0_35 = arith.constant 0 : index
    %55 = vector.load %arg9[%c0_34, %c0_35] : memref<32x32xbf16, #tpu.memory_space<vmem>>, vector<8x32xbf16>
    %cst_36 = arith.constant dense<0.000000e+00> : vector<8x32xf32>
    %56 = tpu.matmul %54, %55, %cst_36 {dimension_numbers = #tpu.dot_dimension_numbers<[1], [0], [0], [1], [0, 0, 1, 1], [], []>} : vector<8x8xbf16>, vector<8x32xbf16>, vector<8x32xf32> -> vector<8x32xf32>
    %57 = arith.addf %53, %56 : vector<8x32xf32>
    %c0_37 = arith.constant 0 : index
    %c0_38 = arith.constant 0 : index
    %58 = vector.load %arg15[%c0_37, %c0_38] : memref<8x32xf32, #tpu.memory_space<vmem>>, vector<8x32xf32>
    tpu.vector_store %arg15[%c0_37, %c0_38], %57 {strides = array<i32>} : memref<8x32xf32, #tpu.memory_space<vmem>>, vector<8x32xf32>,
    %59 = vector.extract_strided_slice %18 {offsets = [0, 8], sizes = [8, 8], strides = [1, 1]} : vector<8x32xbf16> to vector<8x8xbf16>
    %60 = vector.extract_strided_slice %26 {offsets = [0, 8], sizes = [8, 8], strides = [1, 1]} : vector<8x32xbf16> to vector<8x8xbf16>
    %cst_39 = arith.constant dense<0.000000e+00> : vector<8x8xf32>
    %61 = tpu.matmul %59, %60, %cst_39 {dimension_numbers = #tpu.dot_dimension_numbers<[1], [1], [0], [0], [0, 0, 1, 0], [], []>} : vector<8x8xbf16>, vector<8x8xbf16>, vector<8x8xf32> -> vector<8x8xf32>
    %cst_40 = arith.constant -1.000000e+09 : f32
    %62 = vector.broadcast %cst_40 : f32 to vector<8x8xf32>
    %63 = arith.select %9, %62, %61 : vector<8x8xi1>, vector<8x8xf32>
    %cst_41 = arith.constant dense<0xFF800000> : vector<8xf32>
    %64 = vector.multi_reduction <maximumf>, %63, %cst_41 [1] : vector<8x8xf32> to vector<8xf32>
    %65 = vector.shape_cast %64 : vector<8xf32> to vector<8x1xf32>
    %66 = vector.broadcast %65 : vector<8x1xf32> to vector<8x8xf32>
    %67 = arith.subf %63, %66 : vector<8x8xf32>
    %68 = math.exp %67 : vector<8x8xf32>
    %cst_42 = arith.constant dense<0.000000e+00> : vector<8xf32>
    %69 = vector.multi_reduction <add>, %68, %cst_42 [1] : vector<8x8xf32> to vector<8xf32>
    %70 = vector.shape_cast %69 : vector<8xf32> to vector<8x1xf32>
    %71 = vector.broadcast %70 : vector<8x1xf32> to vector<8x8xf32>
    %72 = arith.divf %68, %71 : vector<8x8xf32>
    %c0_43 = arith.constant 0 : index
    %c1 = arith.constant 1 : index
    %c0_44 = arith.constant 0 : index
    %c0_45 = arith.constant 0 : index
    %73 = vector.load %arg14[%c0_43, %c1, %c0_44, %c0_45] : memref<1x4x8x8xf32, #tpu.memory_space<vmem>>, vector<1x1x8x8xf32>
    %74 = vector.shape_cast %73 : vector<1x1x8x8xf32> to vector<8x8xf32>
    %75 = vector.shape_cast %72 : vector<8x8xf32> to vector<1x1x8x8xf32>
    tpu.vector_store %arg14[%c0_43, %c1, %c0_44, %c0_45], %75 {strides = array<i32>} : memref<1x4x8x8xf32, #tpu.memory_space<vmem>>, vector<1x1x8x8xf32>,
    %76 = arith.truncf %72 : vector<8x8xf32> to vector<8x8xbf16>
    %77 = vector.extract_strided_slice %28 {offsets = [0, 8], sizes = [8, 8], strides = [1, 1]} : vector<8x32xbf16> to vector<8x8xbf16>
    %cst_46 = arith.constant dense<0.000000e+00> : vector<8x8xf32>
    %78 = tpu.matmul %76, %77, %cst_46 {dimension_numbers = #tpu.dot_dimension_numbers<[1], [0], [0], [1], [0, 0, 1, 1], [], []>} : vector<8x8xbf16>, vector<8x8xbf16>, vector<8x8xf32> -> vector<8x8xf32>
    %c0_47 = arith.constant 0 : index
    %c0_48 = arith.constant 0 : index
    %79 = vector.load %arg15[%c0_47, %c0_48] : memref<8x32xf32, #tpu.memory_space<vmem>>, vector<8x32xf32>
    %80 = arith.truncf %78 : vector<8x8xf32> to vector<8x8xbf16>
    %c8 = arith.constant 8 : index
    %c0_49 = arith.constant 0 : index
    %81 = vector.load %arg9[%c8, %c0_49] : memref<32x32xbf16, #tpu.memory_space<vmem>>, vector<8x32xbf16>
    %cst_50 = arith.constant dense<0.000000e+00> : vector<8x32xf32>
    %82 = tpu.matmul %80, %81, %cst_50 {dimension_numbers = #tpu.dot_dimension_numbers<[1], [0], [0], [1], [0, 0, 1, 1], [], []>} : vector<8x8xbf16>, vector<8x32xbf16>, vector<8x32xf32> -> vector<8x32xf32>
    %83 = arith.addf %79, %82 : vector<8x32xf32>
    %c0_51 = arith.constant 0 : index
    %c0_52 = arith.constant 0 : index
    %84 = vector.load %arg15[%c0_51, %c0_52] : memref<8x32xf32, #tpu.memory_space<vmem>>, vector<8x32xf32>
    tpu.vector_store %arg15[%c0_51, %c0_52], %83 {strides = array<i32>} : memref<8x32xf32, #tpu.memory_space<vmem>>, vector<8x32xf32>,
    %85 = vector.extract_strided_slice %18 {offsets = [0, 16], sizes = [8, 8], strides = [1, 1]} : vector<8x32xbf16> to vector<8x8xbf16>
    %86 = vector.extract_strided_slice %26 {offsets = [0, 16], sizes = [8, 8], strides = [1, 1]} : vector<8x32xbf16> to vector<8x8xbf16>
    %cst_53 = arith.constant dense<0.000000e+00> : vector<8x8xf32>
    %87 = tpu.matmul %85, %86, %cst_53 {dimension_numbers = #tpu.dot_dimension_numbers<[1], [1], [0], [0], [0, 0, 1, 0], [], []>} : vector<8x8xbf16>, vector<8x8xbf16>, vector<8x8xf32> -> vector<8x8xf32>
    %cst_54 = arith.constant -1.000000e+09 : f32
    %88 = vector.broadcast %cst_54 : f32 to vector<8x8xf32>
    %89 = arith.select %9, %88, %87 : vector<8x8xi1>, vector<8x8xf32>
    %cst_55 = arith.constant dense<0xFF800000> : vector<8xf32>
    %90 = vector.multi_reduction <maximumf>, %89, %cst_55 [1] : vector<8x8xf32> to vector<8xf32>
    %91 = vector.shape_cast %90 : vector<8xf32> to vector<8x1xf32>
    %92 = vector.broadcast %91 : vector<8x1xf32> to vector<8x8xf32>
    %93 = arith.subf %89, %92 : vector<8x8xf32>
    %94 = math.exp %93 : vector<8x8xf32>
    %cst_56 = arith.constant dense<0.000000e+00> : vector<8xf32>
    %95 = vector.multi_reduction <add>, %94, %cst_56 [1] : vector<8x8xf32> to vector<8xf32>
    %96 = vector.shape_cast %95 : vector<8xf32> to vector<8x1xf32>
    %97 = vector.broadcast %96 : vector<8x1xf32> to vector<8x8xf32>
    %98 = arith.divf %94, %97 : vector<8x8xf32>
    %c0_57 = arith.constant 0 : index
    %c2 = arith.constant 2 : index
    %c0_58 = arith.constant 0 : index
    %c0_59 = arith.constant 0 : index
    %99 = vector.load %arg14[%c0_57, %c2, %c0_58, %c0_59] : memref<1x4x8x8xf32, #tpu.memory_space<vmem>>, vector<1x1x8x8xf32>
    %100 = vector.shape_cast %99 : vector<1x1x8x8xf32> to vector<8x8xf32>
    %101 = vector.shape_cast %98 : vector<8x8xf32> to vector<1x1x8x8xf32>
    tpu.vector_store %arg14[%c0_57, %c2, %c0_58, %c0_59], %101 {strides = array<i32>} : memref<1x4x8x8xf32, #tpu.memory_space<vmem>>, vector<1x1x8x8xf32>,
    %102 = arith.truncf %98 : vector<8x8xf32> to vector<8x8xbf16>
    %103 = vector.extract_strided_slice %28 {offsets = [0, 16], sizes = [8, 8], strides = [1, 1]} : vector<8x32xbf16> to vector<8x8xbf16>
    %cst_60 = arith.constant dense<0.000000e+00> : vector<8x8xf32>
    %104 = tpu.matmul %102, %103, %cst_60 {dimension_numbers = #tpu.dot_dimension_numbers<[1], [0], [0], [1], [0, 0, 1, 1], [], []>} : vector<8x8xbf16>, vector<8x8xbf16>, vector<8x8xf32> -> vector<8x8xf32>
    %c0_61 = arith.constant 0 : index
    %c0_62 = arith.constant 0 : index
    %105 = vector.load %arg15[%c0_61, %c0_62] : memref<8x32xf32, #tpu.memory_space<vmem>>, vector<8x32xf32>
    %106 = arith.truncf %104 : vector<8x8xf32> to vector<8x8xbf16>
    %c16 = arith.constant 16 : index
    %c0_63 = arith.constant 0 : index
    %107 = vector.load %arg9[%c16, %c0_63] : memref<32x32xbf16, #tpu.memory_space<vmem>>, vector<8x32xbf16>
    %cst_64 = arith.constant dense<0.000000e+00> : vector<8x32xf32>
    %108 = tpu.matmul %106, %107, %cst_64 {dimension_numbers = #tpu.dot_dimension_numbers<[1], [0], [0], [1], [0, 0, 1, 1], [], []>} : vector<8x8xbf16>, vector<8x32xbf16>, vector<8x32xf32> -> vector<8x32xf32>
    %109 = arith.addf %105, %108 : vector<8x32xf32>
    %c0_65 = arith.constant 0 : index
    %c0_66 = arith.constant 0 : index
    %110 = vector.load %arg15[%c0_65, %c0_66] : memref<8x32xf32, #tpu.memory_space<vmem>>, vector<8x32xf32>
    tpu.vector_store %arg15[%c0_65, %c0_66], %109 {strides = array<i32>} : memref<8x32xf32, #tpu.memory_space<vmem>>, vector<8x32xf32>,
    %111 = vector.extract_strided_slice %18 {offsets = [0, 24], sizes = [8, 8], strides = [1, 1]} : vector<8x32xbf16> to vector<8x8xbf16>
    %112 = vector.extract_strided_slice %26 {offsets = [0, 24], sizes = [8, 8], strides = [1, 1]} : vector<8x32xbf16> to vector<8x8xbf16>
    %cst_67 = arith.constant dense<0.000000e+00> : vector<8x8xf32>
    %113 = tpu.matmul %111, %112, %cst_67 {dimension_numbers = #tpu.dot_dimension_numbers<[1], [1], [0], [0], [0, 0, 1, 0], [], []>} : vector<8x8xbf16>, vector<8x8xbf16>, vector<8x8xf32> -> vector<8x8xf32>
    %cst_68 = arith.constant -1.000000e+09 : f32
    %114 = vector.broadcast %cst_68 : f32 to vector<8x8xf32>
    %115 = arith.select %9, %114, %113 : vector<8x8xi1>, vector<8x8xf32>
    %cst_69 = arith.constant dense<0xFF800000> : vector<8xf32>
    %116 = vector.multi_reduction <maximumf>, %115, %cst_69 [1] : vector<8x8xf32> to vector<8xf32>
    %117 = vector.shape_cast %116 : vector<8xf32> to vector<8x1xf32>
    %118 = vector.broadcast %117 : vector<8x1xf32> to vector<8x8xf32>
    %119 = arith.subf %115, %118 : vector<8x8xf32>
    %120 = math.exp %119 : vector<8x8xf32>
    %cst_70 = arith.constant dense<0.000000e+00> : vector<8xf32>
    %121 = vector.multi_reduction <add>, %120, %cst_70 [1] : vector<8x8xf32> to vector<8xf32>
    %122 = vector.shape_cast %121 : vector<8xf32> to vector<8x1xf32>
    %123 = vector.broadcast %122 : vector<8x1xf32> to vector<8x8xf32>
    %124 = arith.divf %120, %123 : vector<8x8xf32>
    %c0_71 = arith.constant 0 : index
    %c3 = arith.constant 3 : index
    %c0_72 = arith.constant 0 : index
    %c0_73 = arith.constant 0 : index
    %125 = vector.load %arg14[%c0_71, %c3, %c0_72, %c0_73] : memref<1x4x8x8xf32, #tpu.memory_space<vmem>>, vector<1x1x8x8xf32>
    %126 = vector.shape_cast %125 : vector<1x1x8x8xf32> to vector<8x8xf32>
    %127 = vector.shape_cast %124 : vector<8x8xf32> to vector<1x1x8x8xf32>
    tpu.vector_store %arg14[%c0_71, %c3, %c0_72, %c0_73], %127 {strides = array<i32>} : memref<1x4x8x8xf32, #tpu.memory_space<vmem>>, vector<1x1x8x8xf32>,
    %128 = arith.truncf %124 : vector<8x8xf32> to vector<8x8xbf16>
    %129 = vector.extract_strided_slice %28 {offsets = [0, 24], sizes = [8, 8], strides = [1, 1]} : vector<8x32xbf16> to vector<8x8xbf16>
    %cst_74 = arith.constant dense<0.000000e+00> : vector<8x8xf32>
    %130 = tpu.matmul %128, %129, %cst_74 {dimension_numbers = #tpu.dot_dimension_numbers<[1], [0], [0], [1], [0, 0, 1, 1], [], []>} : vector<8x8xbf16>, vector<8x8xbf16>, vector<8x8xf32> -> vector<8x8xf32>
    %c0_75 = arith.constant 0 : index
    %c0_76 = arith.constant 0 : index
    %131 = vector.load %arg15[%c0_75, %c0_76] : memref<8x32xf32, #tpu.memory_space<vmem>>, vector<8x32xf32>
    %132 = arith.truncf %130 : vector<8x8xf32> to vector<8x8xbf16>
    %c24 = arith.constant 24 : index
    %c0_77 = arith.constant 0 : index
    %133 = vector.load %arg9[%c24, %c0_77] : memref<32x32xbf16, #tpu.memory_space<vmem>>, vector<8x32xbf16>
    %cst_78 = arith.constant dense<0.000000e+00> : vector<8x32xf32>
    %134 = tpu.matmul %132, %133, %cst_78 {dimension_numbers = #tpu.dot_dimension_numbers<[1], [0], [0], [1], [0, 0, 1, 1], [], []>} : vector<8x8xbf16>, vector<8x32xbf16>, vector<8x32xf32> -> vector<8x32xf32>
    %135 = arith.addf %131, %134 : vector<8x32xf32>
    %c0_79 = arith.constant 0 : index
    %c0_80 = arith.constant 0 : index
    %136 = vector.load %arg15[%c0_79, %c0_80] : memref<8x32xf32, #tpu.memory_space<vmem>>, vector<8x32xf32>
    tpu.vector_store %arg15[%c0_79, %c0_80], %135 {strides = array<i32>} : memref<8x32xf32, #tpu.memory_space<vmem>>, vector<8x32xf32>,
    %c0_81 = arith.constant 0 : index
    %c0_82 = arith.constant 0 : index
    %137 = vector.load %arg15[%c0_81, %c0_82] : memref<8x32xf32, #tpu.memory_space<vmem>>, vector<8x32xf32>
    %138 = arith.addf %1, %137 : vector<8x32xf32>
    %cst_83 = arith.constant dense<0.000000e+00> : vector<8xf32>
    %139 = vector.multi_reduction <add>, %138, %cst_83 [1] : vector<8x32xf32> to vector<8xf32>
    %140 = vector.shape_cast %139 : vector<8xf32> to vector<8x1xf32>
    %cst_84 = arith.constant 3.200000e+01 : f32
    %141 = vector.broadcast %cst_84 : f32 to vector<8x1xf32>
    %142 = arith.divf %140, %141 : vector<8x1xf32>
    %143 = vector.broadcast %142 : vector<8x1xf32> to vector<8x32xf32>
    %144 = arith.subf %138, %143 : vector<8x32xf32>
    %145 = arith.mulf %144, %144 : vector<8x32xf32>
    %cst_85 = arith.constant dense<0.000000e+00> : vector<8xf32>
    %146 = vector.multi_reduction <add>, %145, %cst_85 [1] : vector<8x32xf32> to vector<8xf32>
    %147 = vector.shape_cast %146 : vector<8xf32> to vector<8x1xf32>
    %cst_86 = arith.constant 3.200000e+01 : f32
    %148 = vector.broadcast %cst_86 : f32 to vector<8x1xf32>
    %149 = arith.divf %147, %148 : vector<8x1xf32>
    %150 = vector.broadcast %142 : vector<8x1xf32> to vector<8x32xf32>
    %151 = arith.subf %138, %150 : vector<8x32xf32>
    %cst_87 = arith.constant 9.99999997E-7 : f32
    %152 = vector.broadcast %cst_87 : f32 to vector<8x1xf32>
    %153 = arith.addf %149, %152 : vector<8x1xf32>
    %154 = math.rsqrt %153 : vector<8x1xf32>
    %155 = vector.broadcast %154 : vector<8x1xf32> to vector<8x32xf32>
    %156 = arith.mulf %151, %155 : vector<8x32xf32>
    %c0_88 = arith.constant 0 : index
    %c0_89 = arith.constant 0 : index
    %157 = vector.load %arg11[%c0_88, %c0_89] : memref<1x32xf32, #tpu.memory_space<vmem>>, vector<1x32xf32>
    %158 = vector.broadcast %157 : vector<1x32xf32> to vector<8x32xf32>
    %159 = arith.mulf %156, %158 : vector<8x32xf32>
    %c0_90 = arith.constant 0 : index
    %c0_91 = arith.constant 0 : index
    %160 = vector.load %arg12[%c0_90, %c0_91] : memref<1x32xf32, #tpu.memory_space<vmem>>, vector<1x32xf32>
    %161 = vector.broadcast %160 : vector<1x32xf32> to vector<8x32xf32>
    %162 = arith.addf %159, %161 : vector<8x32xf32>
    %c0_92 = arith.constant 0 : index
    %c0_93 = arith.constant 0 : index
    %c0_94 = arith.constant 0 : index
    %163 = vector.load %arg13[%c0_92, %c0_93, %c0_94] : memref<1x8x32xf32, #tpu.memory_space<vmem>>, vector<1x8x32xf32>
    %164 = vector.shape_cast %163 : vector<1x8x32xf32> to vector<8x32xf32>
    %165 = vector.shape_cast %162 : vector<8x32xf32> to vector<1x8x32xf32>
    tpu.vector_store %arg13[%c0_92, %c0_93, %c0_94], %165 {strides = array<i32>} : memref<1x8x32xf32, #tpu.memory_space<vmem>>, vector<1x8x32xf32>,
    return
  }
  func.func @transform_0(%arg0: i32, %arg1: i32) -> (i32, i32, i32) {
    %c0_i32 = arith.constant 0 : i32
    %c0_i32_0 = arith.constant 0 : i32
    return %arg0, %arg1, %c0_i32 : i32, i32, i32
  }
  func.func @transform_1(%arg0: i32, %arg1: i32) -> (i32, i32, i32) {
    %c0_i32 = arith.constant 0 : i32
    %c0_i32_0 = arith.constant 0 : i32
    %c0_i32_1 = arith.constant 0 : i32
    return %arg0, %c0_i32, %c0_i32_0 : i32, i32, i32
  }
  func.func @transform_2(%arg0: i32, %arg1: i32) -> (i32, i32, i32) {
    %c0_i32 = arith.constant 0 : i32
    %c0_i32_0 = arith.constant 0 : i32
    %c0_i32_1 = arith.constant 0 : i32
    return %arg0, %c0_i32, %c0_i32_0 : i32, i32, i32
  }
  func.func @transform_3(%arg0: i32, %arg1: i32) -> (i32, i32) {
    %c0_i32 = arith.constant 0 : i32
    %c0_i32_0 = arith.constant 0 : i32
    %c0_i32_1 = arith.constant 0 : i32
    return %c0_i32, %c0_i32_0 : i32, i32
  }
  func.func @transform_4(%arg0: i32, %arg1: i32) -> (i32, i32) {
    %c0_i32 = arith.constant 0 : i32
    %c0_i32_0 = arith.constant 0 : i32
    %c0_i32_1 = arith.constant 0 : i32
    return %c0_i32, %c0_i32_0 : i32, i32
  }
  func.func @transform_5(%arg0: i32, %arg1: i32) -> (i32, i32) {
    %c0_i32 = arith.constant 0 : i32
    %c0_i32_0 = arith.constant 0 : i32
    %c0_i32_1 = arith.constant 0 : i32
    return %c0_i32, %c0_i32_0 : i32, i32
  }
  func.func @transform_6(%arg0: i32, %arg1: i32) -> (i32, i32) {
    %c0_i32 = arith.constant 0 : i32
    %c0_i32_0 = arith.constant 0 : i32
    %c0_i32_1 = arith.constant 0 : i32
    return %c0_i32, %c0_i32_0 : i32, i32
  }
  func.func @transform_7(%arg0: i32, %arg1: i32) -> (i32, i32) {
    %c0_i32 = arith.constant 0 : i32
    %c0_i32_0 = arith.constant 0 : i32
    %c0_i32_1 = arith.constant 0 : i32
    return %c0_i32, %c0_i32_0 : i32, i32
  }
  func.func @transform_8(%arg0: i32, %arg1: i32) -> (i32, i32) {
    %c0_i32 = arith.constant 0 : i32
    %c0_i32_0 = arith.constant 0 : i32
    %c0_i32_1 = arith.constant 0 : i32
    return %c0_i32, %c0_i32_0 : i32, i32
  }
  func.func @transform_9(%arg0: i32, %arg1: i32) -> (i32, i32) {
    %c0_i32 = arith.constant 0 : i32
    %c0_i32_0 = arith.constant 0 : i32
    %c0_i32_1 = arith.constant 0 : i32
    return %c0_i32, %c0_i32_0 : i32, i32
  }
  func.func @transform_10(%arg0: i32, %arg1: i32) -> (i32, i32) {
    %c0_i32 = arith.constant 0 : i32
    %c0_i32_0 = arith.constant 0 : i32
    %c0_i32_1 = arith.constant 0 : i32
    return %c0_i32, %c0_i32_0 : i32, i32
  }
  func.func @transform_11(%arg0: i32, %arg1: i32) -> (i32, i32, i32) {
    %c0_i32 = arith.constant 0 : i32
    %c0_i32_0 = arith.constant 0 : i32
    return %arg0, %arg1, %c0_i32 : i32, i32, i32
  }
  func.func @transform_12(%arg0: i32, %arg1: i32) -> (i32, i32, i32, i32) {
    %c0_i32 = arith.constant 0 : i32
    %c0_i32_0 = arith.constant 0 : i32
    %c0_i32_1 = arith.constant 0 : i32
    return %arg0, %c0_i32, %arg1, %c0_i32_0 : i32, i32, i32, i32
  }
}

module attributes {stable_mosaic.version = 11 : i64} {
  func.func @_mha_ln_kernel(%arg0: i32, %arg1: i32, %arg2: memref<1x8x32xf32, #tpu.memory_space<vmem>>, %arg3: memref<1x8x32xf32, #tpu.memory_space<vmem>>, %arg4: memref<1x1x8xf32, #tpu.memory_space<vmem>>, %arg5: memref<32x32xbf16, #tpu.memory_space<vmem>>, %arg6: memref<1x32xf32, #tpu.memory_space<vmem>>, %arg7: memref<32x64xbf16, #tpu.memory_space<vmem>>, %arg8: memref<1x64xf32, #tpu.memory_space<vmem>>, %arg9: memref<32x32xbf16, #tpu.memory_space<vmem>>, %arg10: memref<1x32xf32, #tpu.memory_space<vmem>>, %arg11: memref<1x32xf32, #tpu.memory_space<vmem>>, %arg12: memref<1x32xf32, #tpu.memory_space<vmem>>, %arg13: memref<1x8x32xf32, #tpu.memory_space<vmem>>, %arg14: memref<1x4x8x8xf32, #tpu.memory_space<vmem>>, %arg15: memref<8x32xf32, #tpu.memory_space<vmem>>) attributes {dimension_semantics = [#tpu.dimension_semantics<parallel>, #tpu.dimension_semantics<parallel>], iteration_bounds = array<i64: 2, 1>, scalar_prefetch = 0 : i64, scratch_operands = 1 : i64, tpu.core_type = #tpu.core_type<tc>, window_params = [{transform_indices = @transform_0, window_bounds = array<i64: 1, 8, 32>}, {transform_indices = @transform_1, window_bounds = array<i64: 1, 8, 32>}, {transform_indices = @transform_2, window_bounds = array<i64: 1, 1, 8>}, {pipeline_mode = #tpu.pipeline_mode<synchronous>, transform_indices = @transform_3, window_bounds = array<i64: 32, 32>}, {pipeline_mode = #tpu.pipeline_mode<synchronous>, transform_indices = @transform_4, window_bounds = array<i64: 1, 32>}, {pipeline_mode = #tpu.pipeline_mode<synchronous>, transform_indices = @transform_5, window_bounds = array<i64: 32, 64>}, {pipeline_mode = #tpu.pipeline_mode<synchronous>, transform_indices = @transform_6, window_bounds = array<i64: 1, 64>}, {pipeline_mode = #tpu.pipeline_mode<synchronous>, transform_indices = @transform_7, window_bounds = array<i64: 32, 32>}, {pipeline_mode = #tpu.pipeline_mode<synchronous>, transform_indices = @transform_8, window_bounds = array<i64: 1, 32>}, {pipeline_mode = #tpu.pipeline_mode<synchronous>, transform_indices = @transform_9, window_bounds = array<i64: 1, 32>}, {pipeline_mode = #tpu.pipeline_mode<synchronous>, transform_indices = @transform_10, window_bounds = array<i64: 1, 32>}, {transform_indices = @transform_11, window_bounds = array<i64: 1, 8, 32>}, {transform_indices = @transform_12, window_bounds = array<i64: 1, 4, 8, 8>}]} {
    %c0 = arith.constant 0 : index
    %c0_0 = arith.constant 0 : index
    %c0_1 = arith.constant 0 : index
    %0 = vector.load %arg2[%c0, %c0_0, %c0_1] : memref<1x8x32xf32, #tpu.memory_space<vmem>>, vector<1x8x32xf32>
    %1 = vector.shape_cast %0 : vector<1x8x32xf32> to vector<8x32xf32>
    %c0_2 = arith.constant 0 : index
    %c0_3 = arith.constant 0 : index
    %c0_4 = arith.constant 0 : index
    %2 = vector.load %arg3[%c0_2, %c0_3, %c0_4] : memref<1x8x32xf32, #tpu.memory_space<vmem>>, vector<1x8x32xf32>
    %3 = vector.shape_cast %2 : vector<1x8x32xf32> to vector<8x32xf32>
    %c0_5 = arith.constant 0 : index
    %c0_6 = arith.constant 0 : index
    %c0_7 = arith.constant 0 : index
    %4 = vector.load %arg4[%c0_5, %c0_6, %c0_7] : memref<1x1x8xf32, #tpu.memory_space<vmem>>, vector<1x1x8xf32>
    %5 = vector.shape_cast %4 : vector<1x1x8xf32> to vector<1x8xf32>
    %cst = arith.constant 0.000000e+00 : f32
    %6 = vector.broadcast %cst : f32 to vector<1x8xf32>
    %7 = arith.cmpf ogt, %5, %6 : vector<1x8xf32>
    %c8_i32 = arith.constant 8 : i32
    %8 = arith.muli %arg1, %c8_i32 : i32
    %9 = tpu.iota {dimensions = array<i32: 0>} : vector<8x8xi32>
    %10 = vector.broadcast %8 : i32 to vector<8x8xi32>
    %11 = arith.addi %10, %9 : vector<8x8xi32>
    %12 = tpu.iota {dimensions = array<i32: 1>} : vector<8x8xi32>
    %13 = arith.cmpi sgt, %12, %11 : vector<8x8xi32>
    %14 = vector.broadcast %7 : vector<1x8xi1> to vector<8x8xi1>
    %15 = arith.ori %14, %13 : vector<8x8xi1>
    %16 = arith.truncf %1 : vector<8x32xf32> to vector<8x32xbf16>
    %c0_8 = arith.constant 0 : index
    %c0_9 = arith.constant 0 : index
    %17 = vector.load %arg5[%c0_8, %c0_9] : memref<32x32xbf16, #tpu.memory_space<vmem>>, vector<32x32xbf16>
    %cst_10 = arith.constant dense<0.000000e+00> : vector<8x32xf32>
    %18 = tpu.matmul %16, %17, %cst_10 {dimension_numbers = #tpu.dot_dimension_numbers<[1], [0], [0], [1], [0, 0, 1, 1], [], []>} : vector<8x32xbf16>, vector<32x32xbf16>, vector<8x32xf32> -> vector<8x32xf32>
    %c0_11 = arith.constant 0 : index
    %c0_12 = arith.constant 0 : index
    %19 = vector.load %arg6[%c0_11, %c0_12] : memref<1x32xf32, #tpu.memory_space<vmem>>, vector<1x32xf32>
    %20 = vector.broadcast %19 : vector<1x32xf32> to vector<8x32xf32>
    %21 = arith.addf %18, %20 : vector<8x32xf32>
    %cst_13 = arith.constant 0.353553385 : f32
    %22 = vector.broadcast %cst_13 : f32 to vector<8x32xf32>
    %23 = arith.mulf %21, %22 : vector<8x32xf32>
    %24 = arith.truncf %23 : vector<8x32xf32> to vector<8x32xbf16>
    %25 = arith.truncf %3 : vector<8x32xf32> to vector<8x32xbf16>
    %c0_14 = arith.constant 0 : index
    %c0_15 = arith.constant 0 : index
    %26 = vector.load %arg7[%c0_14, %c0_15] : memref<32x64xbf16, #tpu.memory_space<vmem>>, vector<32x64xbf16>
    %cst_16 = arith.constant dense<0.000000e+00> : vector<8x64xf32>
    %27 = tpu.matmul %25, %26, %cst_16 {dimension_numbers = #tpu.dot_dimension_numbers<[1], [0], [0], [1], [0, 0, 1, 1], [], []>} : vector<8x32xbf16>, vector<32x64xbf16>, vector<8x64xf32> -> vector<8x64xf32>
    %c0_17 = arith.constant 0 : index
    %c0_18 = arith.constant 0 : index
    %28 = vector.load %arg8[%c0_17, %c0_18] : memref<1x64xf32, #tpu.memory_space<vmem>>, vector<1x64xf32>
    %29 = vector.broadcast %28 : vector<1x64xf32> to vector<8x64xf32>
    %30 = arith.addf %27, %29 : vector<8x64xf32>
    %31 = vector.extract_strided_slice %30 {offsets = [0, 0], sizes = [8, 32], strides = [1, 1]} : vector<8x64xf32> to vector<8x32xf32>
    %32 = arith.truncf %31 : vector<8x32xf32> to vector<8x32xbf16>
    %33 = vector.extract_strided_slice %30 {offsets = [0, 32], sizes = [8, 32], strides = [1, 1]} : vector<8x64xf32> to vector<8x32xf32>
    %34 = arith.truncf %33 : vector<8x32xf32> to vector<8x32xbf16>
    %c0_19 = arith.constant 0 : index
    %c0_20 = arith.constant 0 : index
    %35 = vector.load %arg10[%c0_19, %c0_20] : memref<1x32xf32, #tpu.memory_space<vmem>>, vector<1x32xf32>
    %36 = vector.shape_cast %35 : vector<1x32xf32> to vector<1x32xf32>
    %37 = vector.broadcast %36 : vector<1x32xf32> to vector<8x32xf32>
    %c0_21 = arith.constant 0 : index
    %c0_22 = arith.constant 0 : index
    %38 = vector.load %arg15[%c0_21, %c0_22] : memref<8x32xf32, #tpu.memory_space<vmem>>, vector<8x32xf32>
    tpu.vector_store %arg15[%c0_21, %c0_22], %37 {strides = array<i32>} : memref<8x32xf32, #tpu.memory_space<vmem>>, vector<8x32xf32>,
    %39 = vector.extract_strided_slice %24 {offsets = [0, 0], sizes = [8, 8], strides = [1, 1]} : vector<8x32xbf16> to vector<8x8xbf16>
    %40 = vector.extract_strided_slice %32 {offsets = [0, 0], sizes = [8, 8], strides = [1, 1]} : vector<8x32xbf16> to vector<8x8xbf16>
    %cst_23 = arith.constant dense<0.000000e+00> : vector<8x8xf32>
    %41 = tpu.matmul %39, %40, %cst_23 {dimension_numbers = #tpu.dot_dimension_numbers<[1], [1], [0], [0], [0, 0, 1, 0], [], []>} : vector<8x8xbf16>, vector<8x8xbf16>, vector<8x8xf32> -> vector<8x8xf32>
    %cst_24 = arith.constant -1.000000e+09 : f32
    %42 = vector.broadcast %cst_24 : f32 to vector<8x8xf32>
    %43 = arith.select %15, %42, %41 : vector<8x8xi1>, vector<8x8xf32>
    %cst_25 = arith.constant dense<0xFF800000> : vector<8xf32>
    %44 = vector.multi_reduction <maximumf>, %43, %cst_25 [1] : vector<8x8xf32> to vector<8xf32>
    %45 = vector.shape_cast %44 : vector<8xf32> to vector<8x1xf32>
    %46 = vector.broadcast %45 : vector<8x1xf32> to vector<8x8xf32>
    %47 = arith.subf %43, %46 : vector<8x8xf32>
    %48 = math.exp %47 : vector<8x8xf32>
    %cst_26 = arith.constant dense<0.000000e+00> : vector<8xf32>
    %49 = vector.multi_reduction <add>, %48, %cst_26 [1] : vector<8x8xf32> to vector<8xf32>
    %50 = vector.shape_cast %49 : vector<8xf32> to vector<8x1xf32>
    %51 = vector.broadcast %50 : vector<8x1xf32> to vector<8x8xf32>
    %52 = arith.divf %48, %51 : vector<8x8xf32>
    %c0_27 = arith.constant 0 : index
    %c0_28 = arith.constant 0 : index
    %c0_29 = arith.constant 0 : index
    %c0_30 = arith.constant 0 : index
    %53 = vector.load %arg14[%c0_27, %c0_28, %c0_29, %c0_30] : memref<1x4x8x8xf32, #tpu.memory_space<vmem>>, vector<1x1x8x8xf32>
    %54 = vector.shape_cast %53 : vector<1x1x8x8xf32> to vector<8x8xf32>
    %55 = vector.shape_cast %52 : vector<8x8xf32> to vector<1x1x8x8xf32>
    tpu.vector_store %arg14[%c0_27, %c0_28, %c0_29, %c0_30], %55 {strides = array<i32>} : memref<1x4x8x8xf32, #tpu.memory_space<vmem>>, vector<1x1x8x8xf32>,
    %56 = arith.truncf %52 : vector<8x8xf32> to vector<8x8xbf16>
    %57 = vector.extract_strided_slice %34 {offsets = [0, 0], sizes = [8, 8], strides = [1, 1]} : vector<8x32xbf16> to vector<8x8xbf16>
    %cst_31 = arith.constant dense<0.000000e+00> : vector<8x8xf32>
    %58 = tpu.matmul %56, %57, %cst_31 {dimension_numbers = #tpu.dot_dimension_numbers<[1], [0], [0], [1], [0, 0, 1, 1], [], []>} : vector<8x8xbf16>, vector<8x8xbf16>, vector<8x8xf32> -> vector<8x8xf32>
    %c0_32 = arith.constant 0 : index
    %c0_33 = arith.constant 0 : index
    %59 = vector.load %arg15[%c0_32, %c0_33] : memref<8x32xf32, #tpu.memory_space<vmem>>, vector<8x32xf32>
    %60 = arith.truncf %58 : vector<8x8xf32> to vector<8x8xbf16>
    %c0_34 = arith.constant 0 : index
    %c0_35 = arith.constant 0 : index
    %61 = vector.load %arg9[%c0_34, %c0_35] : memref<32x32xbf16, #tpu.memory_space<vmem>>, vector<8x32xbf16>
    %cst_36 = arith.constant dense<0.000000e+00> : vector<8x32xf32>
    %62 = tpu.matmul %60, %61, %cst_36 {dimension_numbers = #tpu.dot_dimension_numbers<[1], [0], [0], [1], [0, 0, 1, 1], [], []>} : vector<8x8xbf16>, vector<8x32xbf16>, vector<8x32xf32> -> vector<8x32xf32>
    %63 = arith.addf %59, %62 : vector<8x32xf32>
    %c0_37 = arith.constant 0 : index
    %c0_38 = arith.constant 0 : index
    %64 = vector.load %arg15[%c0_37, %c0_38] : memref<8x32xf32, #tpu.memory_space<vmem>>, vector<8x32xf32>
    tpu.vector_store %arg15[%c0_37, %c0_38], %63 {strides = array<i32>} : memref<8x32xf32, #tpu.memory_space<vmem>>, vector<8x32xf32>,
    %65 = vector.extract_strided_slice %24 {offsets = [0, 8], sizes = [8, 8], strides = [1, 1]} : vector<8x32xbf16> to vector<8x8xbf16>
    %66 = vector.extract_strided_slice %32 {offsets = [0, 8], sizes = [8, 8], strides = [1, 1]} : vector<8x32xbf16> to vector<8x8xbf16>
    %cst_39 = arith.constant dense<0.000000e+00> : vector<8x8xf32>
    %67 = tpu.matmul %65, %66, %cst_39 {dimension_numbers = #tpu.dot_dimension_numbers<[1], [1], [0], [0], [0, 0, 1, 0], [], []>} : vector<8x8xbf16>, vector<8x8xbf16>, vector<8x8xf32> -> vector<8x8xf32>
    %cst_40 = arith.constant -1.000000e+09 : f32
    %68 = vector.broadcast %cst_40 : f32 to vector<8x8xf32>
    %69 = arith.select %15, %68, %67 : vector<8x8xi1>, vector<8x8xf32>
    %cst_41 = arith.constant dense<0xFF800000> : vector<8xf32>
    %70 = vector.multi_reduction <maximumf>, %69, %cst_41 [1] : vector<8x8xf32> to vector<8xf32>
    %71 = vector.shape_cast %70 : vector<8xf32> to vector<8x1xf32>
    %72 = vector.broadcast %71 : vector<8x1xf32> to vector<8x8xf32>
    %73 = arith.subf %69, %72 : vector<8x8xf32>
    %74 = math.exp %73 : vector<8x8xf32>
    %cst_42 = arith.constant dense<0.000000e+00> : vector<8xf32>
    %75 = vector.multi_reduction <add>, %74, %cst_42 [1] : vector<8x8xf32> to vector<8xf32>
    %76 = vector.shape_cast %75 : vector<8xf32> to vector<8x1xf32>
    %77 = vector.broadcast %76 : vector<8x1xf32> to vector<8x8xf32>
    %78 = arith.divf %74, %77 : vector<8x8xf32>
    %c0_43 = arith.constant 0 : index
    %c1 = arith.constant 1 : index
    %c0_44 = arith.constant 0 : index
    %c0_45 = arith.constant 0 : index
    %79 = vector.load %arg14[%c0_43, %c1, %c0_44, %c0_45] : memref<1x4x8x8xf32, #tpu.memory_space<vmem>>, vector<1x1x8x8xf32>
    %80 = vector.shape_cast %79 : vector<1x1x8x8xf32> to vector<8x8xf32>
    %81 = vector.shape_cast %78 : vector<8x8xf32> to vector<1x1x8x8xf32>
    tpu.vector_store %arg14[%c0_43, %c1, %c0_44, %c0_45], %81 {strides = array<i32>} : memref<1x4x8x8xf32, #tpu.memory_space<vmem>>, vector<1x1x8x8xf32>,
    %82 = arith.truncf %78 : vector<8x8xf32> to vector<8x8xbf16>
    %83 = vector.extract_strided_slice %34 {offsets = [0, 8], sizes = [8, 8], strides = [1, 1]} : vector<8x32xbf16> to vector<8x8xbf16>
    %cst_46 = arith.constant dense<0.000000e+00> : vector<8x8xf32>
    %84 = tpu.matmul %82, %83, %cst_46 {dimension_numbers = #tpu.dot_dimension_numbers<[1], [0], [0], [1], [0, 0, 1, 1], [], []>} : vector<8x8xbf16>, vector<8x8xbf16>, vector<8x8xf32> -> vector<8x8xf32>
    %c0_47 = arith.constant 0 : index
    %c0_48 = arith.constant 0 : index
    %85 = vector.load %arg15[%c0_47, %c0_48] : memref<8x32xf32, #tpu.memory_space<vmem>>, vector<8x32xf32>
    %86 = arith.truncf %84 : vector<8x8xf32> to vector<8x8xbf16>
    %c8 = arith.constant 8 : index
    %c0_49 = arith.constant 0 : index
    %87 = vector.load %arg9[%c8, %c0_49] : memref<32x32xbf16, #tpu.memory_space<vmem>>, vector<8x32xbf16>
    %cst_50 = arith.constant dense<0.000000e+00> : vector<8x32xf32>
    %88 = tpu.matmul %86, %87, %cst_50 {dimension_numbers = #tpu.dot_dimension_numbers<[1], [0], [0], [1], [0, 0, 1, 1], [], []>} : vector<8x8xbf16>, vector<8x32xbf16>, vector<8x32xf32> -> vector<8x32xf32>
    %89 = arith.addf %85, %88 : vector<8x32xf32>
    %c0_51 = arith.constant 0 : index
    %c0_52 = arith.constant 0 : index
    %90 = vector.load %arg15[%c0_51, %c0_52] : memref<8x32xf32, #tpu.memory_space<vmem>>, vector<8x32xf32>
    tpu.vector_store %arg15[%c0_51, %c0_52], %89 {strides = array<i32>} : memref<8x32xf32, #tpu.memory_space<vmem>>, vector<8x32xf32>,
    %91 = vector.extract_strided_slice %24 {offsets = [0, 16], sizes = [8, 8], strides = [1, 1]} : vector<8x32xbf16> to vector<8x8xbf16>
    %92 = vector.extract_strided_slice %32 {offsets = [0, 16], sizes = [8, 8], strides = [1, 1]} : vector<8x32xbf16> to vector<8x8xbf16>
    %cst_53 = arith.constant dense<0.000000e+00> : vector<8x8xf32>
    %93 = tpu.matmul %91, %92, %cst_53 {dimension_numbers = #tpu.dot_dimension_numbers<[1], [1], [0], [0], [0, 0, 1, 0], [], []>} : vector<8x8xbf16>, vector<8x8xbf16>, vector<8x8xf32> -> vector<8x8xf32>
    %cst_54 = arith.constant -1.000000e+09 : f32
    %94 = vector.broadcast %cst_54 : f32 to vector<8x8xf32>
    %95 = arith.select %15, %94, %93 : vector<8x8xi1>, vector<8x8xf32>
    %cst_55 = arith.constant dense<0xFF800000> : vector<8xf32>
    %96 = vector.multi_reduction <maximumf>, %95, %cst_55 [1] : vector<8x8xf32> to vector<8xf32>
    %97 = vector.shape_cast %96 : vector<8xf32> to vector<8x1xf32>
    %98 = vector.broadcast %97 : vector<8x1xf32> to vector<8x8xf32>
    %99 = arith.subf %95, %98 : vector<8x8xf32>
    %100 = math.exp %99 : vector<8x8xf32>
    %cst_56 = arith.constant dense<0.000000e+00> : vector<8xf32>
    %101 = vector.multi_reduction <add>, %100, %cst_56 [1] : vector<8x8xf32> to vector<8xf32>
    %102 = vector.shape_cast %101 : vector<8xf32> to vector<8x1xf32>
    %103 = vector.broadcast %102 : vector<8x1xf32> to vector<8x8xf32>
    %104 = arith.divf %100, %103 : vector<8x8xf32>
    %c0_57 = arith.constant 0 : index
    %c2 = arith.constant 2 : index
    %c0_58 = arith.constant 0 : index
    %c0_59 = arith.constant 0 : index
    %105 = vector.load %arg14[%c0_57, %c2, %c0_58, %c0_59] : memref<1x4x8x8xf32, #tpu.memory_space<vmem>>, vector<1x1x8x8xf32>
    %106 = vector.shape_cast %105 : vector<1x1x8x8xf32> to vector<8x8xf32>
    %107 = vector.shape_cast %104 : vector<8x8xf32> to vector<1x1x8x8xf32>
    tpu.vector_store %arg14[%c0_57, %c2, %c0_58, %c0_59], %107 {strides = array<i32>} : memref<1x4x8x8xf32, #tpu.memory_space<vmem>>, vector<1x1x8x8xf32>,
    %108 = arith.truncf %104 : vector<8x8xf32> to vector<8x8xbf16>
    %109 = vector.extract_strided_slice %34 {offsets = [0, 16], sizes = [8, 8], strides = [1, 1]} : vector<8x32xbf16> to vector<8x8xbf16>
    %cst_60 = arith.constant dense<0.000000e+00> : vector<8x8xf32>
    %110 = tpu.matmul %108, %109, %cst_60 {dimension_numbers = #tpu.dot_dimension_numbers<[1], [0], [0], [1], [0, 0, 1, 1], [], []>} : vector<8x8xbf16>, vector<8x8xbf16>, vector<8x8xf32> -> vector<8x8xf32>
    %c0_61 = arith.constant 0 : index
    %c0_62 = arith.constant 0 : index
    %111 = vector.load %arg15[%c0_61, %c0_62] : memref<8x32xf32, #tpu.memory_space<vmem>>, vector<8x32xf32>
    %112 = arith.truncf %110 : vector<8x8xf32> to vector<8x8xbf16>
    %c16 = arith.constant 16 : index
    %c0_63 = arith.constant 0 : index
    %113 = vector.load %arg9[%c16, %c0_63] : memref<32x32xbf16, #tpu.memory_space<vmem>>, vector<8x32xbf16>
    %cst_64 = arith.constant dense<0.000000e+00> : vector<8x32xf32>
    %114 = tpu.matmul %112, %113, %cst_64 {dimension_numbers = #tpu.dot_dimension_numbers<[1], [0], [0], [1], [0, 0, 1, 1], [], []>} : vector<8x8xbf16>, vector<8x32xbf16>, vector<8x32xf32> -> vector<8x32xf32>
    %115 = arith.addf %111, %114 : vector<8x32xf32>
    %c0_65 = arith.constant 0 : index
    %c0_66 = arith.constant 0 : index
    %116 = vector.load %arg15[%c0_65, %c0_66] : memref<8x32xf32, #tpu.memory_space<vmem>>, vector<8x32xf32>
    tpu.vector_store %arg15[%c0_65, %c0_66], %115 {strides = array<i32>} : memref<8x32xf32, #tpu.memory_space<vmem>>, vector<8x32xf32>,
    %117 = vector.extract_strided_slice %24 {offsets = [0, 24], sizes = [8, 8], strides = [1, 1]} : vector<8x32xbf16> to vector<8x8xbf16>
    %118 = vector.extract_strided_slice %32 {offsets = [0, 24], sizes = [8, 8], strides = [1, 1]} : vector<8x32xbf16> to vector<8x8xbf16>
    %cst_67 = arith.constant dense<0.000000e+00> : vector<8x8xf32>
    %119 = tpu.matmul %117, %118, %cst_67 {dimension_numbers = #tpu.dot_dimension_numbers<[1], [1], [0], [0], [0, 0, 1, 0], [], []>} : vector<8x8xbf16>, vector<8x8xbf16>, vector<8x8xf32> -> vector<8x8xf32>
    %cst_68 = arith.constant -1.000000e+09 : f32
    %120 = vector.broadcast %cst_68 : f32 to vector<8x8xf32>
    %121 = arith.select %15, %120, %119 : vector<8x8xi1>, vector<8x8xf32>
    %cst_69 = arith.constant dense<0xFF800000> : vector<8xf32>
    %122 = vector.multi_reduction <maximumf>, %121, %cst_69 [1] : vector<8x8xf32> to vector<8xf32>
    %123 = vector.shape_cast %122 : vector<8xf32> to vector<8x1xf32>
    %124 = vector.broadcast %123 : vector<8x1xf32> to vector<8x8xf32>
    %125 = arith.subf %121, %124 : vector<8x8xf32>
    %126 = math.exp %125 : vector<8x8xf32>
    %cst_70 = arith.constant dense<0.000000e+00> : vector<8xf32>
    %127 = vector.multi_reduction <add>, %126, %cst_70 [1] : vector<8x8xf32> to vector<8xf32>
    %128 = vector.shape_cast %127 : vector<8xf32> to vector<8x1xf32>
    %129 = vector.broadcast %128 : vector<8x1xf32> to vector<8x8xf32>
    %130 = arith.divf %126, %129 : vector<8x8xf32>
    %c0_71 = arith.constant 0 : index
    %c3 = arith.constant 3 : index
    %c0_72 = arith.constant 0 : index
    %c0_73 = arith.constant 0 : index
    %131 = vector.load %arg14[%c0_71, %c3, %c0_72, %c0_73] : memref<1x4x8x8xf32, #tpu.memory_space<vmem>>, vector<1x1x8x8xf32>
    %132 = vector.shape_cast %131 : vector<1x1x8x8xf32> to vector<8x8xf32>
    %133 = vector.shape_cast %130 : vector<8x8xf32> to vector<1x1x8x8xf32>
    tpu.vector_store %arg14[%c0_71, %c3, %c0_72, %c0_73], %133 {strides = array<i32>} : memref<1x4x8x8xf32, #tpu.memory_space<vmem>>, vector<1x1x8x8xf32>,
    %134 = arith.truncf %130 : vector<8x8xf32> to vector<8x8xbf16>
    %135 = vector.extract_strided_slice %34 {offsets = [0, 24], sizes = [8, 8], strides = [1, 1]} : vector<8x32xbf16> to vector<8x8xbf16>
    %cst_74 = arith.constant dense<0.000000e+00> : vector<8x8xf32>
    %136 = tpu.matmul %134, %135, %cst_74 {dimension_numbers = #tpu.dot_dimension_numbers<[1], [0], [0], [1], [0, 0, 1, 1], [], []>} : vector<8x8xbf16>, vector<8x8xbf16>, vector<8x8xf32> -> vector<8x8xf32>
    %c0_75 = arith.constant 0 : index
    %c0_76 = arith.constant 0 : index
    %137 = vector.load %arg15[%c0_75, %c0_76] : memref<8x32xf32, #tpu.memory_space<vmem>>, vector<8x32xf32>
    %138 = arith.truncf %136 : vector<8x8xf32> to vector<8x8xbf16>
    %c24 = arith.constant 24 : index
    %c0_77 = arith.constant 0 : index
    %139 = vector.load %arg9[%c24, %c0_77] : memref<32x32xbf16, #tpu.memory_space<vmem>>, vector<8x32xbf16>
    %cst_78 = arith.constant dense<0.000000e+00> : vector<8x32xf32>
    %140 = tpu.matmul %138, %139, %cst_78 {dimension_numbers = #tpu.dot_dimension_numbers<[1], [0], [0], [1], [0, 0, 1, 1], [], []>} : vector<8x8xbf16>, vector<8x32xbf16>, vector<8x32xf32> -> vector<8x32xf32>
    %141 = arith.addf %137, %140 : vector<8x32xf32>
    %c0_79 = arith.constant 0 : index
    %c0_80 = arith.constant 0 : index
    %142 = vector.load %arg15[%c0_79, %c0_80] : memref<8x32xf32, #tpu.memory_space<vmem>>, vector<8x32xf32>
    tpu.vector_store %arg15[%c0_79, %c0_80], %141 {strides = array<i32>} : memref<8x32xf32, #tpu.memory_space<vmem>>, vector<8x32xf32>,
    %c0_81 = arith.constant 0 : index
    %c0_82 = arith.constant 0 : index
    %143 = vector.load %arg15[%c0_81, %c0_82] : memref<8x32xf32, #tpu.memory_space<vmem>>, vector<8x32xf32>
    %144 = arith.addf %1, %143 : vector<8x32xf32>
    %cst_83 = arith.constant dense<0.000000e+00> : vector<8xf32>
    %145 = vector.multi_reduction <add>, %144, %cst_83 [1] : vector<8x32xf32> to vector<8xf32>
    %146 = vector.shape_cast %145 : vector<8xf32> to vector<8x1xf32>
    %cst_84 = arith.constant 3.200000e+01 : f32
    %147 = vector.broadcast %cst_84 : f32 to vector<8x1xf32>
    %148 = arith.divf %146, %147 : vector<8x1xf32>
    %149 = vector.broadcast %148 : vector<8x1xf32> to vector<8x32xf32>
    %150 = arith.subf %144, %149 : vector<8x32xf32>
    %151 = arith.mulf %150, %150 : vector<8x32xf32>
    %cst_85 = arith.constant dense<0.000000e+00> : vector<8xf32>
    %152 = vector.multi_reduction <add>, %151, %cst_85 [1] : vector<8x32xf32> to vector<8xf32>
    %153 = vector.shape_cast %152 : vector<8xf32> to vector<8x1xf32>
    %cst_86 = arith.constant 3.200000e+01 : f32
    %154 = vector.broadcast %cst_86 : f32 to vector<8x1xf32>
    %155 = arith.divf %153, %154 : vector<8x1xf32>
    %156 = vector.broadcast %148 : vector<8x1xf32> to vector<8x32xf32>
    %157 = arith.subf %144, %156 : vector<8x32xf32>
    %cst_87 = arith.constant 9.99999997E-7 : f32
    %158 = vector.broadcast %cst_87 : f32 to vector<8x1xf32>
    %159 = arith.addf %155, %158 : vector<8x1xf32>
    %160 = math.rsqrt %159 : vector<8x1xf32>
    %161 = vector.broadcast %160 : vector<8x1xf32> to vector<8x32xf32>
    %162 = arith.mulf %157, %161 : vector<8x32xf32>
    %c0_88 = arith.constant 0 : index
    %c0_89 = arith.constant 0 : index
    %163 = vector.load %arg11[%c0_88, %c0_89] : memref<1x32xf32, #tpu.memory_space<vmem>>, vector<1x32xf32>
    %164 = vector.broadcast %163 : vector<1x32xf32> to vector<8x32xf32>
    %165 = arith.mulf %162, %164 : vector<8x32xf32>
    %c0_90 = arith.constant 0 : index
    %c0_91 = arith.constant 0 : index
    %166 = vector.load %arg12[%c0_90, %c0_91] : memref<1x32xf32, #tpu.memory_space<vmem>>, vector<1x32xf32>
    %167 = vector.broadcast %166 : vector<1x32xf32> to vector<8x32xf32>
    %168 = arith.addf %165, %167 : vector<8x32xf32>
    %c0_92 = arith.constant 0 : index
    %c0_93 = arith.constant 0 : index
    %c0_94 = arith.constant 0 : index
    %169 = vector.load %arg13[%c0_92, %c0_93, %c0_94] : memref<1x8x32xf32, #tpu.memory_space<vmem>>, vector<1x8x32xf32>
    %170 = vector.shape_cast %169 : vector<1x8x32xf32> to vector<8x32xf32>
    %171 = vector.shape_cast %168 : vector<8x32xf32> to vector<1x8x32xf32>
    tpu.vector_store %arg13[%c0_92, %c0_93, %c0_94], %171 {strides = array<i32>} : memref<1x8x32xf32, #tpu.memory_space<vmem>>, vector<1x8x32xf32>,
    return
  }
  func.func @transform_0(%arg0: i32, %arg1: i32) -> (i32, i32, i32) {
    %c0_i32 = arith.constant 0 : i32
    %c0_i32_0 = arith.constant 0 : i32
    return %arg0, %arg1, %c0_i32 : i32, i32, i32
  }
  func.func @transform_1(%arg0: i32, %arg1: i32) -> (i32, i32, i32) {
    %c0_i32 = arith.constant 0 : i32
    %c0_i32_0 = arith.constant 0 : i32
    %c0_i32_1 = arith.constant 0 : i32
    return %arg0, %c0_i32, %c0_i32_0 : i32, i32, i32
  }
  func.func @transform_2(%arg0: i32, %arg1: i32) -> (i32, i32, i32) {
    %c0_i32 = arith.constant 0 : i32
    %c0_i32_0 = arith.constant 0 : i32
    %c0_i32_1 = arith.constant 0 : i32
    return %arg0, %c0_i32, %c0_i32_0 : i32, i32, i32
  }
  func.func @transform_3(%arg0: i32, %arg1: i32) -> (i32, i32) {
    %c0_i32 = arith.constant 0 : i32
    %c0_i32_0 = arith.constant 0 : i32
    %c0_i32_1 = arith.constant 0 : i32
    return %c0_i32, %c0_i32_0 : i32, i32
  }
  func.func @transform_4(%arg0: i32, %arg1: i32) -> (i32, i32) {
    %c0_i32 = arith.constant 0 : i32
    %c0_i32_0 = arith.constant 0 : i32
    %c0_i32_1 = arith.constant 0 : i32
    return %c0_i32, %c0_i32_0 : i32, i32
  }
  func.func @transform_5(%arg0: i32, %arg1: i32) -> (i32, i32) {
    %c0_i32 = arith.constant 0 : i32
    %c0_i32_0 = arith.constant 0 : i32
    %c0_i32_1 = arith.constant 0 : i32
    return %c0_i32, %c0_i32_0 : i32, i32
  }
  func.func @transform_6(%arg0: i32, %arg1: i32) -> (i32, i32) {
    %c0_i32 = arith.constant 0 : i32
    %c0_i32_0 = arith.constant 0 : i32
    %c0_i32_1 = arith.constant 0 : i32
    return %c0_i32, %c0_i32_0 : i32, i32
  }
  func.func @transform_7(%arg0: i32, %arg1: i32) -> (i32, i32) {
    %c0_i32 = arith.constant 0 : i32
    %c0_i32_0 = arith.constant 0 : i32
    %c0_i32_1 = arith.constant 0 : i32
    return %c0_i32, %c0_i32_0 : i32, i32
  }
  func.func @transform_8(%arg0: i32, %arg1: i32) -> (i32, i32) {
    %c0_i32 = arith.constant 0 : i32
    %c0_i32_0 = arith.constant 0 : i32
    %c0_i32_1 = arith.constant 0 : i32
    return %c0_i32, %c0_i32_0 : i32, i32
  }
  func.func @transform_9(%arg0: i32, %arg1: i32) -> (i32, i32) {
    %c0_i32 = arith.constant 0 : i32
    %c0_i32_0 = arith.constant 0 : i32
    %c0_i32_1 = arith.constant 0 : i32
    return %c0_i32, %c0_i32_0 : i32, i32
  }
  func.func @transform_10(%arg0: i32, %arg1: i32) -> (i32, i32) {
    %c0_i32 = arith.constant 0 : i32
    %c0_i32_0 = arith.constant 0 : i32
    %c0_i32_1 = arith.constant 0 : i32
    return %c0_i32, %c0_i32_0 : i32, i32
  }
  func.func @transform_11(%arg0: i32, %arg1: i32) -> (i32, i32, i32) {
    %c0_i32 = arith.constant 0 : i32
    %c0_i32_0 = arith.constant 0 : i32
    return %arg0, %arg1, %c0_i32 : i32, i32, i32
  }
  func.func @transform_12(%arg0: i32, %arg1: i32) -> (i32, i32, i32, i32) {
    %c0_i32 = arith.constant 0 : i32
    %c0_i32_0 = arith.constant 0 : i32
    %c0_i32_1 = arith.constant 0 : i32
    return %arg0, %c0_i32, %arg1, %c0_i32_0 : i32, i32, i32, i32
  }
}

</mosaic_0001>

<bundles_post_ra>
// kernel: decoder_forward.11
= control target key start
LH: loop header
LB: loop body
LE: loop exit
PB: predicated region body
PF: predicated region fallthrough
CT: control target
= control target key end

     0   :  { %v328_v1 = vmov 0.0   ;;  %vm329_vm0 = vmmov 0   ;;  %vm54_vm1 = vcmask 261120   ;;  %s419_s0 = inlined_call_operand.vmem [shape: f32[16,32], index: 0, kind: input, shape index: {}]   ;;  %s420_s1 = inlined_call_operand.vmem [shape: bf16[32,64], index: 1, kind: input, shape index: {}]   ;;  %s421_s2 = inlined_call_operand.vmem [shape: f32[1,64], index: 2, kind: input, shape index: {}]   ;;  %s422_s3 = inlined_call_operand.vmem [shape: bf16[64,32], index: 3, kind: input, shape index: {}]   ;;  %s423_s4 = inlined_call_operand.vmem [shape: f32[1,32], index: 4, kind: input, shape index: {}]   ;;  %s424_s5 = inlined_call_operand.vmem [shape: f32[1,32], index: 5, kind: input, shape index: {}]   ;;  %s425_s6 = inlined_call_operand.vmem [shape: f32[1,32], index: 6, kind: input, shape index: {}]   ;;  %s426_s7 = inlined_call_operand.hbm [shape: f32[16,32], index: 7, kind: output, shape index: {}]  }
   0x1   :  { %v296_v0 = vld [vmem:[%s420_s1 + $0x8] sm:$0xff]   ;;  %271 = vmatprep.subr.bf16.mxu0 %v328_v1  ;;  %v297_v2 = vld [vmem:[%s420_s1] sm:$0xff]   ;;  %279 = vmatprep.subr.bf16.mxu1 %v328_v1  ;;  %v298_v5 = vld [vmem:[%s422_s3 + $0x18] sm:$0xff]  }
   0x2   :  { %272 = vmatpush3.bf16.msra.mxu0 %v296_v0  ;;  %275 = vmatprep.mubr.msk.bf16.mxu0 %vm329_vm0, %v328_v1  ;;  %v28_v3 = vld [vmem:[%s419_s0] sm:$0xff]  ;;  %v29_v4 = vld [vmem:[%s419_s0 + $0x8] sm:$0xff] }
   0x3   :  { %273 = vmatprep.subr.bf16.mxu0 %v328_v1  ;;  %287 = vmatprep.mubr.msk.bf16.mxu1 %vm329_vm0, %v328_v1  ;;  %v30_v6 = vpack.c.bf16 %v29_v4, %v28_v3 }
   0x4   :  { %280 = vmatpush3.bf16.msra.mxu1 %v298_v5 }
   0x5   :  { %281 = vmatprep.subr.bf16.mxu1 %v328_v1 }
   0x6   :  { %274 = vmatpush3.bf16.msra.mxu0 %v297_v2 }
   0x7   :  { %12 = vsyncpa [#allocation3], 0  ;;  %v299_v7 = vld [vmem:[%s422_s3 + $0x10] sm:$0xff]   ;;  %v300_v8 = vld [vmem:[%s422_s3 + $0x8] sm:$0xff]   ;;  %vm141_vm2 = vcmask 523264   ;;  %s330_s20 = smov [#allocation2]  }
   0x8   :  { %282 = vmatpush3.bf16.msra.mxu1 %v299_v7  ;;  %v301_v9 = vld [vmem:[%s422_s3] sm:$0xff]   ;;  %s240_s21 = sshll.u32 %s330_s20, 4  ;;  %s241_s21 = int_to_ptr.vmem [resolvable:$true] %s240_s21 }
   0x9   :  { %276 = vmatmul.mubr.msk.bf16.vlgmr.msra.gmra.mxu0 %vm54_vm1, %v30_v6  ;;  %283 = vmatprep.subr.bf16.mxu1 %v328_v1  ;;  %v251_v10 = vld [vmem:[%s421_s2] ss:$0 sm:$0xff]  ;;  %s306_s22 = scalar_lea.vmem %s241_s21, 256  ;;  %p311_p1 = scmp.lt.s32.totalorder %s241_s21, %s241_s21 }
   0xa   :  { %v255_v20 = vld [vmem:[%s423_s4] ss:$0 sm:$0xff]  ;;  %p307_p0 = scmp.ne.s32.totalorder %s241_s21, %s306_s22  ;;  %p312_p2 = scmp.lt.s32.totalorder %s306_s22, %s306_s22 }
   0xb   :  { %v261_v48 = vld [vmem:[%s424_s5] ss:$0 sm:$0xff] }
   0xc   :  { %284 = vmatpush3.bf16.msra.mxu1 %v300_v8  ;;  %v262_v50 = vld [vmem:[%s425_s6] ss:$0 sm:$0xff]  ;;  %p313_p3 = por %p312_p2, %p311_p1 }
   0xd   :  { %285 = vmatprep.subr.bf16.mxu1 %v328_v1 }
   0xe   :  { %p314_p4 = pnand %p313_p3, %p307_p0 }
  0x10   :  { %286 = vmatpush3.bf16.msra.mxu1 %v301_v9 }
  0xc9   :  { %v92_v11 = vpop.f32.mrf.mxu0 }
  0xca   :  { %v93_v13 = vadd.f32 %v251_v10, %v92_v11 }
  0xcb   :  { %v277_v12 = vpop.f32.mrf.mxu0 }
  0xcc   :  { %v99_v17 = vmax.f32 %v93_v13, 0.0 }
  0xcd   :  { %v95_v14 = vpop.f32.mrf.mxu0 }
  0xce   :  { %v96_v15 = vadd.f32 %v251_v10, %v95_v14 }
  0xcf   :  { %v278_v16 = vpop.f32.mrf.mxu0 }
  0xd0   :  { %v100_v18 = vmax.f32 %v96_v15, 0.0 }
  0xd2   :  { %v101_v19 = vpack.c.bf16 %v100_v18, %v99_v17 }
  0xd4   :  { %288 = vmatmul.mubr.msk.bf16.vlgmr.msra.gmra.mxu1 %vm141_vm2, %v101_v19 }
 0x194   :  { %v179_v21 = vpop.f32.mrf.mxu1 }
 0x195   :  { %v180_v22 = vadd.f32 %v255_v20, %v179_v21 }
 0x196   :  { %v289_v23 = vpop.f32.mrf.mxu1 }
 0x197   :  { %v186_v24 = vadd.f32 %v180_v22, %v28_v3 }
 0x198   :  { %v182_v25 = vpop.f32.mrf.mxu1 }
 0x199   :  { %v183_v26 = vadd.f32 %v255_v20, %v182_v25  ;;  %v188_v27 = vsel %vm54_vm1, %v186_v24, 0.0 }
 0x19a   :  { %189 = vadd.xlane.f32.xlu0 %v188_v27  ;;  %v290_v28 = vpop.f32.mrf.mxu1 }
 0x19b   :  { %v187_v29 = vadd.f32 %v183_v26, %v29_v4 }
 0x19d   :  { %v191_v30 = vsel %vm54_vm1, %v187_v29, 0.0 }
 0x19e   :  { %192 = vadd.xlane.f32.xlu0 %v191_v30 }
 0x223   :  { %v190_v31 = vpop.xlane.xlu0 %189 }
 0x224   :  { %v195_v32 = vmul.f32 0.03125, %v190_v31 }
 0x226   :  { %v197_v33 = vsub.f32 %v186_v24, %v195_v32 }
 0x227   :  { %v193_v34 = vpop.xlane.xlu0 %192 }
 0x228   :  { %v196_v35 = vmul.f32 0.03125, %v193_v34  ;;  %v199_v36 = vmul.f32 %v197_v33, %v197_v33 }
 0x22a   :  { %v198_v37 = vsub.f32 %v187_v29, %v196_v35  ;;  %v201_v38 = vsel %vm54_vm1, %v199_v36, 0.0 }
 0x22b   :  { %202 = vadd.xlane.f32.xlu1 %v201_v38 }
 0x22c   :  { %v200_v39 = vmul.f32 %v198_v37, %v198_v37 }
 0x22e   :  { %v204_v40 = vsel %vm54_vm1, %v200_v39, 0.0 }
 0x22f   :  { %205 = vadd.xlane.f32.xlu1 %v204_v40 }
 0x2b4   :  { %v203_v41 = vpop.xlane.xlu1 %202 }
 0x2b5   :  { %v207_v42 = vmul.f32 0.03125, %v203_v41 }
 0x2b7   :  { %v209_v43 = vadd.f32 1e-06, %v207_v42 }
 0x2b8   :  { %v206_v44 = vpop.xlane.xlu1 %205 }
 0x2b9   :  { %302 = vrsqrt.f32 %v209_v43  ;;  %v208_v45 = vmul.f32 0.03125, %v206_v44 }
 0x2bb   :  { %v210_v46 = vadd.f32 1e-06, %v208_v45 }
 0x2bd   :  { %304 = vrsqrt.f32 %v210_v46 }
 0x2c6   :  { %v303_v47 = vpop.eup %302 }
 0x2c7   :  { %v213_v49 = vmul.f32 %v303_v47, %v197_v33 }
 0x2c9   :  { %v222_v51 = vmul.f32 %v261_v48, %v213_v49 }
 0x2ca   :  { %v305_v52 = vpop.eup %304 }
 0x2cb   :  { %v214_v53 = vmul.f32 %v305_v52, %v198_v37  ;;  %v231_v54 = vadd.f32 %v262_v50, %v222_v51 }
 0x2cd   :  { %v223_v55 = vmul.f32 %v261_v48, %v214_v53  ;;  %233 = vst.msk [vmem:[#allocation2] sm:$0xff] %vm54_vm1, %v231_v54 }
 0x2cf   :  { %v232_v56 = vadd.f32 %v262_v50, %v223_v55 }
 0x2d1   :  { %234 = vst.msk [vmem:[#allocation2 + $0x8] sm:$0xff] %vm54_vm1, %v232_v56 }
 0x2d2   :  { %317 = shalt.err (!%p314_p4)
}
 0x2d3   :  { %s331_s5 = smov 128   ;;  %s332_s6 = smov 8  }
 0x2d4   :  { %246 = dma.vmem_to_hbm [thread:$0]  %s241_s21, 256, %s426_s7, [#allocation3], %s331_s5, %s331_s5, %s332_s6  }
 0x2d5   :  { %326 = dma.done.wait [#allocation3], 256  }
 0x2d6   :  { %327 = vsyncadd [#allocation3], 4294967040 }
 0x2d7   :  { %250 = vsyncpa [#allocation3], 1 }

// kernel: decoder_forward.8
= control target key start
LH: loop header
LB: loop body
LE: loop exit
PB: predicated region body
PF: predicated region fallthrough
CT: control target
= control target key end

     0   :  { %v290_v0 = vmov 0.0   ;;  %vm291_vm0 = vmmov 0   ;;  %vm53_vm1 = vcmask 261120   ;;  %vm140_vm2 = vcmask 523264   ;;  %s381_s1 = inlined_call_operand.vmem [shape: bf16[32,64], index: 1, kind: input, shape index: {}]   ;;  %s382_s0 = inlined_call_operand.vmem [shape: f32[16,32], index: 0, kind: input, shape index: {}]   ;;  %s383_s3 = inlined_call_operand.vmem [shape: bf16[64,32], index: 3, kind: input, shape index: {}]   ;;  %s384_s2 = inlined_call_operand.vmem [shape: f32[1,64], index: 2, kind: input, shape index: {}]   ;;  %s385_s4 = inlined_call_operand.vmem [shape: f32[1,32], index: 4, kind: input, shape index: {}]   ;;  %s386_s5 = inlined_call_operand.vmem [shape: f32[1,32], index: 5, kind: input, shape index: {}]   ;;  %s387_s6 = inlined_call_operand.vmem [shape: f32[1,32], index: 6, kind: input, shape index: {}]   ;;  %s388_s7 = inlined_call_operand.vmem [shape: f32[16,32], index: 7, kind: output, shape index: {}]  }
   0x1   :  { %258 = vmatprep.subr.bf16.mxu0 %v290_v0  ;;  %v280_v1 = vld [vmem:[%s381_s1 + $0x8] sm:$0xff]   ;;  %262 = vmatprep.mubr.msk.bf16.mxu0 %vm291_vm0, %v290_v0  ;;  %v281_v2 = vld [vmem:[%s381_s1] sm:$0xff]   ;;  %v282_v5 = vld [vmem:[%s383_s3 + $0x18] sm:$0xff]  }
   0x2   :  { %266 = vmatprep.subr.bf16.mxu1 %v290_v0  ;;  %274 = vmatprep.mubr.msk.bf16.mxu1 %vm291_vm0, %v290_v0  ;;  %v27_v3 = vld [vmem:[%s382_s0] sm:$0xff]  ;;  %v28_v4 = vld [vmem:[%s382_s0 + $0x8] sm:$0xff]  ;;  %v283_v7 = vld [vmem:[%s383_s3 + $0x10] sm:$0xff]  }
   0x3   :  { %259 = vmatpush3.bf16.msra.mxu0 %v280_v1  ;;  %v29_v6 = vpack.c.bf16 %v28_v4, %v27_v3  ;;  %267 = vmatpush3.bf16.msra.mxu1 %v282_v5  ;;  %v284_v8 = vld [vmem:[%s383_s3 + $0x8] sm:$0xff]   ;;  %v285_v9 = vld [vmem:[%s383_s3] sm:$0xff]  }
   0x4   :  { %260 = vmatprep.subr.bf16.mxu0 %v290_v0  ;;  %268 = vmatprep.subr.bf16.mxu1 %v290_v0  ;;  %v238_v10 = vld [vmem:[%s384_s2] ss:$0 sm:$0xff] }
   0x5   :  { %v242_v20 = vld [vmem:[%s385_s4] ss:$0 sm:$0xff] }
   0x6   :  { %v248_v48 = vld [vmem:[%s386_s5] ss:$0 sm:$0xff] }
   0x7   :  { %261 = vmatpush3.bf16.msra.mxu0 %v281_v2  ;;  %269 = vmatpush3.bf16.msra.mxu1 %v283_v7  ;;  %v249_v50 = vld [vmem:[%s387_s6] ss:$0 sm:$0xff] }
   0x8   :  { %270 = vmatprep.subr.bf16.mxu1 %v290_v0 }
   0xa   :  { %263 = vmatmul.mubr.msk.bf16.vlgmr.msra.gmra.mxu0 %vm53_vm1, %v29_v6 }
   0xb   :  { %271 = vmatpush3.bf16.msra.mxu1 %v284_v8 }
   0xc   :  { %272 = vmatprep.subr.bf16.mxu1 %v290_v0 }
   0xf   :  { %273 = vmatpush3.bf16.msra.mxu1 %v285_v9 }
  0xca   :  { %v91_v11 = vpop.f32.mrf.mxu0 }
  0xcb   :  { %v92_v13 = vadd.f32 %v238_v10, %v91_v11 }
  0xcc   :  { %v264_v12 = vpop.f32.mrf.mxu0 }
  0xcd   :  { %v98_v17 = vmax.f32 %v92_v13, 0.0 }
  0xce   :  { %v94_v14 = vpop.f32.mrf.mxu0 }
  0xcf   :  { %v95_v15 = vadd.f32 %v238_v10, %v94_v14 }
  0xd0   :  { %v265_v16 = vpop.f32.mrf.mxu0 }
  0xd1   :  { %v99_v18 = vmax.f32 %v95_v15, 0.0 }
  0xd3   :  { %v100_v19 = vpack.c.bf16 %v99_v18, %v98_v17 }
  0xd5   :  { %275 = vmatmul.mubr.msk.bf16.vlgmr.msra.gmra.mxu1 %vm140_vm2, %v100_v19 }
 0x195   :  { %v178_v21 = vpop.f32.mrf.mxu1 }
 0x196   :  { %v179_v22 = vadd.f32 %v242_v20, %v178_v21 }
 0x197   :  { %v276_v23 = vpop.f32.mrf.mxu1 }
 0x198   :  { %v185_v24 = vadd.f32 %v179_v22, %v27_v3 }
 0x199   :  { %v181_v25 = vpop.f32.mrf.mxu1 }
 0x19a   :  { %v182_v26 = vadd.f32 %v242_v20, %v181_v25  ;;  %v187_v27 = vsel %vm53_vm1, %v185_v24, 0.0 }
 0x19b   :  { %188 = vadd.xlane.f32.xlu0 %v187_v27  ;;  %v277_v28 = vpop.f32.mrf.mxu1 }
 0x19c   :  { %v186_v29 = vadd.f32 %v182_v26, %v28_v4 }
 0x19e   :  { %v190_v30 = vsel %vm53_vm1, %v186_v29, 0.0 }
 0x19f   :  { %191 = vadd.xlane.f32.xlu0 %v190_v30 }
 0x224   :  { %v189_v31 = vpop.xlane.xlu0 %188 }
 0x225   :  { %v194_v32 = vmul.f32 0.03125, %v189_v31 }
 0x227   :  { %v196_v33 = vsub.f32 %v185_v24, %v194_v32 }
 0x228   :  { %v192_v34 = vpop.xlane.xlu0 %191 }
 0x229   :  { %v195_v35 = vmul.f32 0.03125, %v192_v34  ;;  %v198_v36 = vmul.f32 %v196_v33, %v196_v33 }
 0x22b   :  { %v197_v37 = vsub.f32 %v186_v29, %v195_v35  ;;  %v200_v38 = vsel %vm53_vm1, %v198_v36, 0.0 }
 0x22c   :  { %201 = vadd.xlane.f32.xlu1 %v200_v38 }
 0x22d   :  { %v199_v39 = vmul.f32 %v197_v37, %v197_v37 }
 0x22f   :  { %v203_v40 = vsel %vm53_vm1, %v199_v39, 0.0 }
 0x230   :  { %204 = vadd.xlane.f32.xlu1 %v203_v40 }
 0x2b5   :  { %v202_v41 = vpop.xlane.xlu1 %201 }
 0x2b6   :  { %v206_v42 = vmul.f32 0.03125, %v202_v41 }
 0x2b8   :  { %v208_v43 = vadd.f32 1e-06, %v206_v42 }
 0x2b9   :  { %v205_v44 = vpop.xlane.xlu1 %204 }
 0x2ba   :  { %286 = vrsqrt.f32 %v208_v43  ;;  %v207_v45 = vmul.f32 0.03125, %v205_v44 }
 0x2bc   :  { %v209_v46 = vadd.f32 1e-06, %v207_v45 }
 0x2be   :  { %288 = vrsqrt.f32 %v209_v46 }
 0x2c7   :  { %v287_v47 = vpop.eup %286 }
 0x2c8   :  { %v212_v49 = vmul.f32 %v287_v47, %v196_v33 }
 0x2ca   :  { %v221_v51 = vmul.f32 %v248_v48, %v212_v49 }
 0x2cb   :  { %v289_v52 = vpop.eup %288 }
 0x2cc   :  { %v230_v53 = vadd.f32 %v249_v50, %v221_v51  ;;  %v213_v54 = vmul.f32 %v289_v52, %v197_v37 }
 0x2ce   :  { %232 = vst.msk [vmem:[%s388_s7] sm:$0xff] %vm53_vm1, %v230_v53  ;;  %v222_v55 = vmul.f32 %v248_v48, %v213_v54 }
 0x2d0   :  { %v231_v56 = vadd.f32 %v249_v50, %v222_v55 }
 0x2d2   :  { %233 = vst.msk [vmem:[%s388_s7 + $0x8] sm:$0xff] %vm53_vm1, %v231_v56 }

// kernel: decoder_forward.7
= control target key start
LH: loop header
LB: loop body
LE: loop exit
PB: predicated region body
PF: predicated region fallthrough
CT: control target
= control target key end

     0   :  { %s2191_s0 = inlined_call_operand.vmem [shape: f32[2,8,32], index: 0, kind: input, shape index: {}]   ;;  %s2192_s1 = inlined_call_operand.vmem [shape: f32[2,8,32], index: 1, kind: input, shape index: {}]   ;;  %s2193_s2 = inlined_call_operand.vmem [shape: f32[2,1,8], index: 2, kind: input, shape index: {}]   ;;  %s2194_s3 = inlined_call_operand.vmem [shape: bf16[32,32], index: 3, kind: input, shape index: {}]   ;;  %s2195_s4 = inlined_call_operand.vmem [shape: f32[1,32], index: 4, kind: input, shape index: {}]   ;;  %s2196_s5 = inlined_call_operand.vmem [shape: bf16[32,64], index: 5, kind: input, shape index: {}]   ;;  %s2197_s6 = inlined_call_operand.vmem [shape: f32[1,64], index: 6, kind: input, shape index: {}]   ;;  %s2198_s7 = inlined_call_operand.vmem [shape: bf16[32,32], index: 7, kind: input, shape index: {}]   ;;  %s2199_s8 = inlined_call_operand.vmem [shape: f32[1,32], index: 8, kind: input, shape index: {}]   ;;  %s2200_s9 = inlined_call_operand.vmem [shape: f32[1,32], index: 9, kind: input, shape index: {}]   ;;  %s2201_s10 = inlined_call_operand.vmem [shape: f32[1,32], index: 10, kind: input, shape index: {}]   ;;  %s2202_s11 = inlined_call_operand.vmem [shape: f32[2,8,32], index: 11, kind: output, shape index: {0}]   ;;  %s2203_s12 = inlined_call_operand.hbm [shape: f32[2,4,8,8], index: 12, kind: output, shape index: {1}]  }
   0x1   :  { %2204 = sst [smem:[#allocation6_spill]] %s2191_s0 }
   0x2   :  { %2205 = sst [smem:[#allocation7_spill]] %s2192_s1 }
   0x3   :  { %2206 = sst [smem:[#allocation8_spill]] %s2193_s2 }
   0x4   :  { %2207 = sst [smem:[#allocation9_spill]] %s2194_s3 }
   0x5   :  { %18 = vsyncpa [#allocation4], 0 }
   0x6   :  { %20 = vsyncpa [#allocation4 + $0x1], 0  ;;  %s1885_s21 = smov 0   ;;  %s1887_s22 = smov 0  }
   0x7   :  { %s1889_s23 = smov 0   ;;  %s1891_s24 = smov 0  }
   0x8   :  { %s1893_s25 = smov 0   ;;  %s1895_s26 = smov 0  }
   0x9 LB: > { %s1481_s27 = sadd.s32 4294967295, %s1805_s26   ;;  %s1482_s28 = sadd.s32 4294967294, %s1805_s26   ;;  %s1805_s26 = sphi %s1895_s26, %s26_s26   ;;  %s1801_s25 = sphi %s1893_s25, %s2218_s25   ;;  %s1797_s24 = sphi %s1891_s24, %s2217_s24   ;;  %s1793_s23 = sphi %s1889_s23, %s2216_s23   ;;  %s1789_s22 = sphi %s1887_s22, %s2215_s22   ;;  %s1785_s21 = sphi %s1885_s21, %s2214_s21  }
   0xa   : > { %s38_s29 = sadd.s32 1, %s1801_s25  ;;  %s323_s30 = sadd.s32 1, %s1793_s23 }
   0xb   : > { %p40_p0 = scmp.ge.s32.totalorder %s38_s29, 2  ;;  %p333_p1 = scmp.ne.s32.totalorder %s1793_s23, %s1789_s22 }
   0xc   : > { %p334_p2 = scmp.eq.s32.totalorder %s1481_s27, 1  ;;  %p339_p3 = scmp.ne.s32.totalorder %s1789_s22, %s1785_s21 }
   0xd   : > { %s2220_s29 = smov (%p40_p0, %s38_s29), 0  ;;  %p340_p5 = scmp.eq.s32.totalorder %s1482_s28, 1 }
   0xe   : > { %p1925_p4 = por %p334_p2, %p333_p1  ;;  %s318_s14 = ssub.s32 %s1801_s25, %s2220_s29 }
   0xf   : > { %p1485_p6 = scmp.ge.s32.totalorder %s1805_s26, 1  ;;  %p321_p7 = scmp.eq.s32.totalorder %s318_s14, 0 }
  0x10   : > { %p1932_p8 = por %p340_p5, %p339_p3  ;;  %p405_p9 = scmp.lt.s32.totalorder %s1805_s26, 3 }
  0x11   : > { %s1938_s16 = scalar_select %p321_p7, %s1793_s23, %s323_s30  }
  0x12   : > { %p406_p10 = pnand %p1485_p6, %p405_p9 }
  0x13   : > { %s2210_s3 = sld [smem:[#allocation9_spill]] (!%p406_p10)  ;;  %p463_p11 = scmp.lt.s32.totalorder (!%p406_p10), %s1797_s24, 1 }
  0x14   : > { %409 = sbr.rel (%p406_p10) target bundleno = 3004 (0xbbc), region = 64  ;;  %s2211_s1 = sld [smem:[#allocation7_spill]] (!%p406_p10) }
  0x15   : > { %s2212_s0 = sld [smem:[#allocation6_spill]] (!%p406_p10)  ;;  %s1809_s30 = smov (!%p406_p10), 96  }
  0x16   : > { %s2213_s2 = sld [smem:[#allocation8_spill]] (!%p406_p10)  ;;  %s1812_s20 = smov (!%p406_p10), 88  }
  0x19   : > { %v1707_v0 = vld [vmem:[%s2196_s5 + $0x8] sm:$0xff]   ;;  %v1807_v1 = vmov 0.0   ;;  %v1709_v3 = vld [vmem:[%s2196_s5] sm:$0xff]   ;;  %vm1808_vm0 = vmmov 0   ;;  %s1962_s17 = scalar_select %p463_p11, %s1797_s24, 1  ;;  %vm519_vm1 = vcmask 261120   ;;  %v490_v27 = vlaneseq }
  0x1a   : > { %1560 = vmatprep.subr.bf16.mxu1 %v1807_v1  ;;  %1552 = vmatprep.subr.bf16.mxu0 %v1807_v1  ;;  %v1708_v2 = vld [vmem:[%s2210_s3 + $0x8] sm:$0xff]   ;;  %v1710_v4 = vld [vmem:[%s2210_s3] sm:$0xff]   ;;  %vm641_vm2 = vcmask 64512   ;;  %vm708_vm3 = vcmask 1043456   ;;  %v1811_v31 = vmov 0  }
  0x1b   : > { %1561 = vmatpush3.bf16.msra.mxu1 %v1707_v0  ;;  %1564 = vmatprep.mubr.msk.bf16.mxu1 %vm1808_vm0, %v1807_v1  ;;  %s1965_s18 = sshll.u32 %s1962_s17, 3  ;;  %v1494_v9 = vld [vmem:[%s2197_s6] ss:$0 sm:$0xff]  ;;  %v491_v29 = vshrl.u32 %v490_v27, 7 }
  0x1c   : > { %1553 = vmatpush3.bf16.msra.mxu0 %v1708_v2  ;;  %1562 = vmatprep.subr.bf16.mxu1 %v1807_v1  ;;  %s473_s27 = scalar_lea.vmem %s2211_s1, %s1965_s18  ;;  %s469_s14 = scalar_lea.vmem %s2212_s0, %s1965_s18  ;;  %v1490_v10 = vld [vmem:[%s2195_s4] ss:$0 sm:$0xff] }
  0x1d   : > { %1554 = vmatprep.subr.bf16.mxu0 %v1807_v1  ;;  %1556 = vmatprep.mubr.msk.bf16.mxu0 %vm1808_vm0, %v1807_v1  ;;  %v486_v5 = vld [vmem:[%s473_s27] sm:$0xff]  ;;  %s476_s27 = scalar_lea.vmem %s2213_s2, %s1962_s17  ;;  %v492_v30 = vsub.s32 0, %v491_v29  ;;  %s460_s17 = sand.u32 1, %s1789_s22  }
  0x1e   : > { %v565_v6 = vpack.c.bf16 %v486_v5, %v486_v5  ;;  %v1977_v7 = vld [vmem:[%s469_s14] sm:$0xff]  ;;  %s1810_s14 = smov 120   ;;  %s1486_s28 = sshll.u32 %s460_s17, 5 }
  0x1f   : > { %1563 = vmatpush3.bf16.msra.mxu1 %v1709_v3  ;;  %v495_v8 = vpack.c.bf16 %v1977_v7, %v1977_v7  ;;  %v487_v28 = vld [vmem:[%s476_s27] sm:$0x1]  ;;  %s1813_s27 = smov 112   ;;  %s2135_s0 = scalar_lea.sflag [#allocation4], %s460_s17 }
  0x20   : > { %1555 = vmatpush3.bf16.msra.mxu0 %v1710_v4  ;;  %1574 = vmatprep.subr.bf16.mxu1 %v1807_v1  ;;  %vm488_vm4 = vcmp.gt.f32.partialorder %v487_v28, 0.0  ;;  %v754_v52 = vld [vmem:[%s2198_s7] sm:$0xf] }
  0x21   : > { %1568 = vmatprep.subr.bf16.mxu0 %v1807_v1  ;;  %v489_v32 = vsel %vm488_vm4, 1, %v1811_v31  ;;  %v759_v53 = vsel %vm708_vm3, %v754_v52, 0  ;;  %v1498_v2 = vld [vmem:[%s2199_s8] ss:$0 sm:$0xff] }
  0x22   : > { %1565 = vmatmul.mubr.msk.bf16.vlgmr.msra.gmra.mxu1 %vm519_vm1, %v565_v6  ;;  %v2013_v33 = vrot.slane %v489_v32, %v492_v30  ;;  %640 = vst.msk [vmem:[#allocation2] sm:$0xff] %vm519_vm1, %v1498_v2 }
  0x23   : > { %1557 = vmatmul.mubr.msk.bf16.vlgmr.msra.gmra.mxu0 %vm519_vm1, %v495_v8  ;;  %1576 = vmatprep.mubr.msk.bf16.mxu1 %vm1808_vm0, %v1807_v1 }
  0x24   : > { %1570 = vmatprep.mubr.msk.bf16.mxu0 %vm1808_vm0, %v1807_v1  ;;  %vm494_vm5 = vcmp.eq.s32.totalorder %v2013_v33, 1 }
  0xe2   : > { %v626_v11 = vpop.f32.mrf.mxu1 }
  0xe3   : > { %v627_v12 = vadd.f32 %v1494_v9, %v626_v11  ;;  %v557_v13 = vpop.f32.mrf.mxu0  ;;  %v752_v11 = vld [vmem:[#allocation2] sm:$0xff] }
  0xe4   : > { %v558_v14 = vadd.f32 %v1490_v10, %v557_v13  ;;  %v1566_v15 = vpop.f32.mrf.mxu1 }
  0xe5   : > { %v1993_v16 = vpack.c.bf16 %v627_v12, %v627_v12  ;;  %v1558_v17 = vpop.f32.mrf.mxu0 }
  0xe6   : > { %v629_v18 = vpop.f32.mrf.mxu1  ;;  %v563_v19 = vmul.f32 0.35355338, %v558_v14 }
  0xe7   : > { %703 = vrot.lane.b32.xlu1 %v1993_v16, %s1809_s30  ;;  %v560_v20 = vpop.f32.mrf.mxu0  ;;  %v646_v21 = vsel %vm641_vm2, %v1993_v16, 0  ;;  %s2025_s30 = scalar_lea.vmem [#allocation3], %s1486_s28  ;;  %s1815_s28 = smov 104  }
  0xe8   : > { %v1567_v22 = vpop.f32.mrf.mxu1  ;;  %1569 = vmatpush3.bf16.xpose.msra.mxu0 %v646_v21  ;;  %v1999_v24 = vpack.c.bf16 %v563_v19, %v563_v19  ;;  %s1354_s19 = sshll.u32 %s2025_s30, 4  ;;  %s2131_s19 = int_to_ptr.vmem [resolvable:$true] %s1354_s19 }
  0xe9   : > { %v1559_v23 = vpop.f32.mrf.mxu0  ;;  %1580 = vmatprep.subr.bf16.mxu0 %v1807_v1  ;;  %s1729_s1 = scalar_lea.vmem %s2131_s19, 512 }
  0xea   : > { %p1730_p12 = scmp.ne.s32.totalorder %s2131_s19, %s1729_s1 }
  0xeb   : > { %806 = vrot.lane.b32.xlu1 %v1993_v16, %s1810_s14 }
  0xec   : > { %p1731_p13 = pnand %p1730_p12, %p1925_p4 }
  0xee   : > { %p1732_p0 = pneg %p1731_p13 }
  0xef   : > { %1571 = vmatmul.mubr.msk.bf16.vlgmr.msra.gmra.mxu0 %vm641_vm2, %v1999_v24 }
  0xf0   : > { %1582 = vmatprep.mubr.msk.bf16.mxu0 %vm1808_vm0, %v1807_v1  ;;  %1581 = vmatpush3.bf16.msra.mxu0 %v759_v53 }
  0xf1   : > { %1592 = vmatprep.subr.bf16.mxu0 %v1807_v1 }
 0x159   : > { %v704_v25 = vpop.permute.xlu1 %703 }
 0x15a   : > { %v710_v26 = vsel %vm708_vm3, %v704_v25, 0 }
 0x15b   : > { %1575 = vmatpush3.bf16.msra.mxu1 %v710_v26  ;;  %v919_v26 = vld [vmem:[%s2198_s7 + $0x4] sm:$0xf] }
 0x15c   : > { %1586 = vmatprep.subr.bf16.mxu1 %v1807_v1  ;;  %v924_v27 = vsel %vm708_vm3, %v919_v26, 0 }
 0x15d   : > { %v807_v48 = vpop.permute.xlu1 %806 }
 0x15e   : > { %v812_v50 = vsel %vm641_vm2, %v807_v48, 0 }
 0x1af   : > { %v682_v34 = vpop.f32.mrf.mxu0 }
 0x1b0   : > { %v688_v35 = vsel %vm494_vm5, -1e+09, %v682_v34 }
 0x1b1   : > { %v1572_v36 = vpop.f32.mrf.mxu0  ;;  %v689_v37 = vsel %vm641_vm2, %v688_v35, -inf }
 0x1b2   : > { %690 = vmax.xlane.f32.xlu0 %v689_v37 }
 0x1b3   : > { %v685_v38 = vpop.f32.mrf.mxu0 }
 0x1b5   : > { %v1573_v39 = vpop.f32.mrf.mxu0 }
 0x23b   : > { %v691_v40 = vpop.xlane.xlu0 %690 }
 0x23c   : > { %v692_v41 = vsub.f32 %v688_v35, %v691_v40 }
 0x23e   : > { %v693_v42 = vmul.f32 1.442695, %v692_v41 }
 0x240   : > { %1711 = vpow2.f32 %v693_v42 }
 0x24d   : > { %v1712_v43 = vpop.eup %1711 }
 0x24e   : > { %v695_v44 = vsel %vm641_vm2, %v1712_v43, 0.0 }
 0x24f   : > { %696 = vadd.xlane.f32.xlu0 %v695_v44 }
 0x265   : > { %804 = vrot.lane.b32.xlu0 %v1999_v24, %s1810_s14  ;;  %s1521_s14 = sshll.u32 %s1797_s24, 9  ;;  %s1817_s24 = smov [#allocation3]  }
 0x2d8   : > { %v697_v45 = vpop.xlane.xlu0 %696 }
 0x2d9   : > { %1713 = vrcp.f32 %v697_v45 }
 0x2dc   : > { %v805_v51 = vpop.permute.xlu0 %804 }
 0x2e6   : > { %v1714_v46 = vpop.eup %1713 }
 0x2e7   : > { %v699_v47 = vmul.f32 %v1714_v46, %v1712_v43 }
 0x2e9   : > { %700 = vst.msk [vmem:[%s2025_s30] sm:$0xff] %vm641_vm2, %v699_v47  ;;  %v701_v49 = vpack.c.bf16 %v699_v47, %v699_v47 }
 0x2eb   : > { %1577 = vmatmul.mubr.msk.bf16.vlgmr.msra.gmra.mxu1 %vm641_vm2, %v701_v49 }
 0x2ec   : > { %1587 = vmatpush3.bf16.xpose.msra.mxu1 %v812_v50  ;;  %1588 = vmatprep.mubr.msk.bf16.mxu1 %vm1808_vm0, %v1807_v1 }
 0x2ed   : > { %1598 = vmatprep.subr.bf16.mxu1 %v1807_v1 }
 0x2f3   : > { %1589 = vmatmul.mubr.msk.bf16.vlgmr.msra.gmra.mxu1 %vm641_vm2, %v805_v51 }
 0x2f4   : > { %1600 = vmatprep.mubr.msk.bf16.mxu1 %vm1808_vm0, %v1807_v1  ;;  %1599 = vmatpush3.bf16.msra.mxu1 %v924_v27 }
 0x2f5   : > { %1610 = vmatprep.subr.bf16.mxu1 %v1807_v1 }
 0x3ab   : > { %v746_v54 = vpop.f32.mrf.mxu1 }
 0x3ac   : > { %v753_v55 = vpack.c.bf16 %v746_v54, %v746_v54 }
 0x3ad   : > { %v1578_v56 = vpop.f32.mrf.mxu1 }
 0x3ae   : > { %1583 = vmatmul.mubr.msk.bf16.vlgmr.msra.gmra.mxu0 %vm641_vm2, %v753_v55 }
 0x3af   : > { %v749_v57 = vpop.f32.mrf.mxu1  ;;  %1594 = vmatprep.mubr.msk.bf16.mxu0 %vm1808_vm0, %v1807_v1 }
 0x3b1   : > { %v1579_v58 = vpop.f32.mrf.mxu1 }
 0x3b3   : > { %v848_v59 = vpop.f32.mrf.mxu1 }
 0x3b4   : > { %v854_v60 = vsel %vm494_vm5, -1e+09, %v848_v59  ;;  %v1083_v59 = vld [vmem:[%s2198_s7 + $0x8] sm:$0xf] }
 0x3b5   : > { %v1590_v61 = vpop.f32.mrf.mxu1  ;;  %v855_v62 = vsel %vm641_vm2, %v854_v60, -inf }
 0x3b6   : > { %856 = vmax.xlane.f32.xlu1 %v855_v62 }
 0x3b7   : > { %v851_v63 = vpop.f32.mrf.mxu1 }
 0x3b9   : > { %v1591_v0 = vpop.f32.mrf.mxu1 }
 0x3c7   : > { %869 = vrot.lane.b32.xlu1 %v1993_v16, %s1812_s20  ;;  %s1816_s20 = smov 72  }
 0x3cb   : > { %968 = vrot.lane.b32.xlu1 %v1999_v24, %s1813_s27 }
 0x43f   : > { %v857_v3 = vpop.xlane.xlu1 %856 }
 0x440   : > { %v858_v4 = vsub.f32 %v854_v60, %v857_v3  ;;  %v1088_v60 = vsel %vm708_vm3, %v1083_v59, 0 }
 0x442   : > { %v859_v5 = vmul.f32 1.442695, %v858_v4 }
 0x443   : > { %v870_v6 = vpop.permute.xlu1 %869 }
 0x444   : > { %1715 = vpow2.f32 %v859_v5  ;;  %v875_v8 = vsel %vm708_vm3, %v870_v6, 0 }
 0x445   : > { %1593 = vmatpush3.bf16.msra.mxu0 %v875_v8 }
 0x446   : > { %1604 = vmatprep.subr.bf16.mxu0 %v1807_v1 }
 0x447   : > { %v969_v25 = vpop.permute.xlu1 %968 }
 0x451   : > { %v1716_v9 = vpop.eup %1715 }
 0x452   : > { %v861_v10 = vsel %vm641_vm2, %v1716_v9, 0.0 }
 0x453   : > { %862 = vadd.xlane.f32.xlu0 %v861_v10 }
 0x469   : > { %970 = vrot.lane.b32.xlu0 %v1993_v16, %s1813_s27  ;;  %s1814_s27 = smov 80  }
 0x46e   : > { %v795_v12 = vpop.f32.mrf.mxu0 }
 0x46f   : > { %v801_v13 = vadd.f32 %v795_v12, %v752_v11 }
 0x470   : > { %v1584_v14 = vpop.f32.mrf.mxu0 }
 0x471   : > { %802 = vst.msk [vmem:[#allocation2] sm:$0xff] %vm519_vm1, %v801_v13 }
 0x472   : > { %v798_v15 = vpop.f32.mrf.mxu0 }
 0x474   : > { %v1585_v17 = vpop.f32.mrf.mxu0 }
 0x478   : > { %v917_v47 = vld [vmem:[#allocation2] sm:$0xff] }
 0x4dc   : > { %v863_v18 = vpop.xlane.xlu0 %862 }
 0x4dd   : > { %1717 = vrcp.f32 %v863_v18 }
 0x4e0   : > { %v971_v21 = vpop.permute.xlu0 %970 }
 0x4e1   : > { %v976_v23 = vsel %vm641_vm2, %v971_v21, 0 }
 0x4ea   : > { %v1718_v19 = vpop.eup %1717 }
 0x4eb   : > { %v865_v20 = vmul.f32 %v1718_v19, %v1716_v9 }
 0x4ed   : > { %1503 = vst.msk [vmem:[%s2025_s30 + $0x8] sm:$0xff] %vm641_vm2, %v865_v20  ;;  %v868_v22 = vpack.c.bf16 %v865_v20, %v865_v20 }
 0x4ef   : > { %1595 = vmatmul.mubr.msk.bf16.vlgmr.msra.gmra.mxu0 %vm641_vm2, %v868_v22 }
 0x4f0   : > { %1605 = vmatpush3.bf16.xpose.msra.mxu0 %v976_v23  ;;  %1606 = vmatprep.mubr.msk.bf16.mxu0 %vm1808_vm0, %v1807_v1 }
 0x4f1   : > { %1616 = vmatprep.subr.bf16.mxu0 %v1807_v1 }
 0x4f7   : > { %1607 = vmatmul.mubr.msk.bf16.vlgmr.msra.gmra.mxu0 %vm641_vm2, %v969_v25 }
 0x4f8   : > { %1618 = vmatprep.mubr.msk.bf16.mxu0 %vm1808_vm0, %v1807_v1  ;;  %1617 = vmatpush3.bf16.msra.mxu0 %v1088_v60 }
 0x4f9   : > { %1628 = vmatprep.subr.bf16.mxu0 %v1807_v1 }
 0x5af   : > { %v911_v28 = vpop.f32.mrf.mxu0 }
 0x5b0   : > { %v918_v29 = vpack.c.bf16 %v911_v28, %v911_v28 }
 0x5b1   : > { %v1596_v30 = vpop.f32.mrf.mxu0 }
 0x5b2   : > { %1601 = vmatmul.mubr.msk.bf16.vlgmr.msra.gmra.mxu1 %vm641_vm2, %v918_v29 }
 0x5b3   : > { %v914_v31 = vpop.f32.mrf.mxu0  ;;  %1612 = vmatprep.mubr.msk.bf16.mxu1 %vm1808_vm0, %v1807_v1 }
 0x5b5   : > { %v1597_v32 = vpop.f32.mrf.mxu0 }
 0x5b7   : > { %v1012_v34 = vpop.f32.mrf.mxu0 }
 0x5b8   : > { %v1018_v35 = vsel %vm494_vm5, -1e+09, %v1012_v34 }
 0x5b9   : > { %v1608_v36 = vpop.f32.mrf.mxu0  ;;  %v1019_v37 = vsel %vm641_vm2, %v1018_v35, -inf }
 0x5ba   : > { %1020 = vmax.xlane.f32.xlu1 %v1019_v37 }
 0x5bb   : > { %v1015_v38 = vpop.f32.mrf.mxu0 }
 0x5bd   : > { %v1609_v39 = vpop.f32.mrf.mxu0 }
 0x5cb   : > { %1033 = vrot.lane.b32.xlu1 %v1993_v16, %s1814_s27 }
 0x5cf   : > { %1132 = vrot.lane.b32.xlu1 %v1999_v24, %s1815_s28 }
 0x643   : > { %v1021_v40 = vpop.xlane.xlu1 %1020 }
 0x644   : > { %v1022_v41 = vsub.f32 %v1018_v35, %v1021_v40 }
 0x646   : > { %v1023_v42 = vmul.f32 1.442695, %v1022_v41 }
 0x647   : > { %v1034_v43 = vpop.permute.xlu1 %1033 }
 0x648   : > { %1719 = vpow2.f32 %v1023_v42  ;;  %v1039_v44 = vsel %vm708_vm3, %v1034_v43, 0 }
 0x649   : > { %1611 = vmatpush3.bf16.msra.mxu1 %v1039_v44 }
 0x64a   : > { %1622 = vmatprep.subr.bf16.mxu1 %v1807_v1 }
 0x64b   : > { %v1133_v58 = vpop.permute.xlu1 %1132 }
 0x655   : > { %v1720_v45 = vpop.eup %1719 }
 0x656   : > { %v1025_v46 = vsel %vm641_vm2, %v1720_v45, 0.0 }
 0x657   : > { %1026 = vadd.xlane.f32.xlu0 %v1025_v46 }
 0x66d   : > { %1134 = vrot.lane.b32.xlu0 %v1993_v16, %s1815_s28  ;;  %s2129_s28 = scalar_lea.hbm %s2203_s12, %s1521_s14 }
 0x672   : > { %v960_v48 = vpop.f32.mrf.mxu1 }
 0x673   : > { %v966_v24 = vadd.f32 %v960_v48, %v917_v47 }
 0x674   : > { %v1602_v49 = vpop.f32.mrf.mxu1 }
 0x675   : > { %967 = vst.msk [vmem:[#allocation2] sm:$0xff] %vm519_vm1, %v966_v24 }
 0x676   : > { %v963_v50 = vpop.f32.mrf.mxu1 }
 0x678   : > { %v1603_v51 = vpop.f32.mrf.mxu1 }
 0x67c   : > { %v1081_v15 = vld [vmem:[#allocation2] sm:$0xff] }
 0x6e0   : > { %v1027_v52 = vpop.xlane.xlu0 %1026 }
 0x6e1   : > { %1721 = vrcp.f32 %v1027_v52 }
 0x6e4   : > { %v1135_v55 = vpop.permute.xlu0 %1134 }
 0x6e5   : > { %v1140_v57 = vsel %vm641_vm2, %v1135_v55, 0 }
 0x6ee   : > { %v1722_v53 = vpop.eup %1721 }
 0x6ef   : > { %v1029_v54 = vmul.f32 %v1722_v53, %v1720_v45 }
 0x6f1   : > { %1507 = vst.msk [vmem:[%s2025_s30 + $0x10] sm:$0xff] %vm641_vm2, %v1029_v54  ;;  %v1032_v56 = vpack.c.bf16 %v1029_v54, %v1029_v54 }
 0x6f3   : > { %1613 = vmatmul.mubr.msk.bf16.vlgmr.msra.gmra.mxu1 %vm641_vm2, %v1032_v56 }
 0x6f4   : > { %1623 = vmatpush3.bf16.xpose.msra.mxu1 %v1140_v57  ;;  %1624 = vmatprep.mubr.msk.bf16.mxu1 %vm1808_vm0, %v1807_v1 }
 0x6f5   : > { %1634 = vmatprep.subr.bf16.mxu1 %v1807_v1 }
 0x6fb   : > { %1625 = vmatmul.mubr.msk.bf16.vlgmr.msra.gmra.mxu1 %vm641_vm2, %v1133_v58 }
 0x6fc   : > { %1636 = vmatprep.mubr.msk.bf16.mxu1 %vm1808_vm0, %v1807_v1 }
 0x7b3   : > { %v1075_v61 = vpop.f32.mrf.mxu1 }
 0x7b4   : > { %v1082_v62 = vpack.c.bf16 %v1075_v61, %v1075_v61 }
 0x7b5   : > { %v1614_v63 = vpop.f32.mrf.mxu1 }
 0x7b6   : > { %1619 = vmatmul.mubr.msk.bf16.vlgmr.msra.gmra.mxu0 %vm641_vm2, %v1082_v62 }
 0x7b7   : > { %v1078_v0 = vpop.f32.mrf.mxu1  ;;  %1630 = vmatprep.mubr.msk.bf16.mxu0 %vm1808_vm0, %v1807_v1 }
 0x7b9   : > { %v1615_v2 = vpop.f32.mrf.mxu1 }
 0x7bb   : > { %v1176_v3 = vpop.f32.mrf.mxu1 }
 0x7bc   : > { %v1182_v4 = vsel %vm494_vm5, -1e+09, %v1176_v3 }
 0x7bd   : > { %v1626_v5 = vpop.f32.mrf.mxu1  ;;  %v1183_v6 = vsel %vm641_vm2, %v1182_v4, -inf }
 0x7be   : > { %1184 = vmax.xlane.f32.xlu1 %v1183_v6 }
 0x7bf   : > { %v1179_v8 = vpop.f32.mrf.mxu1 }
 0x7c1   : > { %v1627_v9 = vpop.f32.mrf.mxu1 }
 0x7cf   : > { %1197 = vrot.lane.b32.xlu1 %v1993_v16, %s1816_s20  ;;  %v1247_v16 = vld [vmem:[%s2198_s7 + $0xc] sm:$0xf] }
 0x7d0   : > { %v1252_v20 = vsel %vm708_vm3, %v1247_v16, 0 }
 0x7d1   : > { %1635 = vmatpush3.bf16.msra.mxu1 %v1252_v20 }
 0x847   : > { %v1185_v10 = vpop.xlane.xlu1 %1184 }
 0x848   : > { %v1186_v11 = vsub.f32 %v1182_v4, %v1185_v10 }
 0x84a   : > { %v1187_v12 = vmul.f32 1.442695, %v1186_v11 }
 0x84b   : > { %v1198_v13 = vpop.permute.xlu1 %1197 }
 0x84c   : > { %1723 = vpow2.f32 %v1187_v12  ;;  %v1203_v1 = vsel %vm708_vm3, %v1198_v13, 0 }
 0x84d   : > { %1629 = vmatpush3.bf16.msra.mxu0 %v1203_v1 }
 0x859   : > { %v1724_v14 = vpop.eup %1723 }
 0x85a   : > { %v1189_v33 = vsel %vm641_vm2, %v1724_v14, 0.0 }
 0x85b   : > { %1190 = vadd.xlane.f32.xlu0 %v1189_v33 }
 0x876   : > { %v1124_v17 = vpop.f32.mrf.mxu0 }
 0x877   : > { %v1130_v18 = vadd.f32 %v1124_v17, %v1081_v15 }
 0x878   : > { %v1620_v19 = vpop.f32.mrf.mxu0 }
 0x879   : > { %1131 = vst.msk [vmem:[#allocation2] sm:$0xff] %vm519_vm1, %v1130_v18 }
 0x87a   : > { %v1127_v21 = vpop.f32.mrf.mxu0 }
 0x87c   : > { %v1621_v22 = vpop.f32.mrf.mxu0 }
 0x880   : > { %v1245_v34 = vld [vmem:[#allocation2] sm:$0xff] }
 0x8e4   : > { %v1191_v23 = vpop.xlane.xlu0 %1190 }
 0x8e5   : > { %1725 = vrcp.f32 %v1191_v23 }
 0x8f2   : > { %v1726_v25 = vpop.eup %1725 }
 0x8f3   : > { %v1193_v26 = vmul.f32 %v1726_v25, %v1724_v14 }
 0x8f5   : > { %1511 = vst.msk [vmem:[%s2025_s30 + $0x18] sm:$0xff] %vm641_vm2, %v1193_v26  ;;  %v1196_v27 = vpack.c.bf16 %v1193_v26, %v1193_v26  ;;  %s1733_s30 = sshll.u32 %s1817_s24, 4  ;;  %s1734_s30 = int_to_ptr.vmem [resolvable:$false] %s1733_s30 }
 0x8f6   : > { %s1735_s2 = scalar_lea.vmem %s1734_s30, 1024  ;;  %p1736_p1 = scmp.lt.s32.totalorder %s2131_s19, %s1734_s30 }
 0x8f7   : > { %1631 = vmatmul.mubr.msk.bf16.vlgmr.msra.gmra.mxu0 %vm641_vm2, %v1196_v27  ;;  %p1737_p2 = scmp.lt.s32.totalorder %s1735_s2, %s1729_s1 }
 0x8f9   : > { %p1738_p3 = por %p1737_p2, %p1736_p1 }
 0x8fb   : > { %p1739_p5 = pnand %p1738_p3, %p1732_p0 }
 0x9b7   : > { %v1239_v28 = vpop.f32.mrf.mxu0 }
 0x9b8   : > { %v1246_v29 = vpack.c.bf16 %v1239_v28, %v1239_v28 }
 0x9b9   : > { %v1632_v30 = vpop.f32.mrf.mxu0 }
 0x9ba   : > { %1637 = vmatmul.mubr.msk.bf16.vlgmr.msra.gmra.mxu1 %vm641_vm2, %v1246_v29 }
 0x9bb   : > { %v1242_v31 = vpop.f32.mrf.mxu0 }
 0x9bd   : > { %v1633_v32 = vpop.f32.mrf.mxu0 }
 0xa7a   : > { %v1288_v35 = vpop.f32.mrf.mxu1 }
 0xa7b   : > { %v1294_v36 = vadd.f32 %v1288_v35, %v1245_v34 }
 0xa7c   : > { %v1638_v37 = vpop.f32.mrf.mxu1 }
 0xa7d   : > { %1295 = vst.msk [vmem:[#allocation2] sm:$0xff] %vm519_vm1, %v1294_v36 }
 0xa7e   : > { %v1291_v38 = vpop.f32.mrf.mxu1 }
 0xa80   : > { %v1639_v39 = vpop.f32.mrf.mxu1 }
 0xa84   : > { %v1296_v40 = vld [vmem:[#allocation2] sm:$0xff] }
 0xa85   : > { %v1297_v41 = vadd.f32 %v1296_v40, %v1977_v7 }
 0xa87   : > { %v1298_v42 = vsel %vm519_vm1, %v1297_v41, 0.0 }
 0xa88   : > { %1299 = vadd.xlane.f32.xlu0 %v1298_v42 }
 0xb11   : > { %v1300_v43 = vpop.xlane.xlu0 %1299 }
 0xb12   : > { %v1302_v44 = vmul.f32 0.03125, %v1300_v43 }
 0xb14   : > { %v1303_v45 = vsub.f32 %v1297_v41, %v1302_v44 }
 0xb16   : > { %v1304_v46 = vmul.f32 %v1303_v45, %v1303_v45 }
 0xb18   : > { %v1305_v47 = vsel %vm519_vm1, %v1304_v46, 0.0 }
 0xb19   : > { %1306 = vadd.xlane.f32.xlu0 %v1305_v47 }
 0xb1a   : > { %1742 = shalt.err (!%p1739_p5)
}
 0xb1b   : > { %s1743_s17 = scalar_lea.hbm %s2129_s28, 512  ;;  %s1747_s27 = scalar_lea.hbm %s2203_s12, 1024 }
 0xb1c   : > { %p1744_p6 = scmp.ne.s32.totalorder %s2129_s28, %s1743_s17  ;;  %p1748_p10 = scmp.lt.s32.totalorder %s2129_s28, %s2203_s12 }
 0xb1d   : > { %p1749_p11 = scmp.lt.s32.totalorder %s1747_s27, %s1743_s17 }
 0xb1e   : > { %p1745_p7 = pnand %p1744_p6, %p1925_p4 }
 0xb1f   : > { %p1750_p12 = por %p1749_p11, %p1748_p10 }
 0xb20   : > { %p1746_p9 = pneg %p1745_p7 }
 0xb22   : > { %p1751_p13 = pnand %p1750_p12, %p1746_p9 }
 0xb24   : > { %1754 = shalt.err (!%p1751_p13)
}
 0xb25   : > { %s1818_s1 = smov 128   ;;  %s1819_s2 = smov 8   ;;  %v1514_v50 = vld [vmem:[%s2200_s9] ss:$0 sm:$0xff] }
 0xb26   : > { %1640 = dma.vmem_to_hbm [thread:$0]  (%p1925_p4), %s2131_s19, 512, %s2129_s28, %s2135_s0, %s1818_s1, %s1818_s1, %s1819_s2  }
 0xb27   : > { %v1515_v52 = vld [vmem:[%s2201_s10] ss:$0 sm:$0xff]  ;;  %s483_s13 = scalar_lea.vmem %s2202_s11, %s1965_s18 }
 0xba2   : > { %v1307_v7 = vpop.xlane.xlu0 %1306 }
 0xba3   : > { %v1308_v48 = vmul.f32 0.03125, %v1307_v7 }
 0xba5   : > { %v1309_v24 = vadd.f32 1e-06, %v1308_v48 }
 0xba7   : > { %1727 = vrsqrt.f32 %v1309_v24 }
 0xbb4   : > { %v1728_v49 = vpop.eup %1727 }
 0xbb5   : > { %v1311_v51 = vmul.f32 %v1728_v49, %v1303_v45 }
 0xbb7   : > { %v1319_v53 = vmul.f32 %v1514_v50, %v1311_v51 }
 0xbb9   : > { %v1327_v54 = vadd.f32 %v1515_v52, %v1319_v53 }
 0xbbb   : > { %1328 = vst.msk [vmem:[%s483_s13] sm:$0xff] %vm519_vm1, %v1327_v54 }
 0xbbc PF: > { %p1646_p4 = scmp.ge.s32.totalorder %s1805_s26, 2  ;;  %s1379_s0 = sand.u32 1, %s1785_s21  }
 0xbbd   : > { %s1380_s19 = scalar_lea.sflag [#allocation4], %s1379_s0 }
 0xbbe   : > { %p1643_p0 = pnand %p1646_p4, %p1932_p8 }
 0xbc0   : > { %p1644_p1 = pneg %p1643_p0 }
 0xbc2   : > { %1780 = dma.done.wait (%p1644_p1), %s1380_s19, 512  }
 0xbc3   : > { %1782 = vsyncadd (%p1644_p1), %s1380_s19, 4294966784  ;;  %s26_s26 = sadd.s32 1, %s1805_s26   ;;  %s2214_s21 = smov %s1789_s22 }
 0xbc4   : > { %p23_p2 = scmp.ge.s32.totalorder %s26_s26, 4   ;;  %s2215_s22 = smov %s1793_s23 }
 0xbc5   : > { %s2216_s23 = smov %s1938_s16  ;;  %s2217_s24 = smov %s1801_s25 }
 0xbc6   : > { %s2218_s25 = smov %s2220_s29  ;;  %25 = sbr.rel (!%p23_p2) target bundleno = 9 (0x9), region = 120 }
 0xbcb   :  { %1385 = vsyncpa [#allocation4], 1 }
 0xbcc   :  { %1387 = vsyncpa [#allocation4 + $0x1], 1 }

// kernel: decoder_forward.6
= control target key start
LH: loop header
LB: loop body
LE: loop exit
PB: predicated region body
PF: predicated region fallthrough
CT: control target
= control target key end

     0   :  { %s2201_s0 = inlined_call_operand.vmem [shape: f32[2,8,32], index: 0, kind: input, shape index: {}, may-alias: {0,1}]   ;;  %s2202_s1 = inlined_call_operand.vmem [shape: f32[2,8,32], index: 1, kind: input, shape index: {}, may-alias: {0,1}]   ;;  %s2203_s2 = inlined_call_operand.vmem [shape: f32[2,1,8], index: 2, kind: input, shape index: {}]   ;;  %s2204_s3 = inlined_call_operand.vmem [shape: bf16[32,32], index: 3, kind: input, shape index: {}]   ;;  %s2205_s4 = inlined_call_operand.vmem [shape: f32[1,32], index: 4, kind: input, shape index: {}]   ;;  %s2206_s5 = inlined_call_operand.vmem [shape: bf16[32,64], index: 5, kind: input, shape index: {}]   ;;  %s2207_s6 = inlined_call_operand.vmem [shape: f32[1,64], index: 6, kind: input, shape index: {}]   ;;  %s2208_s7 = inlined_call_operand.vmem [shape: bf16[32,32], index: 7, kind: input, shape index: {}]   ;;  %s2209_s8 = inlined_call_operand.vmem [shape: f32[1,32], index: 8, kind: input, shape index: {}]   ;;  %s2210_s9 = inlined_call_operand.vmem [shape: f32[1,32], index: 9, kind: input, shape index: {}]   ;;  %s2211_s10 = inlined_call_operand.vmem [shape: f32[1,32], index: 10, kind: input, shape index: {}]   ;;  %s2212_s11 = inlined_call_operand.vmem [shape: f32[2,8,32], index: 11, kind: output, shape index: {0}]   ;;  %s2213_s12 = inlined_call_operand.hbm [shape: f32[2,4,8,8], index: 12, kind: output, shape index: {1}]  }
   0x1   :  { %2214 = sst [smem:[#allocation6_spill]] %s2201_s0 }
   0x2   :  { %2215 = sst [smem:[#allocation7_spill]] %s2202_s1 }
   0x3   :  { %2216 = sst [smem:[#allocation8_spill]] %s2203_s2 }
   0x4   :  { %2217 = sst [smem:[#allocation9_spill]] %s2204_s3 }
   0x5   :  { %18 = vsyncpa [#allocation4], 0 }
   0x6   :  { %20 = vsyncpa [#allocation4 + $0x1], 0  ;;  %s1894_s21 = smov 0   ;;  %s1896_s22 = smov 0  }
   0x7   :  { %s1898_s23 = smov 0   ;;  %s1900_s24 = smov 0  }
   0x8   :  { %s1902_s25 = smov 0   ;;  %s1904_s26 = smov 0  }
   0x9 LB: > { %s1490_s27 = sadd.s32 4294967295, %s1814_s26   ;;  %s1491_s28 = sadd.s32 4294967294, %s1814_s26   ;;  %s1814_s26 = sphi %s1904_s26, %s26_s26   ;;  %s1810_s25 = sphi %s1902_s25, %s2230_s25   ;;  %s1806_s24 = sphi %s1900_s24, %s2229_s24   ;;  %s1802_s23 = sphi %s1898_s23, %s2228_s23   ;;  %s1798_s22 = sphi %s1896_s22, %s2227_s22   ;;  %s1794_s21 = sphi %s1894_s21, %s2226_s21  }
   0xa   : > { %s38_s29 = sadd.s32 1, %s1810_s25  ;;  %s323_s30 = sadd.s32 1, %s1802_s23 }
   0xb   : > { %p40_p0 = scmp.ge.s32.totalorder %s38_s29, 2  ;;  %p333_p1 = scmp.ne.s32.totalorder %s1802_s23, %s1798_s22 }
   0xc   : > { %p334_p2 = scmp.eq.s32.totalorder %s1490_s27, 1  ;;  %p339_p3 = scmp.ne.s32.totalorder %s1798_s22, %s1794_s21 }
   0xd   : > { %s2232_s29 = smov (%p40_p0, %s38_s29), 0  ;;  %p340_p5 = scmp.eq.s32.totalorder %s1491_s28, 1 }
   0xe   : > { %p1934_p4 = por %p334_p2, %p333_p1  ;;  %s318_s14 = ssub.s32 %s1810_s25, %s2232_s29 }
   0xf   : > { %p1494_p6 = scmp.ge.s32.totalorder %s1814_s26, 1  ;;  %p321_p7 = scmp.eq.s32.totalorder %s318_s14, 0 }
  0x10   : > { %p1941_p8 = por %p340_p5, %p339_p3  ;;  %p405_p9 = scmp.lt.s32.totalorder %s1814_s26, 3 }
  0x11   : > { %s1947_s16 = scalar_select %p321_p7, %s1802_s23, %s323_s30  }
  0x12   : > { %p406_p10 = pnand %p1494_p6, %p405_p9 }
  0x13   : > { %s2220_s3 = sld [smem:[#allocation9_spill]] (!%p406_p10)  ;;  %p463_p11 = scmp.lt.s32.totalorder (!%p406_p10), %s1806_s24, 1 }
  0x14   : > { %409 = sbr.rel (%p406_p10) target bundleno = 3004 (0xbbc), region = 64  ;;  %s2221_s1 = sld [smem:[#allocation7_spill]] (!%p406_p10) }
  0x15   : > { %s2222_s0 = sld [smem:[#allocation6_spill]] (!%p406_p10)  ;;  %s1818_s30 = smov (!%p406_p10), 96  }
  0x16   : > { %s2223_s2 = sld [smem:[#allocation8_spill]] (!%p406_p10)  ;;  %s1821_s20 = smov (!%p406_p10), 88  }
  0x19   : > { %v1716_v0 = vld [vmem:[%s2206_s5 + $0x8] sm:$0xff]   ;;  %v1816_v1 = vmov 0.0   ;;  %v1718_v3 = vld [vmem:[%s2206_s5] sm:$0xff]   ;;  %vm1817_vm0 = vmmov 0   ;;  %s1971_s17 = scalar_select %p463_p11, %s1806_s24, 1  ;;  %vm528_vm1 = vcmask 261120   ;;  %v490_v27 = vlaneseq }
  0x1a   : > { %1569 = vmatprep.subr.bf16.mxu1 %v1816_v1  ;;  %1561 = vmatprep.subr.bf16.mxu0 %v1816_v1  ;;  %v1717_v2 = vld [vmem:[%s2220_s3 + $0x8] sm:$0xff]   ;;  %v1719_v4 = vld [vmem:[%s2220_s3] sm:$0xff]   ;;  %vm650_vm2 = vcmask 64512   ;;  %vm717_vm3 = vcmask 1043456   ;;  %v1820_v31 = vmov 0  }
  0x1b   : > { %1570 = vmatpush3.bf16.msra.mxu1 %v1716_v0  ;;  %1573 = vmatprep.mubr.msk.bf16.mxu1 %vm1817_vm0, %v1816_v1  ;;  %s1974_s18 = sshll.u32 %s1971_s17, 3  ;;  %v1503_v9 = vld [vmem:[%s2207_s6] ss:$0 sm:$0xff]  ;;  %v491_v29 = vshrl.u32 %v490_v27, 7  ;;  %v495_v33 = vand.u32 127, %v490_v27 }
  0x1c   : > { %1562 = vmatpush3.bf16.msra.mxu0 %v1717_v2  ;;  %1571 = vmatprep.subr.bf16.mxu1 %v1816_v1  ;;  %s473_s27 = scalar_lea.vmem %s2221_s1, %s1974_s18  ;;  %s469_s14 = scalar_lea.vmem %s2222_s0, %s1974_s18  ;;  %v1499_v10 = vld [vmem:[%s2205_s4] ss:$0 sm:$0xff] }
  0x1d   : > { %1563 = vmatprep.subr.bf16.mxu0 %v1816_v1  ;;  %1565 = vmatprep.mubr.msk.bf16.mxu0 %vm1817_vm0, %v1816_v1  ;;  %v486_v5 = vld [vmem:[%s473_s27] sm:$0xff]  ;;  %s476_s27 = scalar_lea.vmem %s2223_s2, %s1971_s17  ;;  %v500_v30 = vsub.s32 0, %v491_v29  ;;  %vm496_vm5 = vcmp.gt.s32.totalorder %v495_v33, %v491_v29  ;;  %s460_s17 = sand.u32 1, %s1798_s22  }
  0x1e   : > { %v574_v6 = vpack.c.bf16 %v486_v5, %v486_v5  ;;  %v1986_v7 = vld [vmem:[%s469_s14] sm:$0xff]  ;;  %s1819_s14 = smov 120   ;;  %s1495_s28 = sshll.u32 %s460_s17, 5 }
  0x1f   : > { %1572 = vmatpush3.bf16.msra.mxu1 %v1718_v3  ;;  %v504_v8 = vpack.c.bf16 %v1986_v7, %v1986_v7  ;;  %v487_v28 = vld [vmem:[%s476_s27] sm:$0x1]  ;;  %s1822_s27 = smov 112   ;;  %s2145_s0 = scalar_lea.sflag [#allocation4], %s460_s17 }
  0x20   : > { %1564 = vmatpush3.bf16.msra.mxu0 %v1719_v4  ;;  %1583 = vmatprep.subr.bf16.mxu1 %v1816_v1  ;;  %vm488_vm4 = vcmp.gt.f32.partialorder %v487_v28, 0.0  ;;  %v763_v54 = vld [vmem:[%s2208_s7] sm:$0xf]  ;;  %v928_v28 = vld [vmem:[%s2208_s7 + $0x4] sm:$0xf] }
  0x21   : > { %1577 = vmatprep.subr.bf16.mxu0 %v1816_v1  ;;  %v497_v32 = vsel %vm488_vm4, 1, %v1820_v31  ;;  %v768_v55 = vsel %vm717_vm3, %v763_v54, 0  ;;  %v1507_v4 = vld [vmem:[%s2209_s8] ss:$0 sm:$0xff]  ;;  %v933_v29 = vsel %vm717_vm3, %v928_v28, 0 }
  0x22   : > { %1574 = vmatmul.mubr.msk.bf16.vlgmr.msra.gmra.mxu1 %vm528_vm1, %v574_v6  ;;  %v501_v34 = vrot.slane %v497_v32, %v500_v30  ;;  %649 = vst.msk [vmem:[#allocation2] sm:$0xff] %vm528_vm1, %v1507_v4 }
  0x23   : > { %1566 = vmatmul.mubr.msk.bf16.vlgmr.msra.gmra.mxu0 %vm528_vm1, %v504_v8  ;;  %1585 = vmatprep.mubr.msk.bf16.mxu1 %vm1817_vm0, %v1816_v1 }
  0x24   : > { %1579 = vmatprep.mubr.msk.bf16.mxu0 %vm1817_vm0, %v1816_v1  ;;  %vm502_vm6 = vcmp.eq.s32.totalorder %v501_v34, 1 }
  0x25   : > { %vm2022_vm7 = vmor %vm502_vm6, %vm496_vm5 }
  0xe2   : > { %v635_v11 = vpop.f32.mrf.mxu1 }
  0xe3   : > { %v636_v12 = vadd.f32 %v1503_v9, %v635_v11  ;;  %v566_v13 = vpop.f32.mrf.mxu0 }
  0xe4   : > { %v567_v14 = vadd.f32 %v1499_v10, %v566_v13  ;;  %v1575_v15 = vpop.f32.mrf.mxu1  ;;  %v761_v13 = vld [vmem:[#allocation2] sm:$0xff] }
  0xe5   : > { %v2002_v16 = vpack.c.bf16 %v636_v12, %v636_v12  ;;  %v1567_v17 = vpop.f32.mrf.mxu0 }
  0xe6   : > { %v638_v18 = vpop.f32.mrf.mxu1  ;;  %v572_v19 = vmul.f32 0.35355338, %v567_v14 }
  0xe7   : > { %712 = vrot.lane.b32.xlu1 %v2002_v16, %s1818_s30  ;;  %v569_v20 = vpop.f32.mrf.mxu0  ;;  %v655_v21 = vsel %vm650_vm2, %v2002_v16, 0  ;;  %s2035_s30 = scalar_lea.vmem [#allocation3], %s1495_s28  ;;  %s1824_s28 = smov 104  }
  0xe8   : > { %v1576_v22 = vpop.f32.mrf.mxu1  ;;  %1578 = vmatpush3.bf16.xpose.msra.mxu0 %v655_v21  ;;  %v2008_v24 = vpack.c.bf16 %v572_v19, %v572_v19  ;;  %s1363_s19 = sshll.u32 %s2035_s30, 4  ;;  %s2141_s19 = int_to_ptr.vmem [resolvable:$true] %s1363_s19 }
  0xe9   : > { %v1568_v23 = vpop.f32.mrf.mxu0  ;;  %1589 = vmatprep.subr.bf16.mxu0 %v1816_v1  ;;  %s1738_s1 = scalar_lea.vmem %s2141_s19, 512 }
  0xea   : > { %p1739_p12 = scmp.ne.s32.totalorder %s2141_s19, %s1738_s1 }
  0xeb   : > { %815 = vrot.lane.b32.xlu1 %v2002_v16, %s1819_s14 }
  0xec   : > { %p1740_p13 = pnand %p1739_p12, %p1934_p4 }
  0xee   : > { %p1741_p0 = pneg %p1740_p13 }
  0xef   : > { %1580 = vmatmul.mubr.msk.bf16.vlgmr.msra.gmra.mxu0 %vm650_vm2, %v2008_v24 }
  0xf0   : > { %1591 = vmatprep.mubr.msk.bf16.mxu0 %vm1817_vm0, %v1816_v1  ;;  %1590 = vmatpush3.bf16.msra.mxu0 %v768_v55 }
  0xf1   : > { %1601 = vmatprep.subr.bf16.mxu0 %v1816_v1 }
 0x159   : > { %v713_v25 = vpop.permute.xlu1 %712 }
 0x15a   : > { %v719_v26 = vsel %vm717_vm3, %v713_v25, 0 }
 0x15b   : > { %1584 = vmatpush3.bf16.msra.mxu1 %v719_v26 }
 0x15c   : > { %1595 = vmatprep.subr.bf16.mxu1 %v1816_v1 }
 0x15d   : > { %v816_v50 = vpop.permute.xlu1 %815 }
 0x15e   : > { %v821_v52 = vsel %vm650_vm2, %v816_v50, 0 }
 0x1af   : > { %v691_v36 = vpop.f32.mrf.mxu0 }
 0x1b0   : > { %v697_v37 = vsel %vm2022_vm7, -1e+09, %v691_v36 }
 0x1b1   : > { %v1581_v38 = vpop.f32.mrf.mxu0  ;;  %v698_v39 = vsel %vm650_vm2, %v697_v37, -inf }
 0x1b2   : > { %699 = vmax.xlane.f32.xlu0 %v698_v39 }
 0x1b3   : > { %v694_v40 = vpop.f32.mrf.mxu0 }
 0x1b5   : > { %v1582_v41 = vpop.f32.mrf.mxu0 }
 0x23b   : > { %v700_v42 = vpop.xlane.xlu0 %699 }
 0x23c   : > { %v701_v43 = vsub.f32 %v697_v37, %v700_v42 }
 0x23e   : > { %v702_v44 = vmul.f32 1.442695, %v701_v43 }
 0x240   : > { %1720 = vpow2.f32 %v702_v44 }
 0x24d   : > { %v1721_v45 = vpop.eup %1720 }
 0x24e   : > { %v704_v46 = vsel %vm650_vm2, %v1721_v45, 0.0 }
 0x24f   : > { %705 = vadd.xlane.f32.xlu0 %v704_v46 }
 0x265   : > { %813 = vrot.lane.b32.xlu0 %v2008_v24, %s1819_s14  ;;  %s1530_s14 = sshll.u32 %s1806_s24, 9  ;;  %s1826_s24 = smov [#allocation3]  }
 0x2d8   : > { %v706_v47 = vpop.xlane.xlu0 %705 }
 0x2d9   : > { %1722 = vrcp.f32 %v706_v47 }
 0x2dc   : > { %v814_v53 = vpop.permute.xlu0 %813 }
 0x2e6   : > { %v1723_v48 = vpop.eup %1722 }
 0x2e7   : > { %v708_v49 = vmul.f32 %v1723_v48, %v1721_v45 }
 0x2e9   : > { %709 = vst.msk [vmem:[%s2035_s30] sm:$0xff] %vm650_vm2, %v708_v49  ;;  %v710_v51 = vpack.c.bf16 %v708_v49, %v708_v49 }
 0x2eb   : > { %1586 = vmatmul.mubr.msk.bf16.vlgmr.msra.gmra.mxu1 %vm650_vm2, %v710_v51 }
 0x2ec   : > { %1596 = vmatpush3.bf16.xpose.msra.mxu1 %v821_v52  ;;  %1597 = vmatprep.mubr.msk.bf16.mxu1 %vm1817_vm0, %v1816_v1 }
 0x2ed   : > { %1607 = vmatprep.subr.bf16.mxu1 %v1816_v1 }
 0x2f3   : > { %1598 = vmatmul.mubr.msk.bf16.vlgmr.msra.gmra.mxu1 %vm650_vm2, %v814_v53 }
 0x2f4   : > { %1609 = vmatprep.mubr.msk.bf16.mxu1 %vm1817_vm0, %v1816_v1  ;;  %1608 = vmatpush3.bf16.msra.mxu1 %v933_v29 }
 0x2f5   : > { %1619 = vmatprep.subr.bf16.mxu1 %v1816_v1 }
 0x3ab   : > { %v755_v56 = vpop.f32.mrf.mxu1 }
 0x3ac   : > { %v762_v57 = vpack.c.bf16 %v755_v56, %v755_v56 }
 0x3ad   : > { %v1587_v58 = vpop.f32.mrf.mxu1 }
 0x3ae   : > { %1592 = vmatmul.mubr.msk.bf16.vlgmr.msra.gmra.mxu0 %vm650_vm2, %v762_v57 }
 0x3af   : > { %v758_v59 = vpop.f32.mrf.mxu1  ;;  %1603 = vmatprep.mubr.msk.bf16.mxu0 %vm1817_vm0, %v1816_v1 }
 0x3b1   : > { %v1588_v60 = vpop.f32.mrf.mxu1 }
 0x3b3   : > { %v857_v61 = vpop.f32.mrf.mxu1 }
 0x3b4   : > { %v863_v62 = vsel %vm2022_vm7, -1e+09, %v857_v61  ;;  %v1092_v61 = vld [vmem:[%s2208_s7 + $0x8] sm:$0xf] }
 0x3b5   : > { %v1599_v63 = vpop.f32.mrf.mxu1  ;;  %v864_v0 = vsel %vm650_vm2, %v863_v62, -inf }
 0x3b6   : > { %865 = vmax.xlane.f32.xlu1 %v864_v0 }
 0x3b7   : > { %v860_v2 = vpop.f32.mrf.mxu1 }
 0x3b9   : > { %v1600_v3 = vpop.f32.mrf.mxu1 }
 0x3c7   : > { %878 = vrot.lane.b32.xlu1 %v2002_v16, %s1821_s20  ;;  %s1825_s20 = smov 72  }
 0x3cb   : > { %977 = vrot.lane.b32.xlu1 %v2008_v24, %s1822_s27 }
 0x43f   : > { %v866_v5 = vpop.xlane.xlu1 %865 }
 0x440   : > { %v867_v6 = vsub.f32 %v863_v62, %v866_v5  ;;  %v1097_v62 = vsel %vm717_vm3, %v1092_v61, 0 }
 0x442   : > { %v868_v8 = vmul.f32 1.442695, %v867_v6 }
 0x443   : > { %v879_v9 = vpop.permute.xlu1 %878 }
 0x444   : > { %1724 = vpow2.f32 %v868_v8  ;;  %v884_v10 = vsel %vm717_vm3, %v879_v9, 0 }
 0x445   : > { %1602 = vmatpush3.bf16.msra.mxu0 %v884_v10 }
 0x446   : > { %1613 = vmatprep.subr.bf16.mxu0 %v1816_v1 }
 0x447   : > { %v978_v27 = vpop.permute.xlu1 %977 }
 0x451   : > { %v1725_v11 = vpop.eup %1724 }
 0x452   : > { %v870_v12 = vsel %vm650_vm2, %v1725_v11, 0.0 }
 0x453   : > { %871 = vadd.xlane.f32.xlu0 %v870_v12 }
 0x469   : > { %979 = vrot.lane.b32.xlu0 %v2002_v16, %s1822_s27  ;;  %s1823_s27 = smov 80  }
 0x46e   : > { %v804_v14 = vpop.f32.mrf.mxu0 }
 0x46f   : > { %v810_v15 = vadd.f32 %v804_v14, %v761_v13 }
 0x470   : > { %v1593_v17 = vpop.f32.mrf.mxu0 }
 0x471   : > { %811 = vst.msk [vmem:[#allocation2] sm:$0xff] %vm528_vm1, %v810_v15 }
 0x472   : > { %v807_v18 = vpop.f32.mrf.mxu0 }
 0x474   : > { %v1594_v19 = vpop.f32.mrf.mxu0 }
 0x478   : > { %v926_v49 = vld [vmem:[#allocation2] sm:$0xff] }
 0x4dc   : > { %v872_v20 = vpop.xlane.xlu0 %871 }
 0x4dd   : > { %1726 = vrcp.f32 %v872_v20 }
 0x4e0   : > { %v980_v23 = vpop.permute.xlu0 %979 }
 0x4e1   : > { %v985_v26 = vsel %vm650_vm2, %v980_v23, 0 }
 0x4ea   : > { %v1727_v21 = vpop.eup %1726 }
 0x4eb   : > { %v874_v22 = vmul.f32 %v1727_v21, %v1725_v11 }
 0x4ed   : > { %1512 = vst.msk [vmem:[%s2035_s30 + $0x8] sm:$0xff] %vm650_vm2, %v874_v22  ;;  %v877_v25 = vpack.c.bf16 %v874_v22, %v874_v22 }
 0x4ef   : > { %1604 = vmatmul.mubr.msk.bf16.vlgmr.msra.gmra.mxu0 %vm650_vm2, %v877_v25 }
 0x4f0   : > { %1614 = vmatpush3.bf16.xpose.msra.mxu0 %v985_v26  ;;  %1615 = vmatprep.mubr.msk.bf16.mxu0 %vm1817_vm0, %v1816_v1 }
 0x4f1   : > { %1625 = vmatprep.subr.bf16.mxu0 %v1816_v1 }
 0x4f7   : > { %1616 = vmatmul.mubr.msk.bf16.vlgmr.msra.gmra.mxu0 %vm650_vm2, %v978_v27 }
 0x4f8   : > { %1627 = vmatprep.mubr.msk.bf16.mxu0 %vm1817_vm0, %v1816_v1  ;;  %1626 = vmatpush3.bf16.msra.mxu0 %v1097_v62 }
 0x4f9   : > { %1637 = vmatprep.subr.bf16.mxu0 %v1816_v1 }
 0x5af   : > { %v920_v30 = vpop.f32.mrf.mxu0 }
 0x5b0   : > { %v927_v31 = vpack.c.bf16 %v920_v30, %v920_v30 }
 0x5b1   : > { %v1605_v32 = vpop.f32.mrf.mxu0 }
 0x5b2   : > { %1610 = vmatmul.mubr.msk.bf16.vlgmr.msra.gmra.mxu1 %vm650_vm2, %v927_v31 }
 0x5b3   : > { %v923_v33 = vpop.f32.mrf.mxu0  ;;  %1621 = vmatprep.mubr.msk.bf16.mxu1 %vm1817_vm0, %v1816_v1 }
 0x5b5   : > { %v1606_v34 = vpop.f32.mrf.mxu0 }
 0x5b7   : > { %v1021_v36 = vpop.f32.mrf.mxu0 }
 0x5b8   : > { %v1027_v37 = vsel %vm2022_vm7, -1e+09, %v1021_v36 }
 0x5b9   : > { %v1617_v38 = vpop.f32.mrf.mxu0  ;;  %v1028_v39 = vsel %vm650_vm2, %v1027_v37, -inf }
 0x5ba   : > { %1029 = vmax.xlane.f32.xlu1 %v1028_v39 }
 0x5bb   : > { %v1024_v40 = vpop.f32.mrf.mxu0 }
 0x5bd   : > { %v1618_v41 = vpop.f32.mrf.mxu0 }
 0x5cb   : > { %1042 = vrot.lane.b32.xlu1 %v2002_v16, %s1823_s27 }
 0x5cf   : > { %1141 = vrot.lane.b32.xlu1 %v2008_v24, %s1824_s28 }
 0x643   : > { %v1030_v42 = vpop.xlane.xlu1 %1029 }
 0x644   : > { %v1031_v43 = vsub.f32 %v1027_v37, %v1030_v42 }
 0x646   : > { %v1032_v44 = vmul.f32 1.442695, %v1031_v43 }
 0x647   : > { %v1043_v45 = vpop.permute.xlu1 %1042 }
 0x648   : > { %1728 = vpow2.f32 %v1032_v44  ;;  %v1048_v46 = vsel %vm717_vm3, %v1043_v45, 0 }
 0x649   : > { %1620 = vmatpush3.bf16.msra.mxu1 %v1048_v46 }
 0x64a   : > { %1631 = vmatprep.subr.bf16.mxu1 %v1816_v1 }
 0x64b   : > { %v1142_v60 = vpop.permute.xlu1 %1141 }
 0x655   : > { %v1729_v47 = vpop.eup %1728 }
 0x656   : > { %v1034_v48 = vsel %vm650_vm2, %v1729_v47, 0.0 }
 0x657   : > { %1035 = vadd.xlane.f32.xlu0 %v1034_v48 }
 0x66d   : > { %1143 = vrot.lane.b32.xlu0 %v2002_v16, %s1824_s28  ;;  %s2139_s28 = scalar_lea.hbm %s2213_s12, %s1530_s14 }
 0x672   : > { %v969_v50 = vpop.f32.mrf.mxu1 }
 0x673   : > { %v975_v24 = vadd.f32 %v969_v50, %v926_v49 }
 0x674   : > { %v1611_v51 = vpop.f32.mrf.mxu1 }
 0x675   : > { %976 = vst.msk [vmem:[#allocation2] sm:$0xff] %vm528_vm1, %v975_v24 }
 0x676   : > { %v972_v52 = vpop.f32.mrf.mxu1 }
 0x678   : > { %v1612_v53 = vpop.f32.mrf.mxu1 }
 0x67c   : > { %v1090_v18 = vld [vmem:[#allocation2] sm:$0xff] }
 0x6e0   : > { %v1036_v54 = vpop.xlane.xlu0 %1035 }
 0x6e1   : > { %1730 = vrcp.f32 %v1036_v54 }
 0x6e4   : > { %v1144_v57 = vpop.permute.xlu0 %1143 }
 0x6e5   : > { %v1149_v59 = vsel %vm650_vm2, %v1144_v57, 0 }
 0x6ee   : > { %v1731_v55 = vpop.eup %1730 }
 0x6ef   : > { %v1038_v56 = vmul.f32 %v1731_v55, %v1729_v47 }
 0x6f1   : > { %1516 = vst.msk [vmem:[%s2035_s30 + $0x10] sm:$0xff] %vm650_vm2, %v1038_v56  ;;  %v1041_v58 = vpack.c.bf16 %v1038_v56, %v1038_v56 }
 0x6f3   : > { %1622 = vmatmul.mubr.msk.bf16.vlgmr.msra.gmra.mxu1 %vm650_vm2, %v1041_v58 }
 0x6f4   : > { %1632 = vmatpush3.bf16.xpose.msra.mxu1 %v1149_v59  ;;  %1633 = vmatprep.mubr.msk.bf16.mxu1 %vm1817_vm0, %v1816_v1 }
 0x6f5   : > { %1643 = vmatprep.subr.bf16.mxu1 %v1816_v1 }
 0x6fb   : > { %1634 = vmatmul.mubr.msk.bf16.vlgmr.msra.gmra.mxu1 %vm650_vm2, %v1142_v60 }
 0x6fc   : > { %1645 = vmatprep.mubr.msk.bf16.mxu1 %vm1817_vm0, %v1816_v1 }
 0x7b3   : > { %v1084_v63 = vpop.f32.mrf.mxu1 }
 0x7b4   : > { %v1091_v0 = vpack.c.bf16 %v1084_v63, %v1084_v63 }
 0x7b5   : > { %v1623_v2 = vpop.f32.mrf.mxu1 }
 0x7b6   : > { %1628 = vmatmul.mubr.msk.bf16.vlgmr.msra.gmra.mxu0 %vm650_vm2, %v1091_v0 }
 0x7b7   : > { %v1087_v3 = vpop.f32.mrf.mxu1  ;;  %1639 = vmatprep.mubr.msk.bf16.mxu0 %vm1817_vm0, %v1816_v1 }
 0x7b9   : > { %v1624_v4 = vpop.f32.mrf.mxu1 }
 0x7bb   : > { %v1185_v5 = vpop.f32.mrf.mxu1 }
 0x7bc   : > { %v1191_v6 = vsel %vm2022_vm7, -1e+09, %v1185_v5 }
 0x7bd   : > { %v1635_v8 = vpop.f32.mrf.mxu1  ;;  %v1192_v9 = vsel %vm650_vm2, %v1191_v6, -inf }
 0x7be   : > { %1193 = vmax.xlane.f32.xlu1 %v1192_v9 }
 0x7bf   : > { %v1188_v10 = vpop.f32.mrf.mxu1 }
 0x7c1   : > { %v1636_v11 = vpop.f32.mrf.mxu1 }
 0x7cf   : > { %1206 = vrot.lane.b32.xlu1 %v2002_v16, %s1825_s20  ;;  %v1256_v16 = vld [vmem:[%s2208_s7 + $0xc] sm:$0xf] }
 0x7d0   : > { %v1261_v22 = vsel %vm717_vm3, %v1256_v16, 0 }
 0x7d1   : > { %1644 = vmatpush3.bf16.msra.mxu1 %v1261_v22 }
 0x847   : > { %v1194_v12 = vpop.xlane.xlu1 %1193 }
 0x848   : > { %v1195_v13 = vsub.f32 %v1191_v6, %v1194_v12 }
 0x84a   : > { %v1196_v14 = vmul.f32 1.442695, %v1195_v13 }
 0x84b   : > { %v1207_v15 = vpop.permute.xlu1 %1206 }
 0x84c   : > { %1732 = vpow2.f32 %v1196_v14  ;;  %v1212_v1 = vsel %vm717_vm3, %v1207_v15, 0 }
 0x84d   : > { %1638 = vmatpush3.bf16.msra.mxu0 %v1212_v1 }
 0x859   : > { %v1733_v17 = vpop.eup %1732 }
 0x85a   : > { %v1198_v35 = vsel %vm650_vm2, %v1733_v17, 0.0 }
 0x85b   : > { %1199 = vadd.xlane.f32.xlu0 %v1198_v35 }
 0x876   : > { %v1133_v19 = vpop.f32.mrf.mxu0 }
 0x877   : > { %v1139_v20 = vadd.f32 %v1133_v19, %v1090_v18 }
 0x878   : > { %v1629_v21 = vpop.f32.mrf.mxu0 }
 0x879   : > { %1140 = vst.msk [vmem:[#allocation2] sm:$0xff] %vm528_vm1, %v1139_v20 }
 0x87a   : > { %v1136_v23 = vpop.f32.mrf.mxu0 }
 0x87c   : > { %v1630_v25 = vpop.f32.mrf.mxu0 }
 0x880   : > { %v1254_v36 = vld [vmem:[#allocation2] sm:$0xff] }
 0x8e4   : > { %v1200_v26 = vpop.xlane.xlu0 %1199 }
 0x8e5   : > { %1734 = vrcp.f32 %v1200_v26 }
 0x8f2   : > { %v1735_v27 = vpop.eup %1734 }
 0x8f3   : > { %v1202_v28 = vmul.f32 %v1735_v27, %v1733_v17 }
 0x8f5   : > { %1520 = vst.msk [vmem:[%s2035_s30 + $0x18] sm:$0xff] %vm650_vm2, %v1202_v28  ;;  %v1205_v29 = vpack.c.bf16 %v1202_v28, %v1202_v28  ;;  %s1742_s30 = sshll.u32 %s1826_s24, 4  ;;  %s1743_s30 = int_to_ptr.vmem [resolvable:$false] %s1742_s30 }
 0x8f6   : > { %s1744_s2 = scalar_lea.vmem %s1743_s30, 1024  ;;  %p1745_p1 = scmp.lt.s32.totalorder %s2141_s19, %s1743_s30 }
 0x8f7   : > { %1640 = vmatmul.mubr.msk.bf16.vlgmr.msra.gmra.mxu0 %vm650_vm2, %v1205_v29  ;;  %p1746_p2 = scmp.lt.s32.totalorder %s1744_s2, %s1738_s1 }
 0x8f9   : > { %p1747_p3 = por %p1746_p2, %p1745_p1 }
 0x8fb   : > { %p1748_p5 = pnand %p1747_p3, %p1741_p0 }
 0x9b7   : > { %v1248_v30 = vpop.f32.mrf.mxu0 }
 0x9b8   : > { %v1255_v31 = vpack.c.bf16 %v1248_v30, %v1248_v30 }
 0x9b9   : > { %v1641_v32 = vpop.f32.mrf.mxu0 }
 0x9ba   : > { %1646 = vmatmul.mubr.msk.bf16.vlgmr.msra.gmra.mxu1 %vm650_vm2, %v1255_v31 }
 0x9bb   : > { %v1251_v33 = vpop.f32.mrf.mxu0 }
 0x9bd   : > { %v1642_v34 = vpop.f32.mrf.mxu0 }
 0xa7a   : > { %v1297_v37 = vpop.f32.mrf.mxu1 }
 0xa7b   : > { %v1303_v38 = vadd.f32 %v1297_v37, %v1254_v36 }
 0xa7c   : > { %v1647_v39 = vpop.f32.mrf.mxu1 }
 0xa7d   : > { %1304 = vst.msk [vmem:[#allocation2] sm:$0xff] %vm528_vm1, %v1303_v38 }
 0xa7e   : > { %v1300_v40 = vpop.f32.mrf.mxu1 }
 0xa80   : > { %v1648_v41 = vpop.f32.mrf.mxu1 }
 0xa84   : > { %v1305_v42 = vld [vmem:[#allocation2] sm:$0xff] }
 0xa85   : > { %v1306_v43 = vadd.f32 %v1305_v42, %v1986_v7 }
 0xa87   : > { %v1307_v44 = vsel %vm528_vm1, %v1306_v43, 0.0 }
 0xa88   : > { %1308 = vadd.xlane.f32.xlu0 %v1307_v44 }
 0xb11   : > { %v1309_v45 = vpop.xlane.xlu0 %1308 }
 0xb12   : > { %v1311_v46 = vmul.f32 0.03125, %v1309_v45 }
 0xb14   : > { %v1312_v47 = vsub.f32 %v1306_v43, %v1311_v46 }
 0xb16   : > { %v1313_v48 = vmul.f32 %v1312_v47, %v1312_v47 }
 0xb18   : > { %v1314_v49 = vsel %vm528_vm1, %v1313_v48, 0.0 }
 0xb19   : > { %1315 = vadd.xlane.f32.xlu0 %v1314_v49 }
 0xb1a   : > { %1751 = shalt.err (!%p1748_p5)
}
 0xb1b   : > { %s1752_s17 = scalar_lea.hbm %s2139_s28, 512  ;;  %s1756_s27 = scalar_lea.hbm %s2213_s12, 1024 }
 0xb1c   : > { %p1753_p6 = scmp.ne.s32.totalorder %s2139_s28, %s1752_s17  ;;  %p1757_p10 = scmp.lt.s32.totalorder %s2139_s28, %s2213_s12 }
 0xb1d   : > { %p1758_p11 = scmp.lt.s32.totalorder %s1756_s27, %s1752_s17 }
 0xb1e   : > { %p1754_p7 = pnand %p1753_p6, %p1934_p4 }
 0xb1f   : > { %p1759_p12 = por %p1758_p11, %p1757_p10 }
 0xb20   : > { %p1755_p9 = pneg %p1754_p7 }
 0xb22   : > { %p1760_p13 = pnand %p1759_p12, %p1755_p9 }
 0xb24   : > { %1763 = shalt.err (!%p1760_p13)
}
 0xb25   : > { %s1827_s1 = smov 128   ;;  %s1828_s2 = smov 8   ;;  %v1523_v52 = vld [vmem:[%s2210_s9] ss:$0 sm:$0xff] }
 0xb26   : > { %1649 = dma.vmem_to_hbm [thread:$0]  (%p1934_p4), %s2141_s19, 512, %s2139_s28, %s2145_s0, %s1827_s1, %s1827_s1, %s1828_s2  }
 0xb27   : > { %v1524_v54 = vld [vmem:[%s2211_s10] ss:$0 sm:$0xff]  ;;  %s483_s13 = scalar_lea.vmem %s2212_s11, %s1974_s18 }
 0xba2   : > { %v1316_v7 = vpop.xlane.xlu0 %1315 }
 0xba3   : > { %v1317_v50 = vmul.f32 0.03125, %v1316_v7 }
 0xba5   : > { %v1318_v24 = vadd.f32 1e-06, %v1317_v50 }
 0xba7   : > { %1736 = vrsqrt.f32 %v1318_v24 }
 0xbb4   : > { %v1737_v51 = vpop.eup %1736 }
 0xbb5   : > { %v1320_v53 = vmul.f32 %v1737_v51, %v1312_v47 }
 0xbb7   : > { %v1328_v55 = vmul.f32 %v1523_v52, %v1320_v53 }
 0xbb9   : > { %v1336_v56 = vadd.f32 %v1524_v54, %v1328_v55 }
 0xbbb   : > { %1337 = vst.msk [vmem:[%s483_s13] sm:$0xff] %vm528_vm1, %v1336_v56 }
 0xbbc PF: > { %p1655_p4 = scmp.ge.s32.totalorder %s1814_s26, 2  ;;  %s1388_s0 = sand.u32 1, %s1794_s21  }
 0xbbd   : > { %s1389_s19 = scalar_lea.sflag [#allocation4], %s1388_s0 }
 0xbbe   : > { %p1652_p0 = pnand %p1655_p4, %p1941_p8 }
 0xbc0   : > { %p1653_p1 = pneg %p1652_p0 }
 0xbc2   : > { %1789 = dma.done.wait (%p1653_p1), %s1389_s19, 512  }
 0xbc3   : > { %1791 = vsyncadd (%p1653_p1), %s1389_s19, 4294966784  ;;  %s26_s26 = sadd.s32 1, %s1814_s26   ;;  %s2226_s21 = smov %s1798_s22 }
 0xbc4   : > { %p23_p2 = scmp.ge.s32.totalorder %s26_s26, 4   ;;  %s2227_s22 = smov %s1802_s23 }
 0xbc5   : > { %s2228_s23 = smov %s1947_s16  ;;  %s2229_s24 = smov %s1810_s25 }
 0xbc6   : > { %s2230_s25 = smov %s2232_s29  ;;  %25 = sbr.rel (!%p23_p2) target bundleno = 9 (0x9), region = 120 }
 0xbcb   :  { %1394 = vsyncpa [#allocation4], 1 }
 0xbcc   :  { %1396 = vsyncpa [#allocation4 + $0x1], 1 }

</bundles_post_ra>
